<compile_context>
chip_gen: v7x
topology: tpu7x:2x2x1
jax: 0.10.0
libtpu: 0.0.40
codegen_flags: <defaults>
</compile_context>

<pallas_src>
import functools

import jax
import jax.numpy as jnp
from jax import lax
from jax.experimental import pallas as pl
from jax.experimental.pallas import tpu as pltpu


_DIN_TILE_MAX = 4096  # keeps double-buffered x blocks well under scoped VMEM on all gens


def _round_up(x, m):
    return -(-x // m) * m


def _episodic_block_kernel(xs_ref, xq_ref, ys_ref, w_ref, b_ref, out_ref,
                           acc_s_ref, acc_q_ref):
    """One grid step = (task-block i, Din-chunk kd).

    Block shapes:
      xs_ref : (TB*S, DIN_T) bf16  support rows (task-major), this Din chunk
      xq_ref : (TB*Q, DIN_T) bf16  query rows (task-major), this Din chunk
      ys_ref : (KCOLS, TB*S) f32   block-diagonal 1/count one-hots, rows
                                   zero-padded to a 128-multiple (KCOLS)
      w_ref  : (DIN_T, D)    bf16  backbone weight chunk (shared)
      b_ref  : (1, D)        f32   backbone bias (cancels in the distance for
                                   non-empty classes; kept for exact semantics)
      out_ref: (TB*Q, KCOLS) f32   lane-dense slab of 2*q.p - |q|^2 - |p|^2;
                                   wrapper takes per-task diagonal (Q,K) blocks
      acc_*  : f32 embedding accumulators, persist across the Din axis
    """
    kd = pl.program_id(1)

    @pl.when(kd == 0)
    def _():
        acc_s_ref[...] = jnp.zeros_like(acc_s_ref)
        acc_q_ref[...] = jnp.zeros_like(acc_q_ref)

    # 1) Fused backbone: bf16 MXU matmuls, f32 accumulation across Din chunks.
    w = w_ref[...]
    acc_s_ref[...] += jnp.dot(xs_ref[...], w, preferred_element_type=jnp.float32)
    acc_q_ref[...] += jnp.dot(xq_ref[...], w, preferred_element_type=jnp.float32)

    @pl.when(kd == pl.num_programs(1) - 1)
    def _():
        emb_s = acc_s_ref[...] + b_ref[...]          # (TB*S, D) f32
        emb_q = acc_q_ref[...] + b_ref[...]          # (TB*Q, D) f32

        # 2) Prototypes for every (task, class) at once: block-diagonal scaled
        #    one-hots fold the per-class mean into a single contraction.
        #    Rows >= TB*K are zero-padding -> zero prototypes -> dead columns.
        protos = jnp.dot(ys_ref[...], emb_s,
                         preferred_element_type=jnp.float32)       # (KCOLS, D)

        # 3) -||q - p||^2 logits; contract D against D (no transposes).
        qp = lax.dot_general(emb_q, protos, (((1,), (1,)), ((), ())),
                             preferred_element_type=jnp.float32)   # (TB*Q, KCOLS)
        q_sq = jnp.sum(emb_q * emb_q, axis=-1, keepdims=True)      # (TB*Q, 1)
        ones_row = jnp.ones((1, emb_q.shape[1]), dtype=jnp.float32)
        p_sq = lax.dot_general(ones_row, protos * protos,
                               (((1,), (1,)), ((), ())),
                               preferred_element_type=jnp.float32)  # (1, KCOLS)

        out_ref[...] = 2.0 * qp - q_sq - p_sq        # 128-lane-dense store


def _episodic_pallas(xs, xq, ys_bd, w_bf16, b_f32, *, nb, nd, tb, s, q,
                     kcols, din_tile, d):
    return pl.pallas_call(
        _episodic_block_kernel,
        out_shape=jax.ShapeDtypeStruct((nb * tb * q, kcols), jnp.float32),
        grid_spec=pltpu.PrefetchScalarGridSpec(
            num_scalar_prefetch=0,
            grid=(nb, nd),
            in_specs=[
                pl.BlockSpec((tb * s, din_tile), lambda i, kd: (i, kd)),
                pl.BlockSpec((tb * q, din_tile), lambda i, kd: (i, kd)),
                pl.BlockSpec((kcols, tb * s), lambda i, kd: (i, 0)),
                pl.BlockSpec((din_tile, d), lambda i, kd: (kd, 0)),
                pl.BlockSpec((1, d), lambda i, kd: (0, 0)),
            ],
            out_specs=pl.BlockSpec((tb * q, kcols), lambda i, kd: (i, 0)),
            scratch_shapes=[
                pltpu.VMEM((tb * s, d), jnp.float32),
                pltpu.VMEM((tb * q, d), jnp.float32),
            ]),
        compiler_params=pltpu.CompilerParams(
            dimension_semantics=("parallel", "arbitrary"),
            vmem_limit_bytes=32 * 1024 * 1024),
    )(xs, xq, ys_bd, w_bf16, b_f32)


@functools.partial(jax.jit, static_argnames=("num_classes", "tasks_per_block"))
def _episodic_forward(support_flat, support_y, query_flat, w, b,
                      *, num_classes, tasks_per_block):
    B, S, din = support_flat.shape
    Q = query_flat.shape[1]
    K = num_classes
    D = w.shape[1]

    TB = int(tasks_per_block)
    NB = -(-B // TB)                                  # cdiv
    B_pad = NB * TB
    if B_pad != B:
        pad = B_pad - B
        support_flat = jnp.pad(support_flat, ((0, pad), (0, 0), (0, 0)))
        query_flat = jnp.pad(query_flat, ((0, pad), (0, 0), (0, 0)))
        support_y = jnp.pad(support_y, ((0, pad), (0, 0)))

    # Din tiling (P3 accumulator pattern) so real image flattenings never
    # overflow scoped VMEM; demo Din=1024 is a single chunk.
    if din <= _DIN_TILE_MAX:
        din_tile, ND, din_pad = din, 1, din
    else:
        din_tile = _DIN_TILE_MAX
        ND = -(-din // din_tile)
        din_pad = ND * din_tile
    if din_pad != din:
        support_flat = jnp.pad(support_flat, ((0, 0), (0, 0), (0, din_pad - din)))
        query_flat = jnp.pad(query_flat, ((0, 0), (0, 0), (0, din_pad - din)))
        w = jnp.pad(w, ((0, din_pad - din), (0, 0)))

    # Support/query stay separate kernel inputs (no wrapper-side concat copy);
    # bf16 cast at the producer.
    xs = support_flat.reshape(NB * TB * S, din_pad).astype(jnp.bfloat16)
    xq = query_flat.reshape(NB * TB * Q, din_pad).astype(jnp.bfloat16)
    w_bf16 = w.astype(jnp.bfloat16)
    b_f32 = b.reshape(1, D).astype(jnp.float32)

    # Count-normalized one-hots (guarded against empty classes), laid out
    # block-diagonally and row-padded so the kernel output is 128-lane dense.
    KCOLS = _round_up(TB * K, 128)
    onehot = jax.nn.one_hot(support_y, K, dtype=jnp.float32)        # (B_pad,S,K)
    counts = jnp.sum(onehot, axis=1, keepdims=True)                 # (B_pad,1,K)
    ys_scaled = onehot / jnp.maximum(counts, 1.0)
    eye = jnp.eye(TB, dtype=jnp.float32)
    ys_bd = jnp.einsum("ntsk,tu->ntkus",
                       ys_scaled.reshape(NB, TB, S, K), eye)        # (NB,TB,K,TB,S)
    ys_bd = ys_bd.reshape(NB, TB * K, TB * S)
    if KCOLS != TB * K:
        ys_bd = jnp.pad(ys_bd, ((0, 0), (0, KCOLS - TB * K), (0, 0)))
    ys_bd = ys_bd.reshape(NB * KCOLS, TB * S)

    slab = _episodic_pallas(xs, xq, ys_bd, w_bf16, b_f32,
                            nb=NB, nd=ND, tb=TB, s=S, q=Q,
                            kcols=KCOLS, din_tile=din_tile, d=D)

    # Extract per-task diagonal (Q, K) blocks from the lane-dense slab.
    slab = slab.reshape(NB, TB, Q, KCOLS)[..., :TB * K]
    slab = slab.reshape(NB, TB, Q, TB, K)
    logits = jnp.einsum("ntquk,tu->ntqk", slab, eye)
    return logits.reshape(B_pad, Q, K)[:B]


def _choose_task_block(B, S, Q, tasks_per_block):
    """Pick tasks-per-grid-step: NB=1 on 1-TC chips (v5e/v6e), NB=2 on v7x."""
    if tasks_per_block is None:
        kind = ""
        try:
            kind = jax.devices()[0].device_kind.lower()
        except Exception:
            pass
        groups = 2 if "v7" in kind else 1      # v7x has 2 TensorCores/chip
        tb = max(1, -(-B // groups))
    else:
        tb = max(1, min(int(tasks_per_block), B))
    nb = -(-B // tb)
    # Mosaic (8,128) sublane rule: row blocks must be 8-aligned when nb > 1.
    if nb > 1 and ((tb * S) % 8 or (tb * Q) % 8):
        tb, nb = B, 1
    return tb


def episodic_model_forward(support_x, support_y, query_x, w, b, num_classes,
                           tasks_per_block=None):
    """Mirrors EpisodicModel.forward on a pre-stacked task batch.

    support_x: (B, S, C, H, W) or (B, S, Din)   float
    support_y: (B, S)                           int32 class ids in [0, K)
    query_x  : (B, Q, C, H, W) or (B, Q, Din)   float
    Returns the batched (B, Q, K) logits; logits[i] is exactly the per-task
    tensor the PyTorch module would return as the i-th list element.
    """
    B, S = support_y.shape
    Q = query_x.shape[1]
    support_flat = support_x.reshape(B, S, -1).astype(jnp.float32)
    query_flat = query_x.reshape(B, Q, -1).astype(jnp.float32)
    tb = _choose_task_block(B, S, Q, tasks_per_block)
    return _episodic_forward(support_flat, support_y, query_flat, w, b,
                             num_classes=num_classes, tasks_per_block=tb)


def episodic_model_forward_from_tasks(batch, w, b, num_classes,
                                      tasks_per_block=None):
    """Compatibility wrapper for a Python list of per-task dicts (stacks once)."""
    support_x = jnp.stack([t["support_x"] for t in batch])
    support_y = jnp.stack([t["support_y"] for t in batch])
    query_x = jnp.stack([t["query_x"] for t in batch])
    return episodic_model_forward(support_x, support_y, query_x, w, b,
                                  num_classes, tasks_per_block)


def _reference_forward(support_flat, support_y, query_flat, w, b, num_classes):
    """Pure-JAX reference using the same bf16 backbone casts as the kernel."""
    wb = w.astype(jnp.bfloat16)
    bb = b.reshape(1, -1).astype(jnp.float32)

    def one_task(xs, ys, xq):
        emb_s = jnp.dot(xs.astype(jnp.bfloat16), wb,
                        preferred_element_type=jnp.float32) + bb
        emb_q = jnp.dot(xq.astype(jnp.bfloat16), wb,
                        preferred_element_type=jnp.float32) + bb
        onehot = jax.nn.one_hot(ys, num_classes, dtype=jnp.float32)
        cnt = jnp.maximum(jnp.sum(onehot, axis=0), 1.0)
        protos = jnp.dot((onehot / cnt).T, emb_s,
                         precision=lax.Precision.HIGHEST)
        qp = jnp.dot(emb_q, protos.T, precision=lax.Precision.HIGHEST)
        q_sq = jnp.sum(emb_q * emb_q, axis=-1, keepdims=True)
        p_sq = jnp.sum(protos * protos, axis=-1)[None, :]
        return -(q_sq + p_sq - 2.0 * qp)

    return jax.vmap(one_task)(support_flat, support_y, query_flat)


if __name__ == "__main__":
    key = jax.random.PRNGKey(0)

    # Episodic setup: 32 tasks.  On v7x the auto task-block picks TB=16/NB=2
    # (both TensorCores busy); on v5e/v6e it picks TB=32/NB=1 (one grid step,
    # M=512 backbone matmul, TB*K=128 lane-dense output with zero padding).
    B_TASKS = 32
    K = 4                # classes per task (n-way)
    SHOTS = 2            # support examples per class
    S = K * SHOTS        # support set size (8)
    Q = 8                # query set size
    C, H, W = 4, 16, 16  # image shape (NCHW)
    D_IN = C * H * W
    D_EMB = 32           # embedding dim

    k_w, k_s, k_q = jax.random.split(key, 3)
    w_param = (jax.random.normal(k_w, (D_IN, D_EMB), dtype=jnp.float32)
               * (1.0 / jnp.sqrt(D_IN)))
    b_param = jnp.zeros((1, D_EMB), dtype=jnp.float32)

    # Pre-stacked device-resident task batch (per performance review: no
    # per-call Python-list stacking of B small host arrays).
    support_x = jax.random.normal(k_s, (B_TASKS, S, C, H, W), dtype=jnp.float32)
    query_x = jax.random.normal(k_q, (B_TASKS, Q, C, H, W), dtype=jnp.float32)
    support_y = jnp.tile(jnp.arange(K, dtype=jnp.int32), (B_TASKS, SHOTS))

    logits = episodic_model_forward(support_x, support_y, query_x,
                                    w_param, b_param, num_classes=K)
    logits = jax.block_until_ready(logits)

    assert logits.shape == (B_TASKS, Q, K)
    assert bool(jnp.all(jnp.isfinite(logits)))

    # Cross-check against a pure-JAX reference (same bf16 backbone casts).
    support_flat = support_x.reshape(B_TASKS, S, -1)
    query_flat = query_x.reshape(B_TASKS, Q, -1)
    ref = jax.block_until_ready(
        _reference_forward(support_flat, support_y, query_flat,
                           w_param, b_param, K))
    assert jnp.allclose(logits, ref, rtol=2e-2, atol=2e-1), (
        "max abs diff = %f" % float(jnp.max(jnp.abs(logits - ref))))

    print("KERNEL_OK")
</pallas_src>

<mosaic_0001>
module attributes {stable_mosaic.version = 11 : i64} {
  func.func @_episodic_block_kernel(%arg0: i32, %arg1: i32, %arg2: memref<256x1024xbf16, #tpu.memory_space<vmem>>, %arg3: memref<256x1024xbf16, #tpu.memory_space<vmem>>, %arg4: memref<128x256xf32, #tpu.memory_space<vmem>>, %arg5: memref<1024x32xbf16, #tpu.memory_space<vmem>>, %arg6: memref<1x32xf32, #tpu.memory_space<vmem>>, %arg7: memref<256x128xf32, #tpu.memory_space<vmem>>, %arg8: memref<256x32xf32, #tpu.memory_space<vmem>>, %arg9: memref<256x32xf32, #tpu.memory_space<vmem>>) attributes {dimension_semantics = [#tpu.dimension_semantics<parallel>, #tpu.dimension_semantics<arbitrary>], iteration_bounds = array<i64: 1, 1>, scalar_prefetch = 0 : i64, scratch_operands = 2 : i64, tpu.core_type = #tpu.core_type<tc>, window_params = [{transform_indices = @transform_0, window_bounds = array<i64: 256, 1024>}, {transform_indices = @transform_1, window_bounds = array<i64: 256, 1024>}, {transform_indices = @transform_2, window_bounds = array<i64: 128, 256>}, {transform_indices = @transform_3, window_bounds = array<i64: 1024, 32>}, {pipeline_mode = #tpu.pipeline_mode<synchronous>, transform_indices = @transform_4, window_bounds = array<i64: 1, 32>}, {transform_indices = @transform_5, window_bounds = array<i64: 256, 128>}]} {
    %c0_i32 = arith.constant 0 : i32
    %0 = arith.cmpi eq, %arg1, %c0_i32 : i32
    %1 = arith.extui %0 : i1 to i32
    %c0_i32_0 = arith.constant 0 : i32
    %2 = arith.cmpi ne, %1, %c0_i32_0 : i32
    scf.if %2 {
      %cst_17 = arith.constant 0.000000e+00 : f32
      %17 = vector.broadcast %cst_17 : f32 to vector<256x32xf32>
      %c0_18 = arith.constant 0 : index
      %c0_19 = arith.constant 0 : index
      %18 = vector.load %arg8[%c0_18, %c0_19] : memref<256x32xf32, #tpu.memory_space<vmem>>, vector<256x32xf32>
      tpu.vector_store %arg8[%c0_18, %c0_19], %17 {strides = array<i32>} : memref<256x32xf32, #tpu.memory_space<vmem>>, vector<256x32xf32>,
      %cst_20 = arith.constant 0.000000e+00 : f32
      %19 = vector.broadcast %cst_20 : f32 to vector<256x32xf32>
      %c0_21 = arith.constant 0 : index
      %c0_22 = arith.constant 0 : index
      %20 = vector.load %arg9[%c0_21, %c0_22] : memref<256x32xf32, #tpu.memory_space<vmem>>, vector<256x32xf32>
      tpu.vector_store %arg9[%c0_21, %c0_22], %19 {strides = array<i32>} : memref<256x32xf32, #tpu.memory_space<vmem>>, vector<256x32xf32>,
    } else {
    }
    %c0 = arith.constant 0 : index
    %c0_1 = arith.constant 0 : index
    %3 = vector.load %arg5[%c0, %c0_1] : memref<1024x32xbf16, #tpu.memory_space<vmem>>, vector<1024x32xbf16>
    %c0_2 = arith.constant 0 : index
    %c0_3 = arith.constant 0 : index
    %4 = vector.load %arg8[%c0_2, %c0_3] : memref<256x32xf32, #tpu.memory_space<vmem>>, vector<256x32xf32>
    %c0_4 = arith.constant 0 : index
    %c0_5 = arith.constant 0 : index
    %5 = vector.load %arg2[%c0_4, %c0_5] : memref<256x1024xbf16, #tpu.memory_space<vmem>>, vector<256x1024xbf16>
    %cst = arith.constant dense<0.000000e+00> : vector<256x32xf32>
    %6 = tpu.matmul %5, %3, %cst {dimension_numbers = #tpu.dot_dimension_numbers<[1], [0], [0], [1], [0, 0, 1, 1], [], []>} : vector<256x1024xbf16>, vector<1024x32xbf16>, vector<256x32xf32> -> vector<256x32xf32>
    %7 = arith.addf %4, %6 : vector<256x32xf32>
    %c0_6 = arith.constant 0 : index
    %c0_7 = arith.constant 0 : index
    %8 = vector.load %arg8[%c0_6, %c0_7] : memref<256x32xf32, #tpu.memory_space<vmem>>, vector<256x32xf32>
    tpu.vector_store %arg8[%c0_6, %c0_7], %7 {strides = array<i32>} : memref<256x32xf32, #tpu.memory_space<vmem>>, vector<256x32xf32>,
    %c0_8 = arith.constant 0 : index
    %c0_9 = arith.constant 0 : index
    %9 = vector.load %arg9[%c0_8, %c0_9] : memref<256x32xf32, #tpu.memory_space<vmem>>, vector<256x32xf32>
    %c0_10 = arith.constant 0 : index
    %c0_11 = arith.constant 0 : index
    %10 = vector.load %arg3[%c0_10, %c0_11] : memref<256x1024xbf16, #tpu.memory_space<vmem>>, vector<256x1024xbf16>
    %cst_12 = arith.constant dense<0.000000e+00> : vector<256x32xf32>
    %11 = tpu.matmul %10, %3, %cst_12 {dimension_numbers = #tpu.dot_dimension_numbers<[1], [0], [0], [1], [0, 0, 1, 1], [], []>} : vector<256x1024xbf16>, vector<1024x32xbf16>, vector<256x32xf32> -> vector<256x32xf32>
    %12 = arith.addf %9, %11 : vector<256x32xf32>
    %c0_13 = arith.constant 0 : index
    %c0_14 = arith.constant 0 : index
    %13 = vector.load %arg9[%c0_13, %c0_14] : memref<256x32xf32, #tpu.memory_space<vmem>>, vector<256x32xf32>
    tpu.vector_store %arg9[%c0_13, %c0_14], %12 {strides = array<i32>} : memref<256x32xf32, #tpu.memory_space<vmem>>, vector<256x32xf32>,
    %c0_i32_15 = arith.constant 0 : i32
    %14 = arith.cmpi eq, %arg1, %c0_i32_15 : i32
    %15 = arith.extui %14 : i1 to i32
    %c0_i32_16 = arith.constant 0 : i32
    %16 = arith.cmpi ne, %15, %c0_i32_16 : i32
    scf.if %16 {
      %c0_17 = arith.constant 0 : index
      %c0_18 = arith.constant 0 : index
      %17 = vector.load %arg8[%c0_17, %c0_18] : memref<256x32xf32, #tpu.memory_space<vmem>>, vector<256x32xf32>
      %c0_19 = arith.constant 0 : index
      %c0_20 = arith.constant 0 : index
      %18 = vector.load %arg6[%c0_19, %c0_20] : memref<1x32xf32, #tpu.memory_space<vmem>>, vector<1x32xf32>
      %19 = vector.broadcast %18 : vector<1x32xf32> to vector<256x32xf32>
      %20 = arith.addf %17, %19 : vector<256x32xf32>
      %c0_21 = arith.constant 0 : index
      %c0_22 = arith.constant 0 : index
      %21 = vector.load %arg9[%c0_21, %c0_22] : memref<256x32xf32, #tpu.memory_space<vmem>>, vector<256x32xf32>
      %c0_23 = arith.constant 0 : index
      %c0_24 = arith.constant 0 : index
      %22 = vector.load %arg6[%c0_23, %c0_24] : memref<1x32xf32, #tpu.memory_space<vmem>>, vector<1x32xf32>
      %23 = vector.broadcast %22 : vector<1x32xf32> to vector<256x32xf32>
      %24 = arith.addf %21, %23 : vector<256x32xf32>
      %c0_25 = arith.constant 0 : index
      %c0_26 = arith.constant 0 : index
      %25 = vector.load %arg4[%c0_25, %c0_26] : memref<128x256xf32, #tpu.memory_space<vmem>>, vector<128x256xf32>
      %cst_27 = arith.constant dense<0.000000e+00> : vector<128x32xf32>
      %26 = tpu.matmul %25, %20, %cst_27 {dimension_numbers = #tpu.dot_dimension_numbers<[1], [0], [0], [1], [0, 0, 1, 1], [], []>} : vector<128x256xf32>, vector<256x32xf32>, vector<128x32xf32> -> vector<128x32xf32>
      %cst_28 = arith.constant dense<0.000000e+00> : vector<256x128xf32>
      %27 = tpu.matmul %24, %26, %cst_28 {dimension_numbers = #tpu.dot_dimension_numbers<[1], [1], [0], [0], [0, 0, 1, 0], [], []>} : vector<256x32xf32>, vector<128x32xf32>, vector<256x128xf32> -> vector<256x128xf32>
      %28 = arith.mulf %24, %24 : vector<256x32xf32>
      %cst_29 = arith.constant dense<0.000000e+00> : vector<256xf32>
      %29 = vector.multi_reduction <add>, %28, %cst_29 [1] : vector<256x32xf32> to vector<256xf32>
      %30 = vector.shape_cast %29 : vector<256xf32> to vector<256x1xf32>
      %cst_30 = arith.constant 1.000000e+00 : f32
      %31 = vector.broadcast %cst_30 : f32 to vector<1x32xf32>
      %32 = arith.mulf %26, %26 : vector<128x32xf32>
      %cst_31 = arith.constant dense<0.000000e+00> : vector<1x128xf32>
      %33 = tpu.matmul %31, %32, %cst_31 {dimension_numbers = #tpu.dot_dimension_numbers<[1], [1], [0], [0], [0, 0, 1, 0], [], []>} : vector<1x32xf32>, vector<128x32xf32>, vector<1x128xf32> -> vector<1x128xf32>
      %cst_32 = arith.constant 2.000000e+00 : f32
      %34 = vector.broadcast %cst_32 : f32 to vector<256x128xf32>
      %35 = arith.mulf %34, %27 : vector<256x128xf32>
      %36 = vector.broadcast %30 : vector<256x1xf32> to vector<256x128xf32>
      %37 = arith.subf %35, %36 : vector<256x128xf32>
      %38 = vector.broadcast %33 : vector<1x128xf32> to vector<256x128xf32>
      %39 = arith.subf %37, %38 : vector<256x128xf32>
      %c0_33 = arith.constant 0 : index
      %c0_34 = arith.constant 0 : index
      %40 = vector.load %arg7[%c0_33, %c0_34] : memref<256x128xf32, #tpu.memory_space<vmem>>, vector<256x128xf32>
      tpu.vector_store %arg7[%c0_33, %c0_34], %39 {strides = array<i32>} : memref<256x128xf32, #tpu.memory_space<vmem>>, vector<256x128xf32>,
    } else {
    }
    return
  }
  func.func @transform_0(%arg0: i32, %arg1: i32) -> (i32, i32) {
    %c0_i32 = arith.constant 0 : i32
    return %arg0, %arg1 : i32, i32
  }
  func.func @transform_1(%arg0: i32, %arg1: i32) -> (i32, i32) {
    %c0_i32 = arith.constant 0 : i32
    return %arg0, %arg1 : i32, i32
  }
  func.func @transform_2(%arg0: i32, %arg1: i32) -> (i32, i32) {
    %c0_i32 = arith.constant 0 : i32
    %c0_i32_0 = arith.constant 0 : i32
    return %arg0, %c0_i32 : i32, i32
  }
  func.func @transform_3(%arg0: i32, %arg1: i32) -> (i32, i32) {
    %c0_i32 = arith.constant 0 : i32
    %c0_i32_0 = arith.constant 0 : i32
    return %arg1, %c0_i32 : i32, i32
  }
  func.func @transform_4(%arg0: i32, %arg1: i32) -> (i32, i32) {
    %c0_i32 = arith.constant 0 : i32
    %c0_i32_0 = arith.constant 0 : i32
    %c0_i32_1 = arith.constant 0 : i32
    return %c0_i32, %c0_i32_0 : i32, i32
  }
  func.func @transform_5(%arg0: i32, %arg1: i32) -> (i32, i32) {
    %c0_i32 = arith.constant 0 : i32
    %c0_i32_0 = arith.constant 0 : i32
    return %arg0, %c0_i32 : i32, i32
  }
}

</mosaic_0001>

<bundles_post_ra>
// kernel: _episodic_forward.1
= control target key start
LH: loop header
LB: loop body
LE: loop exit
PB: predicated region body
PF: predicated region fallthrough
CT: control target
= control target key end

     0   :  { %vm25_vm0 = vcmask 261120   ;;  %vm6459_vm1 = vmmov 0   ;;  %s8864_s3 = inlined_call_operand.vmem [shape: bf16[1024,32], index: 3, kind: input, shape index: {}]   ;;  %s8865_s0 = inlined_call_operand.vmem [shape: bf16[256,1024], index: 0, kind: input, shape index: {}]   ;;  %s8866_s1 = inlined_call_operand.vmem [shape: bf16[256,1024], index: 1, kind: input, shape index: {}]   ;;  %s8867_s4 = inlined_call_operand.vmem [shape: f32[1,32], index: 4, kind: input, shape index: {}]   ;;  %s8868_s2 = inlined_call_operand.vmem [shape: f32[128,256], index: 2, kind: input, shape index: {}]   ;;  %s8869_s5 = inlined_call_operand.vmem [shape: f32[256,128], index: 5, kind: output, shape index: {}]  }
   0x1   :  { %v6494_v0 = vld [vmem:[%s8864_s3 + $0x40] sm:$0xff]   ;;  %v6517_v4 = vld [vmem:[%s8864_s3 + $0x48] sm:$0xff]   ;;  %v6541_v8 = vld [vmem:[%s8864_s3 + $0x50] sm:$0xff]  }
   0x2   :  { %v6499_v1 = vld [vmem:[%s8864_s3 + $0xc0] sm:$0xff]   ;;  %5090 = vmatprep.subr.bf16.mxu0 %v6494_v0  ;;  %v6523_v5 = vld [vmem:[%s8864_s3 + $0xc8] sm:$0xff]   ;;  %v6547_v9 = vld [vmem:[%s8864_s3 + $0xd0] sm:$0xff]  }
   0x3   :  { %v6505_v2 = vld [vmem:[%s8864_s3] sm:$0xff]   ;;  %5202 = vmatprep.subr.bf16.mxu1 %v6499_v1  ;;  %v6529_v6 = vld [vmem:[%s8864_s3 + $0x8] sm:$0xff]   ;;  %v6553_v10 = vld [vmem:[%s8864_s3 + $0x10] sm:$0xff]  }
   0x4   :  { %v6511_v3 = vld [vmem:[%s8864_s3 + $0x80] sm:$0xff]   ;;  %5091 = vmatpush3.bf16.msra.mxu0 %v6505_v2  ;;  %v6535_v7 = vld [vmem:[%s8864_s3 + $0x88] sm:$0xff]   ;;  %v6559_v11 = vld [vmem:[%s8864_s3 + $0x90] sm:$0xff]  }
   0x5   :  { %5203 = vmatpush3.bf16.msra.mxu1 %v6511_v3  ;;  %5092 = vmatprep.subr.bf16.mxu0 %v6517_v4  ;;  %v6565_v12 = vld [vmem:[%s8864_s3 + $0x58] sm:$0xff]   ;;  %v6589_v16 = vld [vmem:[%s8864_s3 + $0x60] sm:$0xff]   ;;  %v6613_v20 = vld [vmem:[%s8864_s3 + $0x68] sm:$0xff]  }
   0x6   :  { %5204 = vmatprep.subr.bf16.mxu1 %v6523_v5  ;;  %v6571_v13 = vld [vmem:[%s8864_s3 + $0xd8] sm:$0xff]   ;;  %v6595_v17 = vld [vmem:[%s8864_s3 + $0xe0] sm:$0xff]   ;;  %v6619_v21 = vld [vmem:[%s8864_s3 + $0xe8] sm:$0xff]  }
   0x7   :  { %v6577_v14 = vld [vmem:[%s8864_s3 + $0x18] sm:$0xff]   ;;  %v6601_v18 = vld [vmem:[%s8864_s3 + $0x20] sm:$0xff]   ;;  %v6625_v22 = vld [vmem:[%s8864_s3 + $0x28] sm:$0xff]  }
   0x8   :  { %5093 = vmatpush3.bf16.msra.mxu0 %v6529_v6  ;;  %v6583_v15 = vld [vmem:[%s8864_s3 + $0x98] sm:$0xff]   ;;  %v6607_v19 = vld [vmem:[%s8864_s3 + $0xa0] sm:$0xff]   ;;  %v6631_v23 = vld [vmem:[%s8864_s3 + $0xa8] sm:$0xff]  }
   0x9   :  { %5205 = vmatpush3.bf16.msra.mxu1 %v6535_v7  ;;  %5094 = vmatprep.subr.bf16.mxu0 %v6541_v8  ;;  %v6637_v24 = vld [vmem:[%s8864_s3 + $0x70] sm:$0xff]   ;;  %v6661_v28 = vld [vmem:[%s8864_s3 + $0x78] sm:$0xff]   ;;  %v250_v32 = vld [vmem:[%s8865_s0] sm:$0xff] }
   0xa   :  { %5206 = vmatprep.subr.bf16.mxu1 %v6547_v9  ;;  %v6643_v25 = vld [vmem:[%s8864_s3 + $0xf0] sm:$0xff]   ;;  %v6667_v29 = vld [vmem:[%s8864_s3 + $0xf8] sm:$0xff]   ;;  %v254_v33 = vld [vmem:[%s8865_s0 + $0x20] sm:$0xff] }
   0xb   :  { %v6649_v26 = vld [vmem:[%s8864_s3 + $0x30] sm:$0xff]   ;;  %v6673_v30 = vld [vmem:[%s8864_s3 + $0x38] sm:$0xff]   ;;  %v251_v34 = vld [vmem:[%s8865_s0 + $0x8] sm:$0xff]  ;;  %v4704_v35 = vcombine.low %v250_v32, %v254_v33  ;;  %v4705_v36 = vcombine.high %v250_v32, %v254_v33 }
   0xc   :  { %5095 = vmatpush3.bf16.msra.mxu0 %v6553_v10  ;;  %v6655_v27 = vld [vmem:[%s8864_s3 + $0xb0] sm:$0xff]   ;;  %v6679_v31 = vld [vmem:[%s8864_s3 + $0xb8] sm:$0xff]   ;;  %v255_v37 = vld [vmem:[%s8865_s0 + $0x28] sm:$0xff] }
   0xd   :  { %5207 = vmatpush3.bf16.msra.mxu1 %v6559_v11  ;;  %5096 = vmatprep.subr.bf16.mxu0 %v6565_v12  ;;  %v258_v38 = vld [vmem:[%s8865_s0 + $0x40] sm:$0xff]  ;;  %v4706_v40 = vcombine.low %v251_v34, %v255_v37  ;;  %v4707_v41 = vcombine.high %v251_v34, %v255_v37  ;;  %v259_v43 = vld [vmem:[%s8865_s0 + $0x48] sm:$0xff]  ;;  %vm8599_vm2 = vmpackc.low %vm25_vm0, %vm25_vm0 }
   0xe   :  { %5208 = vmatprep.subr.bf16.mxu1 %v6571_v13  ;;  %v262_v39 = vld [vmem:[%s8865_s0 + $0x60] sm:$0xff]  ;;  %v263_v44 = vld [vmem:[%s8865_s0 + $0x68] sm:$0xff]  ;;  %1434 = vmatprep.mubr.bf16.mxu0 %v4705_v36 }
   0xf   :  { %v4713_v42 = vcombine.high %v258_v38, %v262_v39  ;;  %v4715_v45 = vcombine.high %v259_v43, %v263_v44  ;;  %1595 = vmatprep.mubr.bf16.mxu1 %v4707_v41  ;;  %v266_v46 = vld [vmem:[%s8865_s0 + $0x80] sm:$0xff]  ;;  %v267_v48 = vld [vmem:[%s8865_s0 + $0x88] sm:$0xff]  ;;  %v4712_v50 = vcombine.low %v258_v38, %v262_v39  ;;  %v4714_v51 = vcombine.low %v259_v43, %v263_v44  ;;  %v6400_v41 = vld [vmem:[%s8864_s3 + $0x150] sm:$0xff]  }
  0x10   :  { %5097 = vmatpush3.bf16.msra.mxu0 %v6577_v14  ;;  %v270_v47 = vld [vmem:[%s8865_s0 + $0xa0] sm:$0xff]  ;;  %v271_v49 = vld [vmem:[%s8865_s0 + $0xa8] sm:$0xff]  ;;  %v6401_v44 = vld [vmem:[%s8864_s3 + $0x110] sm:$0xff]  }
  0x11   :  { %5209 = vmatpush3.bf16.msra.mxu1 %v6583_v15  ;;  %5098 = vmatprep.subr.bf16.mxu0 %v6589_v16  ;;  %v4721_v52 = vcombine.high %v266_v46, %v270_v47  ;;  %v4723_v53 = vcombine.high %v267_v48, %v271_v49  ;;  %v6722_v54 = vld [vmem:[%s8864_s3 + $0x140] sm:$0xff]   ;;  %v275_v58 = vld [vmem:[%s8865_s0 + $0xc8] sm:$0xff]  ;;  %v4720_v60 = vcombine.low %v266_v46, %v270_v47 }
  0x12   :  { %5210 = vmatprep.subr.bf16.mxu1 %v6595_v17  ;;  %v6395_v55 = vld [vmem:[%s8864_s3 + $0x100] sm:$0xff]   ;;  %v279_v59 = vld [vmem:[%s8865_s0 + $0xe8] sm:$0xff]  ;;  %v4722_v61 = vcombine.low %v267_v48, %v271_v49 }
  0x13   :  { %v274_v56 = vld [vmem:[%s8865_s0 + $0xc0] sm:$0xff]  ;;  %v6396_v63 = vld [vmem:[%s8864_s3 + $0x148] sm:$0xff]   ;;  %v4731_v32 = vcombine.high %v275_v58, %v279_v59 }
  0x14   :  { %5099 = vmatpush3.bf16.msra.mxu0 %v6601_v18  ;;  %v278_v57 = vld [vmem:[%s8865_s0 + $0xe0] sm:$0xff]  ;;  %v6397_v33 = vld [vmem:[%s8864_s3 + $0x108] sm:$0xff]  }
  0x15   :  { %5211 = vmatpush3.bf16.msra.mxu1 %v6607_v19  ;;  %5100 = vmatprep.subr.bf16.mxu0 %v6613_v20  ;;  %v4729_v62 = vcombine.high %v274_v56, %v278_v57  ;;  %v6749_v34 = vld [vmem:[%s8864_s3 + $0x1c0] sm:$0xff]   ;;  %v283_v38 = vld [vmem:[%s8865_s0 + $0x108] sm:$0xff] }
  0x16   :  { %5212 = vmatprep.subr.bf16.mxu1 %v6619_v21  ;;  %v282_v36 = vld [vmem:[%s8865_s0 + $0x100] sm:$0xff]  ;;  %v287_v39 = vld [vmem:[%s8865_s0 + $0x128] sm:$0xff] }
  0x17   :  { %v286_v37 = vld [vmem:[%s8865_s0 + $0x120] sm:$0xff]  ;;  %v6402_v46 = vld [vmem:[%s8864_s3 + $0x1c8] sm:$0xff]  }
  0x18   :  { %5101 = vmatpush3.bf16.msra.mxu0 %v6625_v22  ;;  %v4737_v43 = vcombine.high %v282_v36, %v286_v37  ;;  %v6403_v47 = vld [vmem:[%s8864_s3 + $0x188] sm:$0xff]   ;;  %v290_v48 = vld [vmem:[%s8865_s0 + $0x140] sm:$0xff] }
  0x19   :  { %5213 = vmatpush3.bf16.msra.mxu1 %v6631_v23  ;;  %5102 = vmatprep.subr.bf16.mxu0 %v6637_v24  ;;  %v294_v49 = vld [vmem:[%s8865_s0 + $0x160] sm:$0xff] }
  0x1a   :  { %5214 = vmatprep.subr.bf16.mxu1 %v6643_v25 }
  0x1c   :  { %5103 = vmatpush3.bf16.msra.mxu0 %v6649_v26 }
  0x1d   :  { %5215 = vmatpush3.bf16.msra.mxu1 %v6655_v27  ;;  %5104 = vmatprep.subr.bf16.mxu0 %v6661_v28 }
  0x1e   :  { %5216 = vmatprep.subr.bf16.mxu1 %v6667_v29 }
  0x20   :  { %5105 = vmatpush3.bf16.msra.mxu0 %v6673_v30 }
  0x21   :  { %5217 = vmatpush3.bf16.msra.mxu1 %v6679_v31  ;;  %5314 = vmatprep.subr.bf16.mxu0 %v6722_v54 }
  0x22   :  { %5426 = vmatprep.subr.bf16.mxu1 %v6749_v34 }
  0x23   :  { %1435 = vmatmul.mubr.bf16.vlgmr.msra.gmra.mrb[0].mxu0 %v4704_v35  ;;  %v6399_v35 = vld [vmem:[%s8864_s3 + $0x180] sm:$0xff]  }
  0x24   :  { %1596 = vmatmul.mubr.bf16.vlgmr.msra.gmra.mrb[0].mxu1 %v4706_v40  ;;  %1442 = vmatprep.mubr.bf16.mxu0 %v4713_v42  ;;  %v4728_v40 = vcombine.low %v274_v56, %v278_v57  ;;  %v4730_v42 = vcombine.low %v275_v58, %v279_v59  ;;  %v4736_v56 = vcombine.low %v282_v36, %v286_v37  ;;  %v6407_v57 = vld [vmem:[%s8864_s3 + $0x1d8] sm:$0xff]   ;;  %v303_v36 = vld [vmem:[%s8865_s0 + $0x1a8] sm:$0xff]  ;;  %v6411_v37 = vld [vmem:[%s8864_s3 + $0x1e0] sm:$0xff]  }
  0x25   :  { %1603 = vmatprep.mubr.bf16.mxu1 %v4715_v45  ;;  %5315 = vmatpush3.bf16.msra.mxu0 %v6395_v55  ;;  %v4739_v45 = vcombine.high %v283_v38, %v287_v39  ;;  %v6406_v55 = vld [vmem:[%s8864_s3 + $0x158] sm:$0xff]   ;;  %v4738_v58 = vcombine.low %v283_v38, %v287_v39  ;;  %v4745_v59 = vcombine.high %v290_v48, %v294_v49  ;;  %v6412_v38 = vld [vmem:[%s8864_s3 + $0x120] sm:$0xff]  }
  0x26   :  { %5316 = vmatprep.subr.bf16.mxu0 %v6396_v63  ;;  %5427 = vmatpush3.bf16.msra.mxu1 %v6399_v35  ;;  %v298_v63 = vld [vmem:[%s8865_s0 + $0x180] sm:$0xff]  ;;  %v299_v35 = vld [vmem:[%s8865_s0 + $0x188] sm:$0xff] }
  0x27   :  { %5428 = vmatprep.subr.bf16.mxu1 %v6402_v46  ;;  %v6413_v39 = vld [vmem:[%s8864_s3 + $0x1a0] sm:$0xff]   ;;  %v6416_v46 = vld [vmem:[%s8864_s3 + $0x128] sm:$0xff]  }
  0x29   :  { %5317 = vmatpush3.bf16.msra.mxu0 %v6397_v33  ;;  %v6410_v33 = vld [vmem:[%s8864_s3 + $0x160] sm:$0xff]  }
  0x2a   :  { %5318 = vmatprep.subr.bf16.mxu0 %v6400_v41  ;;  %5429 = vmatpush3.bf16.msra.mxu1 %v6403_v47  ;;  %v6414_v41 = vld [vmem:[%s8864_s3 + $0x168] sm:$0xff]  }
  0x2b   :  { %1443 = vmatmul.mubr.bf16.gmra.mrb[4].mxu0 %v4712_v50  ;;  %v291_v50 = vld [vmem:[%s8865_s0 + $0x148] sm:$0xff] }
  0x2c   :  { %1604 = vmatmul.mubr.bf16.gmra.mrb[4].mxu1 %v4714_v51  ;;  %1450 = vmatprep.mubr.bf16.mxu0 %v4721_v52  ;;  %v295_v51 = vld [vmem:[%s8865_s0 + $0x168] sm:$0xff]  ;;  %v6404_v52 = vld [vmem:[%s8864_s3 + $0x1d0] sm:$0xff]  }
  0x2d   :  { %1611 = vmatprep.mubr.bf16.mxu1 %v4723_v53  ;;  %5319 = vmatpush3.bf16.msra.mxu0 %v6401_v44  ;;  %v6405_v53 = vld [vmem:[%s8864_s3 + $0x190] sm:$0xff]   ;;  %v6415_v44 = vld [vmem:[%s8864_s3 + $0x1e8] sm:$0xff]  }
  0x2e   :  { %5430 = vmatprep.subr.bf16.mxu1 %v6404_v52  ;;  %5320 = vmatprep.subr.bf16.mxu0 %v6406_v55  ;;  %v6417_v47 = vld [vmem:[%s8864_s3 + $0x1a8] sm:$0xff]   ;;  %v6418_v52 = vld [vmem:[%s8864_s3 + $0x170] sm:$0xff]  }
  0x2f   :  { %5431 = vmatpush3.bf16.msra.mxu1 %v6405_v53  ;;  %v6419_v53 = vld [vmem:[%s8864_s3 + $0x1f0] sm:$0xff]  }
  0x30   :  { %5432 = vmatprep.subr.bf16.mxu1 %v6407_v57  ;;  %v4754_v57 = vcombine.low %v299_v35, %v303_v36 }
  0x33   :  { %1451 = vmatmul.mubr.bf16.gmra.mrb[8].mxu0 %v4720_v60  ;;  %v6408_v60 = vld [vmem:[%s8864_s3 + $0x118] sm:$0xff]  }
  0x34   :  { %1612 = vmatmul.mubr.bf16.gmra.mrb[8].mxu1 %v4722_v61  ;;  %1458 = vmatprep.mubr.bf16.mxu0 %v4729_v62  ;;  %v4747_v61 = vcombine.high %v291_v50, %v295_v51  ;;  %v6409_v62 = vld [vmem:[%s8864_s3 + $0x198] sm:$0xff]  }
  0x35   :  { %1619 = vmatprep.mubr.bf16.mxu1 %v4731_v32  ;;  %5321 = vmatpush3.bf16.msra.mxu0 %v6408_v60  ;;  %v302_v32 = vld [vmem:[%s8865_s0 + $0x1a0] sm:$0xff] }
  0x36   :  { %5433 = vmatpush3.bf16.msra.mxu1 %v6409_v62  ;;  %5322 = vmatprep.subr.bf16.mxu0 %v6410_v33  ;;  %v4752_v55 = vcombine.low %v298_v63, %v302_v32  ;;  %v6423_v62 = vld [vmem:[%s8864_s3 + $0x1f8] sm:$0xff]   ;;  %v314_v33 = vld [vmem:[%s8865_s0 + $0x200] sm:$0xff] }
  0x37   :  { %5434 = vmatprep.subr.bf16.mxu1 %v6411_v37  ;;  %v319_v37 = vld [vmem:[%s8865_s0 + $0x228] sm:$0xff] }
  0x39   :  { %5323 = vmatpush3.bf16.msra.mxu0 %v6412_v38 }
  0x3a   :  { %5435 = vmatpush3.bf16.msra.mxu1 %v6413_v39  ;;  %5324 = vmatprep.subr.bf16.mxu0 %v6414_v41 }
  0x3b   :  { %1459 = vmatmul.mubr.bf16.gmra.mrb[12].mxu0 %v4728_v40  ;;  %v4744_v40 = vcombine.low %v290_v48, %v294_v49  ;;  %5436 = vmatprep.subr.bf16.mxu1 %v6415_v44  ;;  %v306_v48 = vld [vmem:[%s8865_s0 + $0x1c0] sm:$0xff] }
  0x3c   :  { %1620 = vmatmul.mubr.bf16.gmra.mrb[12].mxu1 %v4730_v42  ;;  %1466 = vmatprep.mubr.bf16.mxu0 %v4737_v43  ;;  %v4746_v42 = vcombine.low %v291_v50, %v295_v51  ;;  %v4753_v43 = vcombine.high %v298_v63, %v302_v32  ;;  %v310_v49 = vld [vmem:[%s8865_s0 + $0x1e0] sm:$0xff]  ;;  %v307_v50 = vld [vmem:[%s8865_s0 + $0x1c8] sm:$0xff]  ;;  %v6424_v63 = vld [vmem:[%s8864_s3 + $0x138] sm:$0xff]  }
  0x3d   :  { %1627 = vmatprep.mubr.bf16.mxu1 %v4739_v45  ;;  %v4755_v45 = vcombine.high %v299_v35, %v303_v36  ;;  %v311_v51 = vld [vmem:[%s8865_s0 + $0x1e8] sm:$0xff]  ;;  %5325 = vmatpush3.bf16.msra.mxu0 %v6416_v46  ;;  %v6425_v32 = vld [vmem:[%s8864_s3 + $0x1b8] sm:$0xff]   ;;  %v318_v35 = vld [vmem:[%s8865_s0 + $0x220] sm:$0xff]  ;;  %v4760_v38 = vcombine.low %v306_v48, %v310_v49 }
  0x3e   :  { %5437 = vmatpush3.bf16.msra.mxu1 %v6417_v47  ;;  %5326 = vmatprep.subr.bf16.mxu0 %v6418_v52  ;;  %v4763_v60 = vcombine.high %v307_v50, %v311_v51  ;;  %v315_v36 = vld [vmem:[%s8865_s0 + $0x208] sm:$0xff]  ;;  %v4762_v39 = vcombine.low %v307_v50, %v311_v51  ;;  %v4768_v44 = vcombine.low %v314_v33, %v318_v35 }
  0x3f   :  { %5438 = vmatprep.subr.bf16.mxu1 %v6419_v53  ;;  %v4771_v41 = vcombine.high %v315_v36, %v319_v37  ;;  %v331_v50 = vld [vmem:[%s8865_s0 + $0x288] sm:$0xff] }
  0x40   :  { %v335_v51 = vld [vmem:[%s8865_s0 + $0x2a8] sm:$0xff] }
  0x43   :  { %1467 = vmatmul.mubr.bf16.gmra.mrb[16].mxu0 %v4736_v56  ;;  %v6420_v56 = vld [vmem:[%s8864_s3 + $0x130] sm:$0xff]  }
  0x44   :  { %1628 = vmatmul.mubr.bf16.gmra.mrb[16].mxu1 %v4738_v58  ;;  %1474 = vmatprep.mubr.bf16.mxu0 %v4745_v59  ;;  %v4761_v58 = vcombine.high %v306_v48, %v310_v49  ;;  %v6421_v59 = vld [vmem:[%s8864_s3 + $0x1b0] sm:$0xff]   ;;  %v330_v48 = vld [vmem:[%s8865_s0 + $0x280] sm:$0xff] }
  0x45   :  { %1635 = vmatprep.mubr.bf16.mxu1 %v4747_v61  ;;  %5327 = vmatpush3.bf16.msra.mxu0 %v6420_v56  ;;  %v6422_v61 = vld [vmem:[%s8864_s3 + $0x178] sm:$0xff]   ;;  %v334_v49 = vld [vmem:[%s8865_s0 + $0x2a0] sm:$0xff]  ;;  %v4787_v56 = vcombine.high %v331_v50, %v335_v51 }
  0x46   :  { %5439 = vmatpush3.bf16.msra.mxu1 %v6421_v59  ;;  %5328 = vmatprep.subr.bf16.mxu0 %v6422_v61  ;;  %v339_v59 = vld [vmem:[%s8865_s0 + $0x2c8] sm:$0xff]  ;;  %v4784_v61 = vcombine.low %v330_v48, %v334_v49 }
  0x47   :  { %5440 = vmatprep.subr.bf16.mxu1 %v6423_v62  ;;  %v4786_v62 = vcombine.low %v331_v50, %v335_v51  ;;  %v363_v50 = vld [vmem:[%s8865_s0 + $0x388] sm:$0xff] }
  0x48   :  { %v367_v51 = vld [vmem:[%s8865_s0 + $0x3a8] sm:$0xff] }
  0x49   :  { %5329 = vmatpush3.bf16.msra.mxu0 %v6424_v63 }
  0x4a   :  { %5441 = vmatpush3.bf16.msra.mxu1 %v6425_v32  ;;  %5538 = vmatprep.subr.bf16.mxu0 %v6494_v0  ;;  %v323_v0 = vld [vmem:[%s8865_s0 + $0x248] sm:$0xff] }
  0x4b   :  { %1475 = vmatmul.mubr.bf16.gmra.mrb[20].mxu0 %v4744_v40  ;;  %v4769_v40 = vcombine.high %v314_v33, %v318_v35  ;;  %5650 = vmatprep.subr.bf16.mxu1 %v6499_v1  ;;  %v327_v1 = vld [vmem:[%s8865_s0 + $0x268] sm:$0xff]  ;;  %v346_v33 = vld [vmem:[%s8865_s0 + $0x300] sm:$0xff] }
  0x4c   :  { %1636 = vmatmul.mubr.bf16.gmra.mrb[20].mxu1 %v4746_v42  ;;  %1482 = vmatprep.mubr.bf16.mxu0 %v4753_v43  ;;  %v322_v42 = vld [vmem:[%s8865_s0 + $0x240] sm:$0xff]  ;;  %v4779_v47 = vcombine.high %v323_v0, %v327_v1  ;;  %v4778_v53 = vcombine.low %v323_v0, %v327_v1  ;;  %v355_v0 = vld [vmem:[%s8865_s0 + $0x348] sm:$0xff] }
  0x4d   :  { %1643 = vmatprep.mubr.bf16.mxu1 %v4755_v45  ;;  %v326_v43 = vld [vmem:[%s8865_s0 + $0x260] sm:$0xff]  ;;  %v4770_v45 = vcombine.low %v315_v36, %v319_v37  ;;  %v347_v36 = vld [vmem:[%s8865_s0 + $0x308] sm:$0xff] }
  0x4e   :  { %v4777_v46 = vcombine.high %v322_v42, %v326_v43  ;;  %v4776_v52 = vcombine.low %v322_v42, %v326_v43  ;;  %v350_v35 = vld [vmem:[%s8865_s0 + $0x320] sm:$0xff]  ;;  %v351_v37 = vld [vmem:[%s8865_s0 + $0x328] sm:$0xff] }
  0x4f   :  { %v354_v42 = vld [vmem:[%s8865_s0 + $0x340] sm:$0xff]  ;;  %v359_v1 = vld [vmem:[%s8865_s0 + $0x368] sm:$0xff] }
  0x50   :  { %v358_v43 = vld [vmem:[%s8865_s0 + $0x360] sm:$0xff] }
  0x53   :  { %1483 = vmatmul.mubr.bf16.gmra.mrb[24].mxu0 %v4752_v55  ;;  %v4785_v55 = vcombine.high %v330_v48, %v334_v49  ;;  %v362_v48 = vld [vmem:[%s8865_s0 + $0x380] sm:$0xff] }
  0x54   :  { %1644 = vmatmul.mubr.bf16.gmra.mrb[24].mxu1 %v4754_v57  ;;  %1490 = vmatprep.mubr.bf16.mxu0 %v4761_v58  ;;  %v338_v57 = vld [vmem:[%s8865_s0 + $0x2c0] sm:$0xff] }
  0x55   :  { %1651 = vmatprep.mubr.bf16.mxu1 %v4763_v60  ;;  %v342_v58 = vld [vmem:[%s8865_s0 + $0x2e0] sm:$0xff]  ;;  %v343_v60 = vld [vmem:[%s8865_s0 + $0x2e8] sm:$0xff] }
  0x56   :  { %v4793_v63 = vcombine.high %v338_v57, %v342_v58  ;;  %v4795_v32 = vcombine.high %v339_v59, %v343_v60  ;;  %v366_v49 = vld [vmem:[%s8865_s0 + $0x3a0] sm:$0xff] }
  0x5b   :  { %1491 = vmatmul.mubr.bf16.gmra.mrb[28].mxu0 %v4760_v38  ;;  %v4792_v38 = vcombine.low %v338_v57, %v342_v58  ;;  %v370_v57 = vld [vmem:[%s8865_s0 + $0x3c0] sm:$0xff] }
  0x5c   :  { %1652 = vmatmul.mubr.bf16.gmra.mrb[28].mxu1 %v4762_v39  ;;  %1498 = vmatprep.mubr.bf16.mxu0 %v4769_v40  ;;  %v4794_v39 = vcombine.low %v339_v59, %v343_v60  ;;  %v4801_v40 = vcombine.high %v346_v33, %v350_v35  ;;  %v374_v58 = vld [vmem:[%s8865_s0 + $0x3e0] sm:$0xff]  ;;  %v371_v59 = vld [vmem:[%s8865_s0 + $0x3c8] sm:$0xff] }
  0x5d   :  { %1659 = vmatprep.mubr.bf16.mxu1 %v4771_v41  ;;  %v4803_v41 = vcombine.high %v347_v36, %v351_v37  ;;  %v375_v60 = vld [vmem:[%s8865_s0 + $0x3e8] sm:$0xff] }
  0x63   :  { %1499 = vmatmul.mubr.bf16.gmra.mrb[32].mxu0 %v4768_v44  ;;  %v4800_v44 = vcombine.low %v346_v33, %v350_v35  ;;  %v252_v33 = vld [vmem:[%s8865_s0 + $0x10] sm:$0xff] }
  0x64   :  { %1660 = vmatmul.mubr.bf16.gmra.mrb[32].mxu1 %v4770_v45  ;;  %1506 = vmatprep.mubr.bf16.mxu0 %v4777_v46  ;;  %v4802_v45 = vcombine.low %v347_v36, %v351_v37  ;;  %v4809_v46 = vcombine.high %v354_v42, %v358_v43  ;;  %v256_v35 = vld [vmem:[%s8865_s0 + $0x30] sm:$0xff]  ;;  %v253_v36 = vld [vmem:[%s8865_s0 + $0x18] sm:$0xff] }
  0x65   :  { %1667 = vmatprep.mubr.bf16.mxu1 %v4779_v47  ;;  %v4811_v47 = vcombine.high %v355_v0, %v359_v1  ;;  %v257_v37 = vld [vmem:[%s8865_s0 + $0x38] sm:$0xff] }
  0x6b   :  { %1507 = vmatmul.mubr.bf16.gmra.mrb[36].mxu0 %v4776_v52  ;;  %v4808_v52 = vcombine.low %v354_v42, %v358_v43  ;;  %v260_v42 = vld [vmem:[%s8865_s0 + $0x50] sm:$0xff] }
  0x6c   :  { %1668 = vmatmul.mubr.bf16.gmra.mrb[36].mxu1 %v4778_v53  ;;  %1514 = vmatprep.mubr.bf16.mxu0 %v4785_v55  ;;  %v4810_v53 = vcombine.low %v355_v0, %v359_v1  ;;  %v4817_v55 = vcombine.high %v362_v48, %v366_v49  ;;  %v264_v43 = vld [vmem:[%s8865_s0 + $0x70] sm:$0xff]  ;;  %v261_v0 = vld [vmem:[%s8865_s0 + $0x58] sm:$0xff] }
  0x6d   :  { %1675 = vmatprep.mubr.bf16.mxu1 %v4787_v56  ;;  %v4819_v56 = vcombine.high %v363_v50, %v367_v51  ;;  %v265_v1 = vld [vmem:[%s8865_s0 + $0x78] sm:$0xff] }
  0x73   :  { %1515 = vmatmul.mubr.bf16.gmra.mrb[40].mxu0 %v4784_v61  ;;  %v4816_v61 = vcombine.low %v362_v48, %v366_v49  ;;  %v268_v48 = vld [vmem:[%s8865_s0 + $0x90] sm:$0xff] }
  0x74   :  { %1676 = vmatmul.mubr.bf16.gmra.mrb[40].mxu1 %v4786_v62  ;;  %1522 = vmatprep.mubr.bf16.mxu0 %v4793_v63  ;;  %v4818_v62 = vcombine.low %v363_v50, %v367_v51  ;;  %v4825_v63 = vcombine.high %v370_v57, %v374_v58  ;;  %v272_v49 = vld [vmem:[%s8865_s0 + $0xb0] sm:$0xff]  ;;  %v269_v50 = vld [vmem:[%s8865_s0 + $0x98] sm:$0xff] }
  0x75   :  { %1683 = vmatprep.mubr.bf16.mxu1 %v4795_v32  ;;  %v4827_v32 = vcombine.high %v371_v59, %v375_v60  ;;  %v273_v51 = vld [vmem:[%s8865_s0 + $0xb8] sm:$0xff] }
  0x7b   :  { %1523 = vmatmul.mubr.bf16.gmra.mrb[44].mxu0 %v4792_v38  ;;  %v4824_v38 = vcombine.low %v370_v57, %v374_v58  ;;  %v308_v57 = vld [vmem:[%s8865_s0 + $0x1d0] sm:$0xff] }
  0x7c   :  { %1684 = vmatmul.mubr.bf16.gmra.mrb[44].mxu1 %v4794_v39  ;;  %1530 = vmatprep.mubr.bf16.mxu0 %v4801_v40  ;;  %v4826_v39 = vcombine.low %v371_v59, %v375_v60  ;;  %v4709_v40 = vcombine.high %v252_v33, %v256_v35  ;;  %v312_v58 = vld [vmem:[%s8865_s0 + $0x1f0] sm:$0xff]  ;;  %v309_v59 = vld [vmem:[%s8865_s0 + $0x1d8] sm:$0xff] }
  0x7d   :  { %1691 = vmatprep.mubr.bf16.mxu1 %v4803_v41  ;;  %v4711_v41 = vcombine.high %v253_v36, %v257_v37  ;;  %v313_v60 = vld [vmem:[%s8865_s0 + $0x1f8] sm:$0xff] }
  0x83   :  { %1531 = vmatmul.mubr.bf16.gmra.mrb[48].mxu0 %v4800_v44  ;;  %v4708_v44 = vcombine.low %v252_v33, %v256_v35  ;;  %v316_v33 = vld [vmem:[%s8865_s0 + $0x210] sm:$0xff] }
  0x84   :  { %1692 = vmatmul.mubr.bf16.gmra.mrb[48].mxu1 %v4802_v45  ;;  %1538 = vmatprep.mubr.bf16.mxu0 %v4809_v46  ;;  %v4710_v45 = vcombine.low %v253_v36, %v257_v37  ;;  %v4717_v46 = vcombine.high %v260_v42, %v264_v43  ;;  %v320_v35 = vld [vmem:[%s8865_s0 + $0x230] sm:$0xff]  ;;  %v317_v36 = vld [vmem:[%s8865_s0 + $0x218] sm:$0xff] }
  0x85   :  { %1699 = vmatprep.mubr.bf16.mxu1 %v4811_v47  ;;  %v4719_v47 = vcombine.high %v261_v0, %v265_v1  ;;  %v321_v37 = vld [vmem:[%s8865_s0 + $0x238] sm:$0xff] }
  0x8b   :  { %1539 = vmatmul.mubr.bf16.gmra.mrb[52].mxu0 %v4808_v52  ;;  %v4716_v52 = vcombine.low %v260_v42, %v264_v43  ;;  %v324_v42 = vld [vmem:[%s8865_s0 + $0x250] sm:$0xff] }
  0x8c   :  { %1700 = vmatmul.mubr.bf16.gmra.mrb[52].mxu1 %v4810_v53  ;;  %1546 = vmatprep.mubr.bf16.mxu0 %v4817_v55  ;;  %v4718_v53 = vcombine.low %v261_v0, %v265_v1  ;;  %v4725_v55 = vcombine.high %v268_v48, %v272_v49  ;;  %v328_v43 = vld [vmem:[%s8865_s0 + $0x270] sm:$0xff]  ;;  %v325_v0 = vld [vmem:[%s8865_s0 + $0x258] sm:$0xff] }
  0x8d   :  { %1707 = vmatprep.mubr.bf16.mxu1 %v4819_v56  ;;  %v4727_v56 = vcombine.high %v269_v50, %v273_v51  ;;  %v329_v1 = vld [vmem:[%s8865_s0 + $0x278] sm:$0xff] }
  0x93   :  { %1547 = vmatmul.mubr.bf16.gmra.mrb[56].mxu0 %v4816_v61 }
  0x94   :  { %1708 = vmatmul.mubr.bf16.gmra.mrb[56].mxu1 %v4818_v62  ;;  %1554 = vmatprep.mubr.bf16.mxu0 %v4825_v63  ;;  %v4765_v63 = vcombine.high %v308_v57, %v312_v58 }
  0x95   :  { %1715 = vmatprep.mubr.bf16.mxu1 %v4827_v32  ;;  %v4767_v32 = vcombine.high %v309_v59, %v313_v60 }
  0x9b   :  { %1555 = vmatmul.mubr.bf16.gmra.mrb[60].mxu0 %v4824_v38  ;;  %v4764_v38 = vcombine.low %v308_v57, %v312_v58 }
  0x9c   :  { %1716 = vmatmul.mubr.bf16.gmra.mrb[60].mxu1 %v4826_v39  ;;  %1756 = vmatprep.mubr.bf16.mxu0 %v4709_v40  ;;  %v4766_v39 = vcombine.low %v309_v59, %v313_v60  ;;  %v4773_v40 = vcombine.high %v316_v33, %v320_v35  ;;  %v357_v59 = vld [vmem:[%s8865_s0 + $0x358] sm:$0xff] }
  0x9d   :  { %1917 = vmatprep.mubr.bf16.mxu1 %v4711_v41  ;;  %v4775_v41 = vcombine.high %v317_v36, %v321_v37  ;;  %v361_v60 = vld [vmem:[%s8865_s0 + $0x378] sm:$0xff] }
  0xa3   :  { %1757 = vmatmul.mubr.bf16.vlgmr.msra.gmra.mrb[64].mxu0 %v4708_v44  ;;  %v4772_v44 = vcombine.low %v316_v33, %v320_v35 }
  0xa4   :  { %1918 = vmatmul.mubr.bf16.vlgmr.msra.gmra.mrb[64].mxu1 %v4710_v45  ;;  %1764 = vmatprep.mubr.bf16.mxu0 %v4717_v46  ;;  %v4774_v45 = vcombine.low %v317_v36, %v321_v37  ;;  %v4781_v46 = vcombine.high %v324_v42, %v328_v43 }
  0xa5   :  { %1925 = vmatprep.mubr.bf16.mxu1 %v4719_v47  ;;  %5539 = vmatpush3.bf16.msra.mxu0 %v6505_v2  ;;  %v276_v2 = vld [vmem:[%s8865_s0 + $0xd0] sm:$0xff]  ;;  %v4783_v47 = vcombine.high %v325_v0, %v329_v1 }
  0xa6   :  { %5540 = vmatprep.subr.bf16.mxu0 %v6517_v4  ;;  %5651 = vmatpush3.bf16.msra.mxu1 %v6511_v3  ;;  %v280_v3 = vld [vmem:[%s8865_s0 + $0xf0] sm:$0xff]  ;;  %v277_v4 = vld [vmem:[%s8865_s0 + $0xd8] sm:$0xff] }
  0xa7   :  { %5652 = vmatprep.subr.bf16.mxu1 %v6523_v5  ;;  %v281_v5 = vld [vmem:[%s8865_s0 + $0xf8] sm:$0xff] }
  0xa9   :  { %5541 = vmatpush3.bf16.msra.mxu0 %v6529_v6  ;;  %v4724_v6 = vcombine.low %v268_v48, %v272_v49  ;;  %v332_v48 = vld [vmem:[%s8865_s0 + $0x290] sm:$0xff] }
  0xaa   :  { %5542 = vmatprep.subr.bf16.mxu0 %v6541_v8  ;;  %5653 = vmatpush3.bf16.msra.mxu1 %v6535_v7  ;;  %v4726_v7 = vcombine.low %v269_v50, %v273_v51  ;;  %v4733_v8 = vcombine.high %v276_v2, %v280_v3  ;;  %v336_v49 = vld [vmem:[%s8865_s0 + $0x2b0] sm:$0xff]  ;;  %v333_v50 = vld [vmem:[%s8865_s0 + $0x298] sm:$0xff] }
  0xab   :  { %1765 = vmatmul.mubr.bf16.gmra.mrb[68].mxu0 %v4716_v52  ;;  %5654 = vmatprep.subr.bf16.mxu1 %v6547_v9  ;;  %v4735_v9 = vcombine.high %v277_v4, %v281_v5  ;;  %v337_v51 = vld [vmem:[%s8865_s0 + $0x2b8] sm:$0xff]  ;;  %v4780_v52 = vcombine.low %v324_v42, %v328_v43 }
  0xac   :  { %1926 = vmatmul.mubr.bf16.gmra.mrb[68].mxu1 %v4718_v53  ;;  %1772 = vmatprep.mubr.bf16.mxu0 %v4725_v55  ;;  %v4782_v53 = vcombine.low %v325_v0, %v329_v1  ;;  %v4789_v55 = vcombine.high %v332_v48, %v336_v49 }
  0xad   :  { %1933 = vmatprep.mubr.bf16.mxu1 %v4727_v56  ;;  %5543 = vmatpush3.bf16.msra.mxu0 %v6553_v10  ;;  %v284_v10 = vld [vmem:[%s8865_s0 + $0x110] sm:$0xff]  ;;  %v4791_v56 = vcombine.high %v333_v50, %v337_v51 }
  0xae   :  { %5655 = vmatpush3.bf16.msra.mxu1 %v6559_v11  ;;  %5544 = vmatprep.subr.bf16.mxu0 %v6565_v12  ;;  %v288_v11 = vld [vmem:[%s8865_s0 + $0x130] sm:$0xff]  ;;  %v285_v12 = vld [vmem:[%s8865_s0 + $0x118] sm:$0xff] }
  0xaf   :  { %5656 = vmatprep.subr.bf16.mxu1 %v6571_v13  ;;  %v289_v13 = vld [vmem:[%s8865_s0 + $0x138] sm:$0xff] }
  0xb1   :  { %5545 = vmatpush3.bf16.msra.mxu0 %v6577_v14  ;;  %v4732_v14 = vcombine.low %v276_v2, %v280_v3  ;;  %v7146_v2 = vld [vmem:[%s8865_s0 + $0x2d0] sm:$0xff] }
  0xb2   :  { %5657 = vmatpush3.bf16.msra.mxu1 %v6583_v15  ;;  %5546 = vmatprep.subr.bf16.mxu0 %v6589_v16  ;;  %v4734_v15 = vcombine.low %v277_v4, %v281_v5  ;;  %v4741_v16 = vcombine.high %v284_v10, %v288_v11  ;;  %v7151_v3 = vld [vmem:[%s8865_s0 + $0x2f0] sm:$0xff]  ;;  %v7156_v4 = vld [vmem:[%s8865_s0 + $0x2d8] sm:$0xff] }
  0xb3   :  { %1773 = vmatmul.mubr.bf16.gmra.mrb[72].mxu0 %v4724_v6  ;;  %5658 = vmatprep.subr.bf16.mxu1 %v6595_v17  ;;  %v4743_v17 = vcombine.high %v285_v12, %v289_v13  ;;  %v7161_v5 = vld [vmem:[%s8865_s0 + $0x2f8] sm:$0xff]  ;;  %v4788_v6 = vcombine.low %v332_v48, %v336_v49 }
  0xb4   :  { %1934 = vmatmul.mubr.bf16.gmra.mrb[72].mxu1 %v4726_v7  ;;  %1780 = vmatprep.mubr.bf16.mxu0 %v4733_v8  ;;  %v4790_v7 = vcombine.low %v333_v50, %v337_v51  ;;  %v4797_v8 = vcombine.high %v7146_v2, %v7151_v3  ;;  %v365_v48 = vld [vmem:[%s8865_s0 + $0x398] sm:$0xff] }
  0xb5   :  { %1941 = vmatprep.mubr.bf16.mxu1 %v4735_v9  ;;  %5547 = vmatpush3.bf16.msra.mxu0 %v6601_v18  ;;  %v292_v18 = vld [vmem:[%s8865_s0 + $0x150] sm:$0xff]  ;;  %v4799_v9 = vcombine.high %v7156_v4, %v7161_v5  ;;  %v369_v49 = vld [vmem:[%s8865_s0 + $0x3b8] sm:$0xff] }
  0xb6   :  { %5659 = vmatpush3.bf16.msra.mxu1 %v6607_v19  ;;  %5548 = vmatprep.subr.bf16.mxu0 %v6613_v20  ;;  %v296_v19 = vld [vmem:[%s8865_s0 + $0x170] sm:$0xff]  ;;  %v293_v20 = vld [vmem:[%s8865_s0 + $0x158] sm:$0xff] }
  0xb7   :  { %5660 = vmatprep.subr.bf16.mxu1 %v6619_v21  ;;  %v297_v21 = vld [vmem:[%s8865_s0 + $0x178] sm:$0xff] }
  0xb9   :  { %5549 = vmatpush3.bf16.msra.mxu0 %v6625_v22  ;;  %v4740_v22 = vcombine.low %v284_v10, %v288_v11  ;;  %v7170_v10 = vld [vmem:[%s8865_s0 + $0x310] sm:$0xff] }
  0xba   :  { %5661 = vmatpush3.bf16.msra.mxu1 %v6631_v23  ;;  %5550 = vmatprep.subr.bf16.mxu0 %v6637_v24  ;;  %v4742_v23 = vcombine.low %v285_v12, %v289_v13  ;;  %v4749_v24 = vcombine.high %v292_v18, %v296_v19  ;;  %v7175_v11 = vld [vmem:[%s8865_s0 + $0x330] sm:$0xff]  ;;  %v7182_v13 = vld [vmem:[%s8865_s0 + $0x318] sm:$0xff] }
  0xbb   :  { %1781 = vmatmul.mubr.bf16.gmra.mrb[76].mxu0 %v4732_v14  ;;  %5662 = vmatprep.subr.bf16.mxu1 %v6643_v25  ;;  %v4751_v25 = vcombine.high %v293_v20, %v297_v21  ;;  %v7187_v14 = vld [vmem:[%s8865_s0 + $0x338] sm:$0xff] }
  0xbc   :  { %1942 = vmatmul.mubr.bf16.gmra.mrb[76].mxu1 %v4734_v15  ;;  %1788 = vmatprep.mubr.bf16.mxu0 %v4741_v16  ;;  %v4806_v36 = vcombine.low %v7182_v13, %v7187_v14 }
  0xbd   :  { %1949 = vmatprep.mubr.bf16.mxu1 %v4743_v17  ;;  %5551 = vmatpush3.bf16.msra.mxu0 %v6649_v26  ;;  %v300_v26 = vld [vmem:[%s8865_s0 + $0x190] sm:$0xff]  ;;  %v4796_v17 = vcombine.low %v7146_v2, %v7151_v3  ;;  %v4814_v2 = vcombine.low %v357_v59, %v361_v60 }
  0xbe   :  { %5663 = vmatpush3.bf16.msra.mxu1 %v6655_v27  ;;  %5552 = vmatprep.subr.bf16.mxu0 %v6661_v28  ;;  %v304_v27 = vld [vmem:[%s8865_s0 + $0x1b0] sm:$0xff]  ;;  %v301_v28 = vld [vmem:[%s8865_s0 + $0x198] sm:$0xff] }
  0xbf   :  { %5664 = vmatprep.subr.bf16.mxu1 %v6667_v29  ;;  %v305_v29 = vld [vmem:[%s8865_s0 + $0x1b8] sm:$0xff]  ;;  %v4756_v61 = vcombine.low %v300_v26, %v304_v27 }
  0xc0   :  { %v4758_v62 = vcombine.low %v301_v28, %v305_v29 }
  0xc1   :  { %5553 = vmatpush3.bf16.msra.mxu0 %v6673_v30  ;;  %v4748_v30 = vcombine.low %v292_v18, %v296_v19  ;;  %v6457_v18 = vmov 0.0  }
  0xc2   :  { %5665 = vmatpush3.bf16.msra.mxu1 %v6679_v31  ;;  %5762 = vmatprep.subr.bf16.mxu0 %v6722_v54  ;;  %v4750_v31 = vcombine.low %v293_v20, %v297_v21  ;;  %v4757_v54 = vcombine.high %v300_v26, %v304_v27  ;;  %26 = vst.msk [vmem:[#allocation2] sm:$0xff] %vm25_vm0, %v6457_v18  ;;  %27 = vst.msk [vmem:[#allocation2 + $0x8] sm:$0xff] %vm25_vm0, %v6457_v18 }
  0xc3   :  { %1789 = vmatmul.mubr.bf16.gmra.mrb[80].mxu0 %v4740_v22  ;;  %5874 = vmatprep.subr.bf16.mxu1 %v6749_v34  ;;  %v4759_v34 = vcombine.high %v301_v28, %v305_v29  ;;  %28 = vst.msk [vmem:[#allocation2 + $0x10] sm:$0xff] %vm25_vm0, %v6457_v18  ;;  %29 = vst.msk [vmem:[#allocation2 + $0x18] sm:$0xff] %vm25_vm0, %v6457_v18  ;;  %v4798_v22 = vcombine.low %v7156_v4, %v7161_v5 }
  0xc4   :  { %1950 = vmatmul.mubr.bf16.gmra.mrb[80].mxu1 %v4742_v23  ;;  %1796 = vmatprep.mubr.bf16.mxu0 %v4749_v24  ;;  %30 = vst.msk [vmem:[#allocation2 + $0x20] sm:$0xff] %vm25_vm0, %v6457_v18  ;;  %31 = vst.msk [vmem:[#allocation2 + $0x28] sm:$0xff] %vm25_vm0, %v6457_v18  ;;  %v4805_v23 = vcombine.high %v7170_v10, %v7175_v11  ;;  %v4807_v27 = vcombine.high %v7182_v13, %v7187_v14  ;;  %v376_v13 = vld [vmem:[%s8865_s0 + $0x3f0] sm:$0xff] }
  0xc5   :  { %1957 = vmatprep.mubr.bf16.mxu1 %v4751_v25  ;;  %32 = vst.msk [vmem:[#allocation2 + $0x30] sm:$0xff] %vm25_vm0, %v6457_v18  ;;  %33 = vst.msk [vmem:[#allocation2 + $0x38] sm:$0xff] %vm25_vm0, %v6457_v18 }
  0xc6   :  { %34 = vst.msk [vmem:[#allocation2 + $0x40] sm:$0xff] %vm25_vm0, %v6457_v18  ;;  %35 = vst.msk [vmem:[#allocation2 + $0x48] sm:$0xff] %vm25_vm0, %v6457_v18 }
  0xc7   :  { %36 = vst.msk [vmem:[#allocation2 + $0x50] sm:$0xff] %vm25_vm0, %v6457_v18  ;;  %37 = vst.msk [vmem:[#allocation2 + $0x58] sm:$0xff] %vm25_vm0, %v6457_v18 }
  0xc8   :  { %38 = vst.msk [vmem:[#allocation2 + $0x60] sm:$0xff] %vm25_vm0, %v6457_v18  ;;  %39 = vst.msk [vmem:[#allocation2 + $0x68] sm:$0xff] %vm25_vm0, %v6457_v18 }
  0xc9   :  { %40 = vst.msk [vmem:[#allocation2 + $0x70] sm:$0xff] %vm25_vm0, %v6457_v18  ;;  %41 = vst.msk [vmem:[#allocation2 + $0x78] sm:$0xff] %vm25_vm0, %v6457_v18 }
  0xca   :  { %42 = vst.msk [vmem:[#allocation2 + $0x80] sm:$0xff] %vm25_vm0, %v6457_v18  ;;  %43 = vst.msk [vmem:[#allocation2 + $0x88] sm:$0xff] %vm25_vm0, %v6457_v18 }
  0xcb   :  { %1797 = vmatmul.mubr.bf16.gmra.mrb[84].mxu0 %v4748_v30  ;;  %44 = vst.msk [vmem:[#allocation2 + $0x90] sm:$0xff] %vm25_vm0, %v6457_v18  ;;  %45 = vst.msk [vmem:[#allocation2 + $0x98] sm:$0xff] %vm25_vm0, %v6457_v18 }
  0xcc   :  { %1958 = vmatmul.mubr.bf16.gmra.mrb[84].mxu1 %v4750_v31  ;;  %1804 = vmatprep.mubr.bf16.mxu0 %v4757_v54  ;;  %46 = vst.msk [vmem:[#allocation2 + $0xa0] sm:$0xff] %vm25_vm0, %v6457_v18  ;;  %47 = vst.msk [vmem:[#allocation2 + $0xa8] sm:$0xff] %vm25_vm0, %v6457_v18  ;;  %v356_v54 = vld [vmem:[%s8865_s0 + $0x350] sm:$0xff] }
  0xcd   :  { %1965 = vmatprep.mubr.bf16.mxu1 %v4759_v34  ;;  %48 = vst.msk [vmem:[#allocation2 + $0xb0] sm:$0xff] %vm25_vm0, %v6457_v18  ;;  %49 = vst.msk [vmem:[#allocation2 + $0xb8] sm:$0xff] %vm25_vm0, %v6457_v18  ;;  %v360_v34 = vld [vmem:[%s8865_s0 + $0x370] sm:$0xff] }
  0xce   :  { %50 = vst.msk [vmem:[#allocation2 + $0xc0] sm:$0xff] %vm25_vm0, %v6457_v18  ;;  %51 = vst.msk [vmem:[#allocation2 + $0xc8] sm:$0xff] %vm25_vm0, %v6457_v18  ;;  %v4813_v37 = vcombine.high %v356_v54, %v360_v34 }
  0xcf   :  { %52 = vst.msk [vmem:[#allocation2 + $0xd0] sm:$0xff] %vm25_vm0, %v6457_v18  ;;  %53 = vst.msk [vmem:[#allocation2 + $0xd8] sm:$0xff] %vm25_vm0, %v6457_v18 }
  0xd0   :  { %54 = vst.msk [vmem:[#allocation2 + $0xe0] sm:$0xff] %vm25_vm0, %v6457_v18  ;;  %55 = vst.msk [vmem:[#allocation2 + $0xe8] sm:$0xff] %vm25_vm0, %v6457_v18 }
  0xd1   :  { %56 = vst.msk [vmem:[#allocation2 + $0xf0] sm:$0xff] %vm25_vm0, %v6457_v18  ;;  %57 = vst.msk [vmem:[#allocation2 + $0xf8] sm:$0xff] %vm25_vm0, %v6457_v18 }
  0xd2   :  { %58 = vst.msk [vmem:[#allocation3] sm:$0xff] %vm25_vm0, %v6457_v18  ;;  %59 = vst.msk [vmem:[#allocation3 + $0x8] sm:$0xff] %vm25_vm0, %v6457_v18 }
  0xd3   :  { %1805 = vmatmul.mubr.bf16.gmra.mrb[88].mxu0 %v4756_v61  ;;  %60 = vst.msk [vmem:[#allocation3 + $0x10] sm:$0xff] %vm25_vm0, %v6457_v18  ;;  %61 = vst.msk [vmem:[#allocation3 + $0x18] sm:$0xff] %vm25_vm0, %v6457_v18 }
  0xd4   :  { %1966 = vmatmul.mubr.bf16.gmra.mrb[88].mxu1 %v4758_v62  ;;  %1812 = vmatprep.mubr.bf16.mxu0 %v4765_v63  ;;  %62 = vst.msk [vmem:[#allocation3 + $0x20] sm:$0xff] %vm25_vm0, %v6457_v18  ;;  %63 = vst.msk [vmem:[#allocation3 + $0x28] sm:$0xff] %vm25_vm0, %v6457_v18  ;;  %v4804_v63 = vcombine.low %v7170_v10, %v7175_v11 }
  0xd5   :  { %1973 = vmatprep.mubr.bf16.mxu1 %v4767_v32  ;;  %64 = vst.msk [vmem:[#allocation3 + $0x30] sm:$0xff] %vm25_vm0, %v6457_v18  ;;  %65 = vst.msk [vmem:[#allocation3 + $0x38] sm:$0xff] %vm25_vm0, %v6457_v18 }
  0xd6   :  { %66 = vst.msk [vmem:[#allocation3 + $0x40] sm:$0xff] %vm25_vm0, %v6457_v18  ;;  %67 = vst.msk [vmem:[#allocation3 + $0x48] sm:$0xff] %vm25_vm0, %v6457_v18 }
  0xd7   :  { %68 = vst.msk [vmem:[#allocation3 + $0x50] sm:$0xff] %vm25_vm0, %v6457_v18  ;;  %69 = vst.msk [vmem:[#allocation3 + $0x58] sm:$0xff] %vm25_vm0, %v6457_v18 }
  0xd8   :  { %70 = vst.msk [vmem:[#allocation3 + $0x60] sm:$0xff] %vm25_vm0, %v6457_v18  ;;  %71 = vst.msk [vmem:[#allocation3 + $0x68] sm:$0xff] %vm25_vm0, %v6457_v18 }
  0xd9   :  { %72 = vst.msk [vmem:[#allocation3 + $0x70] sm:$0xff] %vm25_vm0, %v6457_v18  ;;  %73 = vst.msk [vmem:[#allocation3 + $0x78] sm:$0xff] %vm25_vm0, %v6457_v18 }
  0xda   :  { %74 = vst.msk [vmem:[#allocation3 + $0x80] sm:$0xff] %vm25_vm0, %v6457_v18  ;;  %75 = vst.msk [vmem:[#allocation3 + $0x88] sm:$0xff] %vm25_vm0, %v6457_v18 }
  0xdb   :  { %1813 = vmatmul.mubr.bf16.gmra.mrb[92].mxu0 %v4764_v38  ;;  %76 = vst.msk [vmem:[#allocation3 + $0x90] sm:$0xff] %vm25_vm0, %v6457_v18  ;;  %77 = vst.msk [vmem:[#allocation3 + $0x98] sm:$0xff] %vm25_vm0, %v6457_v18 }
  0xdc   :  { %1974 = vmatmul.mubr.bf16.gmra.mrb[92].mxu1 %v4766_v39  ;;  %1820 = vmatprep.mubr.bf16.mxu0 %v4773_v40  ;;  %78 = vst.msk [vmem:[#allocation3 + $0xa0] sm:$0xff] %vm25_vm0, %v6457_v18  ;;  %79 = vst.msk [vmem:[#allocation3 + $0xa8] sm:$0xff] %vm25_vm0, %v6457_v18 }
  0xdd   :  { %1981 = vmatprep.mubr.bf16.mxu1 %v4775_v41  ;;  %80 = vst.msk [vmem:[#allocation3 + $0xb0] sm:$0xff] %vm25_vm0, %v6457_v18  ;;  %81 = vst.msk [vmem:[#allocation3 + $0xb8] sm:$0xff] %vm25_vm0, %v6457_v18  ;;  %v4815_v41 = vcombine.high %v357_v59, %v361_v60  ;;  %v2143_v60 = vld [vmem:[%s8866_s1] sm:$0xff] }
  0xde   :  { %82 = vst.msk [vmem:[#allocation3 + $0xc0] sm:$0xff] %vm25_vm0, %v6457_v18  ;;  %83 = vst.msk [vmem:[#allocation3 + $0xc8] sm:$0xff] %vm25_vm0, %v6457_v18 }
  0xdf   :  { %84 = vst.msk [vmem:[#allocation3 + $0xd0] sm:$0xff] %vm25_vm0, %v6457_v18  ;;  %85 = vst.msk [vmem:[#allocation3 + $0xd8] sm:$0xff] %vm25_vm0, %v6457_v18 }
  0xe0   :  { %86 = vst.msk [vmem:[#allocation3 + $0xe0] sm:$0xff] %vm25_vm0, %v6457_v18  ;;  %87 = vst.msk [vmem:[#allocation3 + $0xe8] sm:$0xff] %vm25_vm0, %v6457_v18 }
  0xe1   :  { %88 = vst.msk [vmem:[#allocation3 + $0xf0] sm:$0xff] %vm25_vm0, %v6457_v18  ;;  %89 = vst.msk [vmem:[#allocation3 + $0xf8] sm:$0xff] %vm25_vm0, %v6457_v18 }
  0xe3   :  { %1821 = vmatmul.mubr.bf16.gmra.mrb[96].mxu0 %v4772_v44  ;;  %v364_v44 = vld [vmem:[%s8865_s0 + $0x390] sm:$0xff] }
  0xe4   :  { %1982 = vmatmul.mubr.bf16.gmra.mrb[96].mxu1 %v4774_v45  ;;  %1828 = vmatprep.mubr.bf16.mxu0 %v4781_v46  ;;  %v368_v45 = vld [vmem:[%s8865_s0 + $0x3b0] sm:$0xff] }
  0xe5   :  { %1989 = vmatprep.mubr.bf16.mxu1 %v4783_v47  ;;  %v4821_v3 = vcombine.high %v364_v44, %v368_v45 }
  0xeb   :  { %1829 = vmatmul.mubr.bf16.gmra.mrb[100].mxu0 %v4780_v52  ;;  %v4812_v52 = vcombine.low %v356_v54, %v360_v34 }
  0xec   :  { %1990 = vmatmul.mubr.bf16.gmra.mrb[100].mxu1 %v4782_v53  ;;  %1836 = vmatprep.mubr.bf16.mxu0 %v4789_v55 }
  0xed   :  { %1997 = vmatprep.mubr.bf16.mxu1 %v4791_v56 }
  0xf3   :  { %1837 = vmatmul.mubr.bf16.gmra.mrb[104].mxu0 %v4788_v6 }
  0xf4   :  { %1998 = vmatmul.mubr.bf16.gmra.mrb[104].mxu1 %v4790_v7  ;;  %1844 = vmatprep.mubr.bf16.mxu0 %v4797_v8  ;;  %v4823_v7 = vcombine.high %v365_v48, %v369_v49 }
  0xf5   :  { %2005 = vmatprep.mubr.bf16.mxu1 %v4799_v9 }
  0xf6   :  { %v7177_v12 = vpop.f32.mrb[0].mxu0 }
  0xf7   :  { %v7189_v15 = vpop.f32.mrb[0].mxu1  ;;  %v7191_v16 = vpop.f32.mrb[1].mxu0 }
  0xf8   :  { %v5108_v19 = vadd.f32 %v7191_v16, %v7177_v12  ;;  %v5219_v20 = vpop.f32.mrb[1].mxu1  ;;  %v5109_v21 = vpop.f32.mrb[2].mxu0  ;;  %v372_v12 = vld [vmem:[%s8865_s0 + $0x3d0] sm:$0xff]  ;;  %v373_v16 = vld [vmem:[%s8865_s0 + $0x3d8] sm:$0xff] }
  0xf9   :  { %v5220_v24 = vadd.f32 %v5219_v20, %v7189_v15  ;;  %v5221_v25 = vpop.f32.mrb[2].mxu1  ;;  %v5110_v26 = vpop.f32.mrb[3].mxu0 }
  0xfa   :  { %v5111_v28 = vadd.f32 %v5110_v26, %v5109_v21  ;;  %v5222_v29 = vpop.f32.mrb[3].mxu1  ;;  %v4820_v21 = vcombine.low %v364_v44, %v368_v45  ;;  %v4829_v26 = vcombine.high %v372_v12, %v376_v13 }
  0xfb   :  { %v5223_v30 = vadd.f32 %v5222_v29, %v5221_v25  ;;  %1845 = vmatmul.mubr.bf16.gmra.mrb[108].mxu0 %v4796_v17  ;;  %v7335_v31 = vadd.f32 %v5220_v24, %v5108_v19  ;;  %v377_v17 = vld [vmem:[%s8865_s0 + $0x3f8] sm:$0xff]  ;;  %v4822_v25 = vcombine.low %v365_v48, %v369_v49 }
  0xfc   :  { %2006 = vmatmul.mubr.bf16.gmra.mrb[108].mxu1 %v4798_v22  ;;  %1852 = vmatprep.mubr.bf16.mxu0 %v4805_v23 }
  0xfd   :  { %2013 = vmatprep.mubr.bf16.mxu1 %v4807_v27  ;;  %v7343_v57 = vadd.f32 %v5223_v30, %v5111_v28  ;;  %v4831_v30 = vcombine.high %v373_v16, %v377_v17 }
  0xfe   :  { %v5112_v58 = vpop.f32.mrb[4].mxu0 }
  0xff   :  { %v5224_v61 = vpop.f32.mrb[4].mxu1  ;;  %v5113_v62 = vpop.f32.mrb[5].mxu0 }
 0x100   :  { %v5114_v32 = vadd.f32 %v5113_v62, %v5112_v58  ;;  %v5225_v33 = vpop.f32.mrb[5].mxu1  ;;  %v5115_v35 = vpop.f32.mrb[6].mxu0 }
 0x101   :  { %v5226_v38 = vadd.f32 %v5225_v33, %v5224_v61  ;;  %v5227_v39 = vpop.f32.mrb[6].mxu1  ;;  %v5116_v40 = vpop.f32.mrb[7].mxu0  ;;  %v2147_v61 = vld [vmem:[%s8866_s1 + $0x20] sm:$0xff]  ;;  %v2148_v33 = vld [vmem:[%s8866_s1 + $0x28] sm:$0xff] }
 0x102   :  { %v5117_v42 = vadd.f32 %v5116_v40, %v5115_v35  ;;  %v5228_v43 = vpop.f32.mrb[7].mxu1 }
 0x103   :  { %v5229_v0 = vadd.f32 %v5228_v43, %v5227_v39  ;;  %1853 = vmatmul.mubr.bf16.gmra.mrb[112].mxu0 %v4804_v63  ;;  %v7355_v1 = vadd.f32 %v5226_v38, %v5114_v32  ;;  %v2144_v32 = vld [vmem:[%s8866_s1 + $0x8] sm:$0xff] }
 0x104   :  { %2014 = vmatmul.mubr.bf16.gmra.mrb[112].mxu1 %v4806_v36  ;;  %1860 = vmatprep.mubr.bf16.mxu0 %v4813_v37  ;;  %v4828_v37 = vcombine.low %v372_v12, %v376_v13  ;;  %v4899_v45 = vcombine.high %v2144_v32, %v2148_v33 }
 0x105   :  { %2021 = vmatprep.mubr.bf16.mxu1 %v4815_v41  ;;  %v7363_v46 = vadd.f32 %v5229_v0, %v5117_v42  ;;  %v4830_v41 = vcombine.low %v373_v16, %v377_v17  ;;  %v4897_v42 = vcombine.high %v2143_v60, %v2147_v61 }
 0x106   :  { %v5118_v47 = vpop.f32.mrb[8].mxu0 }
 0x107   :  { %v5230_v50 = vpop.f32.mrb[8].mxu1  ;;  %v5119_v51 = vpop.f32.mrb[9].mxu0 }
 0x108   :  { %v5120_v53 = vadd.f32 %v5119_v51, %v5118_v47  ;;  %v5231_v55 = vpop.f32.mrb[9].mxu1  ;;  %v5121_v56 = vpop.f32.mrb[10].mxu0  ;;  %v2151_v51 = vld [vmem:[%s8866_s1 + $0x40] sm:$0xff] }
 0x109   :  { %v5232_v4 = vadd.f32 %v5231_v55, %v5230_v50  ;;  %v5233_v5 = vpop.f32.mrb[10].mxu1  ;;  %v5122_v6 = vpop.f32.mrb[11].mxu0 }
 0x10a   :  { %v5123_v8 = vadd.f32 %v5122_v6, %v5121_v56  ;;  %v5234_v9 = vpop.f32.mrb[11].mxu1  ;;  %v2152_v56 = vld [vmem:[%s8866_s1 + $0x48] sm:$0xff] }
 0x10b   :  { %v5235_v10 = vadd.f32 %v5234_v9, %v5233_v5  ;;  %1861 = vmatmul.mubr.bf16.gmra.mrb[116].mxu0 %v4812_v52  ;;  %v7371_v11 = vadd.f32 %v5232_v4, %v5120_v53  ;;  %v2155_v52 = vld [vmem:[%s8866_s1 + $0x60] sm:$0xff]  ;;  %v4896_v5 = vcombine.low %v2143_v60, %v2147_v61  ;;  %v4898_v9 = vcombine.low %v2144_v32, %v2148_v33  ;;  %v6429_v60 = vld [vmem:[%s8864_s3 + $0x1c8] sm:$0xff]  }
 0x10c   :  { %2022 = vmatmul.mubr.bf16.gmra.mrb[116].mxu1 %v4814_v2  ;;  %1868 = vmatprep.mubr.bf16.mxu0 %v4821_v3  ;;  %v2156_v2 = vld [vmem:[%s8866_s1 + $0x68] sm:$0xff] }
 0x10d   :  { %2029 = vmatprep.mubr.bf16.mxu1 %v4823_v7  ;;  %v7379_v14 = vadd.f32 %v5235_v10, %v5123_v8  ;;  %v4905_v10 = vcombine.high %v2151_v51, %v2155_v52  ;;  %v4907_v16 = vcombine.high %v2152_v56, %v2156_v2  ;;  %v4906_v33 = vcombine.low %v2152_v56, %v2156_v2  ;;  %v7491_v56 = vld [vmem:[%s8866_s1 + $0xc8] sm:$0xff] }
 0x10e   :  { %v5124_v15 = vpop.f32.mrb[12].mxu0  ;;  %v7496_v2 = vld [vmem:[%s8866_s1 + $0xe8] sm:$0xff] }
 0x10f   :  { %v5236_v19 = vpop.f32.mrb[12].mxu1  ;;  %v5125_v20 = vpop.f32.mrb[13].mxu0 }
 0x110   :  { %v5126_v22 = vadd.f32 %v5125_v20, %v5124_v15  ;;  %v5237_v23 = vpop.f32.mrb[13].mxu1  ;;  %v5127_v24 = vpop.f32.mrb[14].mxu0 }
 0x111   :  { %v5238_v27 = vadd.f32 %v5237_v23, %v5236_v19  ;;  %v5239_v28 = vpop.f32.mrb[14].mxu1  ;;  %v5128_v29 = vpop.f32.mrb[15].mxu0  ;;  %v7429_v23 = vld [vmem:[%s8866_s1 + $0xa0] sm:$0xff] }
 0x112   :  { %v5129_v54 = vadd.f32 %v5128_v29, %v5127_v24  ;;  %v5240_v34 = vpop.f32.mrb[15].mxu1  ;;  %v6426_v24 = vld [vmem:[%s8864_s3 + $0x100] sm:$0xff]   ;;  %v6427_v29 = vld [vmem:[%s8864_s3 + $0x148] sm:$0xff]  }
 0x113   :  { %v5241_v58 = vadd.f32 %v5240_v34, %v5239_v28  ;;  %1869 = vmatmul.mubr.bf16.gmra.mrb[120].mxu0 %v4820_v21  ;;  %v7387_v59 = vadd.f32 %v5238_v27, %v5126_v22  ;;  %v7424_v22 = vld [vmem:[%s8866_s1 + $0x80] sm:$0xff]  ;;  %v7439_v27 = vld [vmem:[%s8866_s1 + $0x88] sm:$0xff] }
 0x114   :  { %2030 = vmatmul.mubr.bf16.gmra.mrb[120].mxu1 %v4822_v25  ;;  %1876 = vmatprep.mubr.bf16.mxu0 %v4829_v26  ;;  %v7444_v28 = vld [vmem:[%s8866_s1 + $0xa8] sm:$0xff] }
 0x115   :  { %2037 = vmatprep.mubr.bf16.mxu1 %v4831_v30  ;;  %v7395_v62 = vadd.f32 %v5241_v58, %v5129_v54  ;;  %v6428_v30 = vld [vmem:[%s8864_s3 + $0x180] sm:$0xff]   ;;  %v4904_v58 = vcombine.low %v2151_v51, %v2155_v52  ;;  %v6434_v51 = vld [vmem:[%s8864_s3 + $0x110] sm:$0xff]  }
 0x116   :  { %v5130_v63 = vpop.f32.mrb[16].mxu0 }
 0x117   :  { %v5242_v35 = vpop.f32.mrb[16].mxu1  ;;  %v5131_v36 = vpop.f32.mrb[17].mxu0 }
 0x118   :  { %v5132_v38 = vadd.f32 %v5131_v36, %v5130_v63  ;;  %v5243_v39 = vpop.f32.mrb[17].mxu1  ;;  %v5133_v40 = vpop.f32.mrb[18].mxu0 }
 0x119   :  { %v5244_v43 = vadd.f32 %v5243_v39, %v5242_v35  ;;  %v5245_v0 = vpop.f32.mrb[18].mxu1  ;;  %v5134_v44 = vpop.f32.mrb[19].mxu0  ;;  %v4913_v35 = vcombine.high %v7424_v22, %v7429_v23  ;;  %v4915_v39 = vcombine.high %v7439_v27, %v7444_v28 }
 0x11a   :  { %v5135_v47 = vadd.f32 %v5134_v44, %v5133_v40  ;;  %v5246_v48 = vpop.f32.mrb[19].mxu1  ;;  %v6430_v40 = vld [vmem:[%s8864_s3 + $0x108] sm:$0xff]  }
 0x11b   :  { %v5247_v49 = vadd.f32 %v5246_v48, %v5245_v0  ;;  %1877 = vmatmul.mubr.bf16.gmra.mrb[124].mxu0 %v4828_v37  ;;  %v7403_v50 = vadd.f32 %v5244_v43, %v5132_v38  ;;  %v6431_v43 = vld [vmem:[%s8864_s3 + $0x150] sm:$0xff]   ;;  %v6432_v0 = vld [vmem:[%s8864_s3 + $0x188] sm:$0xff]   ;;  %v7476_v48 = vld [vmem:[%s8866_s1 + $0xc0] sm:$0xff] }
 0x11c   :  { %2038 = vmatmul.mubr.bf16.gmra.mrb[124].mxu1 %v4830_v41  ;;  %2943 = vmatprep.mubr.bf16.mxu0 %v4897_v42 }
 0x11d   :  { %3104 = vmatprep.mubr.bf16.mxu1 %v4899_v45  ;;  %v7411_v53 = vadd.f32 %v5247_v49, %v5135_v47  ;;  %v6433_v45 = vld [vmem:[%s8864_s3 + $0x1d0] sm:$0xff]   ;;  %v7481_v49 = vld [vmem:[%s8866_s1 + $0xe0] sm:$0xff] }
 0x11e   :  { %v5136_v55 = vpop.f32.mrb[20].mxu0 }
 0x11f   :  { %v5248_v3 = vpop.f32.mrb[20].mxu1  ;;  %v5137_v4 = vpop.f32.mrb[21].mxu0 }
 0x120   :  { %v5138_v6 = vadd.f32 %v5137_v4, %v5136_v55  ;;  %v5249_v7 = vpop.f32.mrb[21].mxu1  ;;  %v5139_v8 = vpop.f32.mrb[22].mxu0  ;;  %v6436_v4 = vld [vmem:[%s8864_s3 + $0x158] sm:$0xff]  }
 0x121   :  { %v5250_v12 = vadd.f32 %v5249_v7, %v5248_v3  ;;  %v5251_v13 = vpop.f32.mrb[22].mxu1  ;;  %v5140_v15 = vpop.f32.mrb[23].mxu0  ;;  %v6435_v3 = vld [vmem:[%s8864_s3 + $0x190] sm:$0xff]   ;;  %v4912_v7 = vcombine.low %v7424_v22, %v7429_v23  ;;  %v6438_v22 = vld [vmem:[%s8864_s3 + $0x118] sm:$0xff]  }
 0x122   :  { %v5141_v17 = vadd.f32 %v5140_v15, %v5139_v8  ;;  %v5252_v19 = vpop.f32.mrb[23].mxu1  ;;  %v6437_v8 = vld [vmem:[%s8864_s3 + $0x1d8] sm:$0xff]   ;;  %v4921_v15 = vcombine.high %v7476_v48, %v7481_v49 }
 0x123   :  { %v5253_v20 = vadd.f32 %v5252_v19, %v5251_v13  ;;  %2944 = vmatmul.mubr.bf16.vlgmr.msra.gmra.mrb[128].mxu0 %v4896_v5  ;;  %v7419_v21 = vadd.f32 %v5250_v12, %v5138_v6  ;;  %v4914_v13 = vcombine.low %v7439_v27, %v7444_v28  ;;  %v6440_v27 = vld [vmem:[%s8864_s3 + $0x160] sm:$0xff]  }
 0x124   :  { %3105 = vmatmul.mubr.bf16.vlgmr.msra.gmra.mrb[128].mxu1 %v4898_v9  ;;  %2951 = vmatprep.mubr.bf16.mxu0 %v4905_v10 }
 0x125   :  { %3112 = vmatprep.mubr.bf16.mxu1 %v4907_v16  ;;  %5763 = vmatpush3.bf16.msra.mxu0 %v6426_v24  ;;  %v7434_v25 = vadd.f32 %v5253_v20, %v5141_v17  ;;  %v4923_v20 = vcombine.high %v7491_v56, %v7496_v2 }
 0x126   :  { %v5142_v26 = vpop.f32.mrb[24].mxu0  ;;  %5764 = vmatprep.subr.bf16.mxu0 %v6427_v29  ;;  %5875 = vmatpush3.bf16.msra.mxu1 %v6428_v30  ;;  %v6441_v29 = vld [vmem:[%s8864_s3 + $0x1e0] sm:$0xff]  }
 0x127   :  { %v5254_v54 = vpop.f32.mrb[24].mxu1  ;;  %v5143_v34 = vpop.f32.mrb[25].mxu0  ;;  %5876 = vmatprep.subr.bf16.mxu1 %v6429_v60 }
 0x128   :  { %v5144_v61 = vadd.f32 %v5143_v34, %v5142_v26  ;;  %v5255_v63 = vpop.f32.mrb[25].mxu1  ;;  %v5145_v32 = vpop.f32.mrb[26].mxu0  ;;  %v6439_v26 = vld [vmem:[%s8864_s3 + $0x198] sm:$0xff]   ;;  %v7537_v34 = vld [vmem:[%s8866_s1 + $0x120] sm:$0xff] }
 0x129   :  { %v5256_v36 = vadd.f32 %v5255_v63, %v5254_v54  ;;  %v5257_v37 = vpop.f32.mrb[26].mxu1  ;;  %v5146_v38 = vpop.f32.mrb[27].mxu0  ;;  %5765 = vmatpush3.bf16.msra.mxu0 %v6430_v40  ;;  %v7532_v54 = vld [vmem:[%s8866_s1 + $0x100] sm:$0xff]  ;;  %v7547_v63 = vld [vmem:[%s8866_s1 + $0x108] sm:$0xff] }
 0x12a   :  { %v5147_v41 = vadd.f32 %v5146_v38, %v5145_v32  ;;  %v5258_v42 = vpop.f32.mrb[27].mxu1  ;;  %5766 = vmatprep.subr.bf16.mxu0 %v6431_v43  ;;  %5877 = vmatpush3.bf16.msra.mxu1 %v6432_v0  ;;  %v7552_v32 = vld [vmem:[%s8866_s1 + $0x128] sm:$0xff]  ;;  %v4920_v38 = vcombine.low %v7476_v48, %v7481_v49  ;;  %v4922_v43 = vcombine.low %v7491_v56, %v7496_v2  ;;  %v6448_v2 = vld [vmem:[%s8864_s3 + $0x170] sm:$0xff]  }
 0x12b   :  { %v5259_v44 = vadd.f32 %v5258_v42, %v5257_v37  ;;  %2952 = vmatmul.mubr.bf16.gmra.mrb[132].mxu0 %v4904_v58  ;;  %5878 = vmatprep.subr.bf16.mxu1 %v6433_v45  ;;  %v7471_v47 = vadd.f32 %v5256_v36, %v5144_v61  ;;  %v6442_v58 = vld [vmem:[%s8864_s3 + $0x120] sm:$0xff]   ;;  %v4929_v0 = vcombine.high %v7532_v54, %v7537_v34  ;;  %v6446_v49 = vld [vmem:[%s8864_s3 + $0x128] sm:$0xff]  }
 0x12c   :  { %3113 = vmatmul.mubr.bf16.gmra.mrb[132].mxu1 %v4906_v33  ;;  %2959 = vmatprep.mubr.bf16.mxu0 %v4913_v35  ;;  %v6443_v33 = vld [vmem:[%s8864_s3 + $0x1a0] sm:$0xff]   ;;  %v6444_v35 = vld [vmem:[%s8864_s3 + $0x168] sm:$0xff]   ;;  %v4931_v48 = vcombine.high %v7547_v63, %v7552_v32 }
 0x12d   :  { %3120 = vmatprep.mubr.bf16.mxu1 %v4915_v39  ;;  %5767 = vmatpush3.bf16.msra.mxu0 %v6434_v51  ;;  %v7486_v52 = vadd.f32 %v5259_v44, %v5147_v41  ;;  %v6445_v39 = vld [vmem:[%s8864_s3 + $0x1e8] sm:$0xff]  }
 0x12e   :  { %v5148_v55 = vpop.f32.mrb[28].mxu0  ;;  %5879 = vmatpush3.bf16.msra.mxu1 %v6435_v3  ;;  %5768 = vmatprep.subr.bf16.mxu0 %v6436_v4  ;;  %v6447_v56 = vld [vmem:[%s8864_s3 + $0x1a8] sm:$0xff]  }
 0x12f   :  { %v5260_v5 = vpop.f32.mrb[28].mxu1  ;;  %v5149_v6 = vpop.f32.mrb[29].mxu0  ;;  %5880 = vmatprep.subr.bf16.mxu1 %v6437_v8  ;;  %v2183_v8 = vld [vmem:[%s8866_s1 + $0x140] sm:$0xff] }
 0x130   :  { %v5150_v9 = vadd.f32 %v5149_v6, %v5148_v55  ;;  %v5261_v10 = vpop.f32.mrb[29].mxu1  ;;  %v5151_v12 = vpop.f32.mrb[30].mxu0  ;;  %v6449_v6 = vld [vmem:[%s8864_s3 + $0x1f0] sm:$0xff]  }
 0x131   :  { %v5262_v16 = vadd.f32 %v5261_v10, %v5260_v5  ;;  %v5263_v17 = vpop.f32.mrb[30].mxu1  ;;  %v5152_v19 = vpop.f32.mrb[31].mxu0  ;;  %5769 = vmatpush3.bf16.msra.mxu0 %v6438_v22  ;;  %v6450_v10 = vld [vmem:[%s8864_s3 + $0x130] sm:$0xff]   ;;  %v4928_v22 = vcombine.low %v7532_v54, %v7537_v34  ;;  %v6454_v54 = vld [vmem:[%s8864_s3 + $0x138] sm:$0xff]  }
 0x132   :  { %v5153_v23 = vadd.f32 %v5152_v19, %v5151_v12  ;;  %v5264_v24 = vpop.f32.mrb[31].mxu1  ;;  %5881 = vmatpush3.bf16.msra.mxu1 %v6439_v26  ;;  %5770 = vmatprep.subr.bf16.mxu0 %v6440_v27 }
 0x133   :  { %v5265_v28 = vadd.f32 %v5264_v24, %v5263_v17  ;;  %2960 = vmatmul.mubr.bf16.gmra.mrb[136].mxu0 %v4912_v7  ;;  %5882 = vmatprep.subr.bf16.mxu1 %v6441_v29  ;;  %v7527_v30 = vadd.f32 %v5262_v16, %v5150_v9  ;;  %v2187_v9 = vld [vmem:[%s8866_s1 + $0x160] sm:$0xff]  ;;  %v6451_v16 = vld [vmem:[%s8864_s3 + $0x1b0] sm:$0xff]   ;;  %v6452_v17 = vld [vmem:[%s8864_s3 + $0x178] sm:$0xff]  }
 0x134   :  { %3121 = vmatmul.mubr.bf16.gmra.mrb[136].mxu1 %v4914_v13  ;;  %2967 = vmatprep.mubr.bf16.mxu0 %v4921_v15  ;;  %v2184_v13 = vld [vmem:[%s8866_s1 + $0x148] sm:$0xff]  ;;  %v4937_v29 = vcombine.high %v2183_v8, %v2187_v9 }
 0x135   :  { %3128 = vmatprep.mubr.bf16.mxu1 %v4923_v20  ;;  %5771 = vmatpush3.bf16.msra.mxu0 %v6442_v58  ;;  %v7542_v60 = vadd.f32 %v5265_v28, %v5153_v23  ;;  %v2188_v15 = vld [vmem:[%s8866_s1 + $0x168] sm:$0xff]  ;;  %v6453_v23 = vld [vmem:[%s8864_s3 + $0x1f8] sm:$0xff]   ;;  %v4930_v28 = vcombine.low %v7547_v63, %v7552_v32 }
 0x136   :  { %v5154_v61 = vpop.f32.mrb[32].mxu0  ;;  %5883 = vmatpush3.bf16.msra.mxu1 %v6443_v33  ;;  %5772 = vmatprep.subr.bf16.mxu0 %v6444_v35  ;;  %v4939_v35 = vcombine.high %v2184_v13, %v2188_v15 }
 0x137   :  { %v5266_v36 = vpop.f32.mrb[32].mxu1  ;;  %v5155_v37 = vpop.f32.mrb[33].mxu0  ;;  %5884 = vmatprep.subr.bf16.mxu1 %v6445_v39  ;;  %v2191_v39 = vld [vmem:[%s8866_s1 + $0x180] sm:$0xff] }
 0x138   :  { %v5156_v40 = vadd.f32 %v5155_v37, %v5154_v61  ;;  %v5267_v41 = vpop.f32.mrb[33].mxu1  ;;  %v5157_v42 = vpop.f32.mrb[34].mxu0  ;;  %v6455_v37 = vld [vmem:[%s8864_s3 + $0x1b8] sm:$0xff]  }
 0x139   :  { %v5268_v44 = vadd.f32 %v5267_v41, %v5266_v36  ;;  %v5269_v45 = vpop.f32.mrb[34].mxu1  ;;  %v5158_v51 = vpop.f32.mrb[35].mxu0  ;;  %5773 = vmatpush3.bf16.msra.mxu0 %v6446_v49 }
 0x13a   :  { %v5159_v55 = vadd.f32 %v5158_v51, %v5157_v42  ;;  %v5270_v3 = vpop.f32.mrb[35].mxu1  ;;  %5885 = vmatpush3.bf16.msra.mxu1 %v6447_v56  ;;  %5774 = vmatprep.subr.bf16.mxu0 %v6448_v2  ;;  %v2192_v42 = vld [vmem:[%s8866_s1 + $0x188] sm:$0xff] }
 0x13b   :  { %v7580_v4 = vadd.f32 %v5268_v44, %v5156_v40  ;;  %v5271_v5 = vadd.f32 %v5270_v3, %v5269_v45  ;;  %2968 = vmatmul.mubr.bf16.gmra.mrb[140].mxu0 %v4920_v38  ;;  %5886 = vmatprep.subr.bf16.mxu1 %v6449_v6  ;;  %v2195_v40 = vld [vmem:[%s8866_s1 + $0x1a0] sm:$0xff]  ;;  %v4936_v45 = vcombine.low %v2183_v8, %v2187_v9 }
 0x13c   :  { %3129 = vmatmul.mubr.bf16.gmra.mrb[140].mxu1 %v4922_v43  ;;  %2975 = vmatprep.mubr.bf16.mxu0 %v4929_v0  ;;  %v2196_v43 = vld [vmem:[%s8866_s1 + $0x1a8] sm:$0xff]  ;;  %v4945_v3 = vcombine.high %v2191_v39, %v2195_v40  ;;  %v2199_v8 = vld [vmem:[%s8866_s1 + $0x1c0] sm:$0xff] }
 0x13d   :  { %v7585_v7 = vadd.f32 %v5271_v5, %v5159_v55  ;;  %3136 = vmatprep.mubr.bf16.mxu1 %v4931_v48  ;;  %5775 = vmatpush3.bf16.msra.mxu0 %v6450_v10  ;;  %v4938_v55 = vcombine.low %v2184_v13, %v2188_v15  ;;  %v4947_v6 = vcombine.high %v2192_v42, %v2196_v43  ;;  %v2203_v9 = vld [vmem:[%s8866_s1 + $0x1e0] sm:$0xff]  ;;  %v2200_v15 = vld [vmem:[%s8866_s1 + $0x1c8] sm:$0xff] }
 0x13e   :  { %v5160_v12 = vpop.f32.mrb[36].mxu0  ;;  %5887 = vmatpush3.bf16.msra.mxu1 %v6451_v16  ;;  %5776 = vmatprep.subr.bf16.mxu0 %v6452_v17 }
 0x13f   :  { %v5272_v19 = vpop.f32.mrb[36].mxu1  ;;  %v5161_v20 = vpop.f32.mrb[37].mxu0  ;;  %5888 = vmatprep.subr.bf16.mxu1 %v6453_v23 }
 0x140   :  { %v5162_v24 = vadd.f32 %v5161_v20, %v5160_v12  ;;  %v5273_v26 = vpop.f32.mrb[37].mxu1  ;;  %v5163_v27 = vpop.f32.mrb[38].mxu0  ;;  %v2204_v20 = vld [vmem:[%s8866_s1 + $0x1e8] sm:$0xff] }
 0x141   :  { %v5274_v58 = vadd.f32 %v5273_v26, %v5272_v19  ;;  %v5275_v61 = vpop.f32.mrb[38].mxu1  ;;  %v5164_v33 = vpop.f32.mrb[39].mxu0  ;;  %5777 = vmatpush3.bf16.msra.mxu0 %v6454_v54  ;;  %v4955_v54 = vcombine.high %v2200_v15, %v2204_v20 }
 0x142   :  { %v5165_v34 = vadd.f32 %v5164_v33, %v5163_v27  ;;  %v5276_v36 = vpop.f32.mrb[39].mxu1  ;;  %5889 = vmatpush3.bf16.msra.mxu1 %v6455_v37 }
 0x143   :  { %v7621_v38 = vadd.f32 %v5274_v58, %v5162_v24  ;;  %v5277_v63 = vadd.f32 %v5276_v36, %v5275_v61  ;;  %2976 = vmatmul.mubr.bf16.gmra.mrb[144].mxu0 %v4928_v22  ;;  %v4944_v24 = vcombine.low %v2191_v39, %v2195_v40  ;;  %v4953_v58 = vcombine.high %v2199_v8, %v2203_v9  ;;  %v2207_v39 = vld [vmem:[%s8866_s1 + $0x200] sm:$0xff] }
 0x144   :  { %3137 = vmatmul.mubr.bf16.gmra.mrb[144].mxu1 %v4930_v28  ;;  %2983 = vmatprep.mubr.bf16.mxu0 %v4937_v29  ;;  %v4946_v29 = vcombine.low %v2192_v42, %v2196_v43  ;;  %v2211_v40 = vld [vmem:[%s8866_s1 + $0x220] sm:$0xff]  ;;  %v2208_v43 = vld [vmem:[%s8866_s1 + $0x208] sm:$0xff] }
 0x145   :  { %v7623_v32 = vadd.f32 %v5277_v63, %v5165_v34  ;;  %3144 = vmatprep.mubr.bf16.mxu1 %v4939_v35 }
 0x146   :  { %v5166_v41 = vpop.f32.mrb[40].mxu0 }
 0x147   :  { %v5278_v0 = vpop.f32.mrb[40].mxu1  ;;  %v5167_v44 = vpop.f32.mrb[41].mxu0 }
 0x148   :  { %v5168_v51 = vadd.f32 %v5167_v44, %v5166_v41  ;;  %v5279_v48 = vpop.f32.mrb[41].mxu1  ;;  %v5169_v49 = vpop.f32.mrb[42].mxu0 }
 0x149   :  { %v5280_v56 = vadd.f32 %v5279_v48, %v5278_v0  ;;  %v5281_v2 = vpop.f32.mrb[42].mxu1  ;;  %v5170_v5 = vpop.f32.mrb[43].mxu0  ;;  %v2212_v0 = vld [vmem:[%s8866_s1 + $0x228] sm:$0xff] }
 0x14a   :  { %v5171_v10 = vadd.f32 %v5170_v5, %v5169_v49  ;;  %v5282_v12 = vpop.f32.mrb[43].mxu1 }
 0x14b   :  { %v7637_v16 = vadd.f32 %v5280_v56, %v5168_v51  ;;  %v5283_v17 = vadd.f32 %v5282_v12, %v5281_v2  ;;  %2984 = vmatmul.mubr.bf16.gmra.mrb[148].mxu0 %v4936_v45  ;;  %v4952_v51 = vcombine.low %v2199_v8, %v2203_v9  ;;  %v4961_v56 = vcombine.high %v2207_v39, %v2211_v40  ;;  %v2215_v8 = vld [vmem:[%s8866_s1 + $0x240] sm:$0xff] }
 0x14c   :  { %3145 = vmatmul.mubr.bf16.gmra.mrb[148].mxu1 %v4938_v55  ;;  %2991 = vmatprep.mubr.bf16.mxu0 %v4945_v3  ;;  %v4954_v3 = vcombine.low %v2200_v15, %v2204_v20  ;;  %v2219_v9 = vld [vmem:[%s8866_s1 + $0x260] sm:$0xff]  ;;  %v2216_v20 = vld [vmem:[%s8866_s1 + $0x248] sm:$0xff] }
 0x14d   :  { %v7639_v19 = vadd.f32 %v5283_v17, %v5171_v10  ;;  %3152 = vmatprep.mubr.bf16.mxu1 %v4947_v6  ;;  %v4963_v10 = vcombine.high %v2208_v43, %v2212_v0 }
 0x14e   :  { %v5172_v13 = vpop.f32.mrb[44].mxu0 }
 0x14f   :  { %v5284_v22 = vpop.f32.mrb[44].mxu1  ;;  %v5173_v23 = vpop.f32.mrb[45].mxu0 }
 0x150   :  { %v5174_v26 = vadd.f32 %v5173_v23, %v5172_v13  ;;  %v5285_v27 = vpop.f32.mrb[45].mxu1  ;;  %v5175_v28 = vpop.f32.mrb[46].mxu0 }
 0x151   :  { %v5286_v61 = vadd.f32 %v5285_v27, %v5284_v22  ;;  %v5287_v33 = vpop.f32.mrb[46].mxu1  ;;  %v5176_v35 = vpop.f32.mrb[47].mxu0 }
 0x152   :  { %v5177_v34 = vadd.f32 %v5176_v35, %v5175_v28  ;;  %v5288_v36 = vpop.f32.mrb[47].mxu1  ;;  %v4960_v28 = vcombine.low %v2207_v39, %v2211_v40  ;;  %v4969_v35 = vcombine.high %v2215_v8, %v2219_v9  ;;  %v2223_v39 = vld [vmem:[%s8866_s1 + $0x280] sm:$0xff] }
 0x153   :  { %v7653_v37 = vadd.f32 %v5286_v61, %v5174_v26  ;;  %v5289_v63 = vadd.f32 %v5288_v36, %v5287_v33  ;;  %2992 = vmatmul.mubr.bf16.gmra.mrb[152].mxu0 %v4944_v24  ;;  %v2220_v24 = vld [vmem:[%s8866_s1 + $0x268] sm:$0xff]  ;;  %v4962_v33 = vcombine.low %v2208_v43, %v2212_v0  ;;  %v2227_v40 = vld [vmem:[%s8866_s1 + $0x2a0] sm:$0xff] }
 0x154   :  { %3153 = vmatmul.mubr.bf16.gmra.mrb[152].mxu1 %v4946_v29  ;;  %2999 = vmatprep.mubr.bf16.mxu0 %v4953_v58  ;;  %v2224_v0 = vld [vmem:[%s8866_s1 + $0x288] sm:$0xff] }
 0x155   :  { %v7655_v41 = vadd.f32 %v5289_v63, %v5177_v34  ;;  %3160 = vmatprep.mubr.bf16.mxu1 %v4955_v54  ;;  %v4971_v63 = vcombine.high %v2216_v20, %v2220_v24 }
 0x156   :  { %v5178_v42 = vpop.f32.mrb[48].mxu0 }
 0x157   :  { %v5290_v44 = vpop.f32.mrb[48].mxu1  ;;  %v5179_v45 = vpop.f32.mrb[49].mxu0 }
 0x158   :  { %v5180_v48 = vadd.f32 %v5179_v45, %v5178_v42  ;;  %v5291_v49 = vpop.f32.mrb[49].mxu1  ;;  %v5181_v55 = vpop.f32.mrb[50].mxu0 }
 0x159   :  { %v5292_v2 = vadd.f32 %v5291_v49, %v5290_v44  ;;  %v5293_v5 = vpop.f32.mrb[50].mxu1  ;;  %v5182_v6 = vpop.f32.mrb[51].mxu0  ;;  %v2228_v49 = vld [vmem:[%s8866_s1 + $0x2a8] sm:$0xff] }
 0x15a   :  { %v5183_v12 = vadd.f32 %v5182_v6, %v5181_v55  ;;  %v5294_v17 = vpop.f32.mrb[51].mxu1 }
 0x15b   :  { %v7669_v13 = vadd.f32 %v5292_v2, %v5180_v48  ;;  %v5295_v22 = vadd.f32 %v5294_v17, %v5293_v5  ;;  %3000 = vmatmul.mubr.bf16.gmra.mrb[156].mxu0 %v4952_v51 }
 0x15c   :  { %3161 = vmatmul.mubr.bf16.gmra.mrb[156].mxu1 %v4954_v3  ;;  %3007 = vmatprep.mubr.bf16.mxu0 %v4961_v56  ;;  %v4968_v56 = vcombine.low %v2215_v8, %v2219_v9  ;;  %v2231_v8 = vld [vmem:[%s8866_s1 + $0x2c0] sm:$0xff] }
 0x15d   :  { %v7671_v23 = vadd.f32 %v5295_v22, %v5183_v12  ;;  %3168 = vmatprep.mubr.bf16.mxu1 %v4963_v10  ;;  %v4970_v10 = vcombine.low %v2216_v20, %v2220_v24  ;;  %v4977_v12 = vcombine.high %v2223_v39, %v2227_v40  ;;  %v2235_v9 = vld [vmem:[%s8866_s1 + $0x2e0] sm:$0xff]  ;;  %v2232_v24 = vld [vmem:[%s8866_s1 + $0x2c8] sm:$0xff] }
 0x15e   :  { %v5184_v15 = vpop.f32.mrb[52].mxu0 }
 0x15f   :  { %v5296_v26 = vpop.f32.mrb[52].mxu1  ;;  %v5185_v27 = vpop.f32.mrb[53].mxu0 }
 0x160   :  { %v5186_v29 = vadd.f32 %v5185_v27, %v5184_v15  ;;  %v5297_v58 = vpop.f32.mrb[53].mxu1  ;;  %v5187_v61 = vpop.f32.mrb[54].mxu0 }
 0x161   :  { %v5298_v54 = vadd.f32 %v5297_v58, %v5296_v26  ;;  %v5299_v34 = vpop.f32.mrb[54].mxu1  ;;  %v5188_v36 = vpop.f32.mrb[55].mxu0  ;;  %v4979_v26 = vcombine.high %v2224_v0, %v2228_v49 }
 0x162   :  { %v5189_v42 = vadd.f32 %v5188_v36, %v5187_v61  ;;  %v5300_v44 = vpop.f32.mrb[55].mxu1 }
 0x163   :  { %v7685_v45 = vadd.f32 %v5298_v54, %v5186_v29  ;;  %v5301_v51 = vadd.f32 %v5300_v44, %v5299_v34  ;;  %3008 = vmatmul.mubr.bf16.gmra.mrb[160].mxu0 %v4960_v28  ;;  %v4976_v34 = vcombine.low %v2223_v39, %v2227_v40  ;;  %v4978_v44 = vcombine.low %v2224_v0, %v2228_v49  ;;  %v2239_v39 = vld [vmem:[%s8866_s1 + $0x300] sm:$0xff]  ;;  %v2240_v49 = vld [vmem:[%s8866_s1 + $0x308] sm:$0xff] }
 0x164   :  { %3169 = vmatmul.mubr.bf16.gmra.mrb[160].mxu1 %v4962_v33  ;;  %3015 = vmatprep.mubr.bf16.mxu0 %v4969_v35  ;;  %v2236_v33 = vld [vmem:[%s8866_s1 + $0x2e8] sm:$0xff]  ;;  %v2243_v40 = vld [vmem:[%s8866_s1 + $0x320] sm:$0xff] }
 0x165   :  { %v7687_v48 = vadd.f32 %v5301_v51, %v5189_v42  ;;  %3176 = vmatprep.mubr.bf16.mxu1 %v4971_v63  ;;  %v4985_v51 = vcombine.high %v2231_v8, %v2235_v9 }
 0x166   :  { %v5190_v43 = vpop.f32.mrb[56].mxu0 }
 0x167   :  { %v5302_v55 = vpop.f32.mrb[56].mxu1  ;;  %v5191_v3 = vpop.f32.mrb[57].mxu0 }
 0x168   :  { %v5192_v2 = vadd.f32 %v5191_v3, %v5190_v43  ;;  %v5303_v5 = vpop.f32.mrb[57].mxu1  ;;  %v5193_v6 = vpop.f32.mrb[58].mxu0 }
 0x169   :  { %v5304_v17 = vadd.f32 %v5303_v5, %v5302_v55  ;;  %v5305_v22 = vpop.f32.mrb[58].mxu1  ;;  %v5194_v15 = vpop.f32.mrb[59].mxu0 }
 0x16a   :  { %v5195_v27 = vadd.f32 %v5194_v15, %v5193_v6  ;;  %v5306_v28 = vpop.f32.mrb[59].mxu1 }
 0x16b   :  { %v7701_v29 = vadd.f32 %v5304_v17, %v5192_v2  ;;  %v5307_v58 = vadd.f32 %v5306_v28, %v5305_v22  ;;  %3016 = vmatmul.mubr.bf16.gmra.mrb[164].mxu0 %v4968_v56  ;;  %v4987_v56 = vcombine.high %v2232_v24, %v2236_v33  ;;  %v2244_v17 = vld [vmem:[%s8866_s1 + $0x328] sm:$0xff] }
 0x16c   :  { %3177 = vmatmul.mubr.bf16.gmra.mrb[164].mxu1 %v4970_v10  ;;  %3023 = vmatprep.mubr.bf16.mxu0 %v4977_v12 }
 0x16d   :  { %v7703_v61 = vadd.f32 %v5307_v58, %v5195_v27  ;;  %3184 = vmatprep.mubr.bf16.mxu1 %v4979_v26  ;;  %v4984_v26 = vcombine.low %v2231_v8, %v2235_v9  ;;  %v219_v8 = vld [vmem:[#allocation2 + $0x8] sm:$0xff]  ;;  %v2247_v9 = vld [vmem:[%s8866_s1 + $0x340] sm:$0xff] }
 0x16e   :  { %v5196_v20 = vpop.f32.mrb[60].mxu0 }
 0x16f   :  { %v5308_v35 = vpop.f32.mrb[60].mxu1  ;;  %v5197_v54 = vpop.f32.mrb[61].mxu0 }
 0x170   :  { %v5198_v36 = vadd.f32 %v5197_v54, %v5196_v20  ;;  %v5309_v63 = vpop.f32.mrb[61].mxu1  ;;  %v5199_v42 = vpop.f32.mrb[62].mxu0  ;;  %v4986_v20 = vcombine.low %v2232_v24, %v2236_v33 }
 0x171   :  { %v5310_v43 = vadd.f32 %v5309_v63, %v5308_v35  ;;  %v5311_v55 = vpop.f32.mrb[62].mxu1  ;;  %v5200_v3 = vpop.f32.mrb[63].mxu0  ;;  %v4993_v35 = vcombine.high %v2239_v39, %v2243_v40  ;;  %v4995_v63 = vcombine.high %v2240_v49, %v2244_v17 }
 0x172   :  { %v5201_v2 = vadd.f32 %v5200_v3, %v5199_v42  ;;  %v5312_v5 = vpop.f32.mrb[63].mxu1 }
 0x173   :  { %v7717_v6 = vadd.f32 %v5310_v43, %v5198_v36  ;;  %v5313_v10 = vadd.f32 %v5312_v5, %v5311_v55  ;;  %3024 = vmatmul.mubr.bf16.gmra.mrb[168].mxu0 %v4976_v34  ;;  %v218_v43 = vld [vmem:[#allocation2] sm:$0xff]  ;;  %v2252_v5 = vld [vmem:[%s8866_s1 + $0x368] sm:$0xff] }
 0x174   :  { %3185 = vmatmul.mubr.bf16.gmra.mrb[168].mxu1 %v4978_v44  ;;  %3031 = vmatprep.mubr.bf16.mxu0 %v4985_v51 }
 0x175   :  { %v7719_v12 = vadd.f32 %v5313_v10, %v5201_v2  ;;  %3192 = vmatprep.mubr.bf16.mxu1 %v4987_v56 }
 0x176   :  { %v5330_v0 = vpop.f32.mrb[64].mxu0 }
 0x177   :  { %v5331_v22 = vpop.f32.mrb[65].mxu0  ;;  %v5442_v15 = vpop.f32.mrb[64].mxu1 }
 0x178   :  { %v5332_v27 = vadd.f32 %v5331_v22, %v5330_v0  ;;  %v5333_v28 = vpop.f32.mrb[66].mxu0  ;;  %v5443_v58 = vpop.f32.mrb[65].mxu1  ;;  %v4992_v22 = vcombine.low %v2239_v39, %v2243_v40 }
 0x179   :  { %v5334_v54 = vpop.f32.mrb[67].mxu0  ;;  %v5444_v34 = vadd.f32 %v5443_v58, %v5442_v15  ;;  %v5445_v36 = vpop.f32.mrb[66].mxu1  ;;  %v4994_v58 = vcombine.low %v2240_v49, %v2244_v17  ;;  %v221_v49 = vld [vmem:[#allocation2 + $0x18] sm:$0xff]  ;;  %v2255_v17 = vld [vmem:[%s8866_s1 + $0x380] sm:$0xff] }
 0x17a   :  { %v1759_v42 = vadd.f32 %v5332_v27, %v7335_v31  ;;  %v5335_v44 = vadd.f32 %v5334_v54, %v5333_v28  ;;  %v5446_v51 = vpop.f32.mrb[67].mxu1  ;;  %v2251_v31 = vld [vmem:[%s8866_s1 + $0x360] sm:$0xff] }
 0x17b   :  { %v5447_v55 = vadd.f32 %v5446_v51, %v5445_v36  ;;  %3032 = vmatmul.mubr.bf16.gmra.mrb[172].mxu0 %v4984_v26  ;;  %v220_v51 = vld [vmem:[#allocation2 + $0x10] sm:$0xff] }
 0x17c   :  { %v1762_v3 = vadd.f32 %v5335_v44, %v7343_v57  ;;  %v1920_v56 = vadd.f32 %v5444_v34, %v1759_v42  ;;  %3193 = vmatmul.mubr.bf16.gmra.mrb[172].mxu1 %v4986_v20  ;;  %3039 = vmatprep.mubr.bf16.mxu0 %v4993_v35  ;;  %v2248_v57 = vld [vmem:[%s8866_s1 + $0x348] sm:$0xff]  ;;  %v5001_v20 = vcombine.high %v2247_v9, %v2251_v31 }
 0x17d   :  { %3200 = vmatprep.mubr.bf16.mxu1 %v4995_v63  ;;  %v5003_v36 = vcombine.high %v2248_v57, %v2252_v5 }
 0x17e   :  { %v2046_v24 = vadd.f32 %v1920_v56, %v218_v43  ;;  %v1923_v33 = vadd.f32 %v5447_v55, %v1762_v3  ;;  %v5336_v2 = vpop.f32.mrb[68].mxu0 }
 0x17f   :  { %v5337_v10 = vpop.f32.mrb[69].mxu0  ;;  %v5448_v0 = vpop.f32.mrb[68].mxu1 }
 0x180   :  { %2079 = vst.msk [vmem:[#allocation2] sm:$0xff] %vm25_vm0, %v2046_v24  ;;  %v2047_v15 = vadd.f32 %v1923_v33, %v219_v8  ;;  %v5338_v26 = vadd.f32 %v5337_v10, %v5336_v2  ;;  %v5339_v27 = vpop.f32.mrb[70].mxu0  ;;  %v5449_v28 = vpop.f32.mrb[69].mxu1  ;;  %v2260_v8 = vld [vmem:[%s8866_s1 + $0x3a8] sm:$0xff]  ;;  %v5000_v2 = vcombine.low %v2247_v9, %v2251_v31 }
 0x181   :  { %v5340_v35 = vpop.f32.mrb[71].mxu0  ;;  %v5450_v54 = vadd.f32 %v5449_v28, %v5448_v0  ;;  %v5451_v34 = vpop.f32.mrb[70].mxu1 }
 0x182   :  { %2080 = vst.msk [vmem:[#allocation2 + $0x8] sm:$0xff] %vm25_vm0, %v2047_v15  ;;  %v1767_v63 = vadd.f32 %v5338_v26, %v7355_v1  ;;  %v5341_v42 = vadd.f32 %v5340_v35, %v5339_v27  ;;  %v5452_v44 = vpop.f32.mrb[71].mxu1  ;;  %v2259_v1 = vld [vmem:[%s8866_s1 + $0x3a0] sm:$0xff]  ;;  %v5002_v26 = vcombine.low %v2248_v57, %v2252_v5  ;;  %v223_v57 = vld [vmem:[#allocation2 + $0x28] sm:$0xff] }
 0x183   :  { %v5453_v39 = vadd.f32 %v5452_v44, %v5451_v34  ;;  %3040 = vmatmul.mubr.bf16.gmra.mrb[176].mxu0 %v4992_v22  ;;  %v5009_v27 = vcombine.high %v2255_v17, %v2259_v1  ;;  %v2263_v5 = vld [vmem:[%s8866_s1 + $0x3c0] sm:$0xff] }
 0x184   :  { %v1770_v40 = vadd.f32 %v5341_v42, %v7363_v46  ;;  %v1928_v43 = vadd.f32 %v5450_v54, %v1767_v63  ;;  %3201 = vmatmul.mubr.bf16.gmra.mrb[176].mxu1 %v4994_v58  ;;  %3047 = vmatprep.mubr.bf16.mxu0 %v5001_v20  ;;  %v2256_v46 = vld [vmem:[%s8866_s1 + $0x388] sm:$0xff]  ;;  %v222_v63 = vld [vmem:[#allocation2 + $0x20] sm:$0xff] }
 0x185   :  { %3208 = vmatprep.mubr.bf16.mxu1 %v5003_v36  ;;  %v5011_v35 = vcombine.high %v2256_v46, %v2260_v8 }
 0x186   :  { %v2048_v55 = vadd.f32 %v1928_v43, %v220_v51  ;;  %v1931_v3 = vadd.f32 %v5453_v39, %v1770_v40  ;;  %v5342_v56 = vpop.f32.mrb[72].mxu0  ;;  %v2268_v40 = vld [vmem:[%s8866_s1 + $0x3e8] sm:$0xff] }
 0x187   :  { %v5343_v24 = vpop.f32.mrb[73].mxu0  ;;  %v5454_v33 = vpop.f32.mrb[72].mxu1 }
 0x188   :  { %2081 = vst.msk [vmem:[#allocation2 + $0x10] sm:$0xff] %vm25_vm0, %v2048_v55  ;;  %v2049_v10 = vadd.f32 %v1931_v3, %v221_v49  ;;  %v5344_v0 = vadd.f32 %v5343_v24, %v5342_v56  ;;  %v5345_v22 = vpop.f32.mrb[74].mxu0  ;;  %v5455_v15 = vpop.f32.mrb[73].mxu1  ;;  %v5008_v55 = vcombine.low %v2255_v17, %v2259_v1 }
 0x189   :  { %v5346_v28 = vpop.f32.mrb[75].mxu0  ;;  %v5456_v58 = vadd.f32 %v5455_v15, %v5454_v33  ;;  %v5457_v20 = vpop.f32.mrb[74].mxu1 }
 0x18a   :  { %2082 = vst.msk [vmem:[#allocation2 + $0x18] sm:$0xff] %vm25_vm0, %v2049_v10  ;;  %v1775_v54 = vadd.f32 %v5344_v0, %v7371_v11  ;;  %v5347_v34 = vadd.f32 %v5346_v28, %v5345_v22  ;;  %v5458_v36 = vpop.f32.mrb[75].mxu1  ;;  %v2267_v11 = vld [vmem:[%s8866_s1 + $0x3e0] sm:$0xff] }
 0x18b   :  { %v5459_v9 = vadd.f32 %v5458_v36, %v5457_v20  ;;  %3048 = vmatmul.mubr.bf16.gmra.mrb[180].mxu0 %v5000_v2  ;;  %v5010_v2 = vcombine.low %v2256_v46, %v2260_v8  ;;  %v5017_v10 = vcombine.high %v2263_v5, %v2267_v11  ;;  %v224_v20 = vld [vmem:[#allocation2 + $0x30] sm:$0xff]  ;;  %v225_v46 = vld [vmem:[#allocation2 + $0x38] sm:$0xff] }
 0x18c   :  { %v1778_v31 = vadd.f32 %v5347_v34, %v7379_v14  ;;  %v1936_v42 = vadd.f32 %v5456_v58, %v1775_v54  ;;  %3209 = vmatmul.mubr.bf16.gmra.mrb[180].mxu1 %v5002_v26  ;;  %3055 = vmatprep.mubr.bf16.mxu0 %v5009_v27  ;;  %v2264_v14 = vld [vmem:[%s8866_s1 + $0x3c8] sm:$0xff]  ;;  %v2145_v8 = vld [vmem:[%s8866_s1 + $0x10] sm:$0xff] }
 0x18d   :  { %3216 = vmatprep.mubr.bf16.mxu1 %v5011_v35  ;;  %v5019_v26 = vcombine.high %v2264_v14, %v2268_v40 }
 0x18e   :  { %v2050_v44 = vadd.f32 %v1936_v42, %v222_v63  ;;  %v1939_v51 = vadd.f32 %v5459_v9, %v1778_v31  ;;  %v5348_v39 = vpop.f32.mrb[76].mxu0  ;;  %v2150_v63 = vld [vmem:[%s8866_s1 + $0x38] sm:$0xff]  ;;  %v5016_v42 = vcombine.low %v2263_v5, %v2267_v11 }
 0x18f   :  { %v5349_v43 = vpop.f32.mrb[77].mxu0  ;;  %v5460_v49 = vpop.f32.mrb[76].mxu1 }
 0x190   :  { %2083 = vst.msk [vmem:[#allocation2 + $0x20] sm:$0xff] %vm25_vm0, %v2050_v44  ;;  %v2051_v3 = vadd.f32 %v1939_v51, %v223_v57  ;;  %v5350_v56 = vadd.f32 %v5349_v43, %v5348_v39  ;;  %v5351_v24 = vpop.f32.mrb[78].mxu0  ;;  %v5461_v33 = vpop.f32.mrb[77].mxu1  ;;  %v5018_v43 = vcombine.low %v2264_v14, %v2268_v40  ;;  %v227_v14 = vld [vmem:[#allocation2 + $0x48] sm:$0xff]  ;;  %v2153_v40 = vld [vmem:[%s8866_s1 + $0x50] sm:$0xff] }
 0x191   :  { %v5352_v0 = vpop.f32.mrb[79].mxu0  ;;  %v5462_v22 = vadd.f32 %v5461_v33, %v5460_v49  ;;  %v5463_v15 = vpop.f32.mrb[78].mxu1 }
 0x192   :  { %2084 = vst.msk [vmem:[#allocation2 + $0x28] sm:$0xff] %vm25_vm0, %v2051_v3  ;;  %v1783_v27 = vadd.f32 %v5350_v56, %v7387_v59  ;;  %v5353_v28 = vadd.f32 %v5352_v0, %v5351_v24  ;;  %v5464_v58 = vpop.f32.mrb[79].mxu1  ;;  %v2149_v59 = vld [vmem:[%s8866_s1 + $0x30] sm:$0xff]  ;;  %v226_v0 = vld [vmem:[#allocation2 + $0x40] sm:$0xff] }
 0x193   :  { %v5465_v17 = vadd.f32 %v5464_v58, %v5463_v15  ;;  %3056 = vmatmul.mubr.bf16.gmra.mrb[184].mxu0 %v5008_v55  ;;  %v4901_v49 = vcombine.high %v2145_v8, %v2149_v59 }
 0x194   :  { %v1786_v1 = vadd.f32 %v5353_v28, %v7395_v62  ;;  %v1944_v35 = vadd.f32 %v5462_v22, %v1783_v27  ;;  %3217 = vmatmul.mubr.bf16.gmra.mrb[184].mxu1 %v5010_v2  ;;  %3063 = vmatprep.mubr.bf16.mxu0 %v5017_v10  ;;  %v2146_v62 = vld [vmem:[%s8866_s1 + $0x18] sm:$0xff] }
 0x195   :  { %3224 = vmatprep.mubr.bf16.mxu1 %v5019_v26  ;;  %v4903_v24 = vcombine.high %v2146_v62, %v2150_v63  ;;  %v2158_v28 = vld [vmem:[%s8866_s1 + $0x78] sm:$0xff] }
 0x196   :  { %v2052_v54 = vadd.f32 %v1944_v35, %v224_v20  ;;  %v1947_v34 = vadd.f32 %v5465_v17, %v1786_v1  ;;  %v5354_v36 = vpop.f32.mrb[80].mxu0  ;;  %v4900_v17 = vcombine.low %v2145_v8, %v2149_v59 }
 0x197   :  { %v5355_v9 = vpop.f32.mrb[81].mxu0  ;;  %v5466_v31 = vpop.f32.mrb[80].mxu1 }
 0x198   :  { %2085 = vst.msk [vmem:[#allocation2 + $0x30] sm:$0xff] %vm25_vm0, %v2052_v54  ;;  %v2053_v57 = vadd.f32 %v1947_v34, %v225_v46  ;;  %v5356_v44 = vadd.f32 %v5355_v9, %v5354_v36  ;;  %v5357_v51 = vpop.f32.mrb[82].mxu0  ;;  %v5467_v39 = vpop.f32.mrb[81].mxu1  ;;  %v4902_v34 = vcombine.low %v2146_v62, %v2150_v63  ;;  %v229_v62 = vld [vmem:[#allocation2 + $0x58] sm:$0xff]  ;;  %v2161_v63 = vld [vmem:[%s8866_s1 + $0x90] sm:$0xff] }
 0x199   :  { %v5358_v55 = vpop.f32.mrb[83].mxu0  ;;  %v5468_v3 = vadd.f32 %v5467_v39, %v5466_v31  ;;  %v5469_v56 = vpop.f32.mrb[82].mxu1 }
 0x19a   :  { %2086 = vst.msk [vmem:[#allocation2 + $0x38] sm:$0xff] %vm25_vm0, %v2053_v57  ;;  %v1791_v33 = vadd.f32 %v5356_v44, %v7403_v50  ;;  %v5359_v2 = vadd.f32 %v5358_v55, %v5357_v51  ;;  %v5470_v10 = vpop.f32.mrb[83].mxu1  ;;  %v2157_v50 = vld [vmem:[%s8866_s1 + $0x70] sm:$0xff] }
 0x19b   :  { %v5471_v5 = vadd.f32 %v5470_v10, %v5469_v56  ;;  %3064 = vmatmul.mubr.bf16.gmra.mrb[188].mxu0 %v5016_v42  ;;  %v4909_v36 = vcombine.high %v2153_v40, %v2157_v50  ;;  %v4908_v10 = vcombine.low %v2153_v40, %v2157_v50 }
 0x19c   :  { %v1794_v11 = vadd.f32 %v5359_v2, %v7411_v53  ;;  %v1952_v22 = vadd.f32 %v5468_v3, %v1791_v33  ;;  %3225 = vmatmul.mubr.bf16.gmra.mrb[188].mxu1 %v5018_v43  ;;  %3265 = vmatprep.mubr.bf16.mxu0 %v4901_v49  ;;  %v2154_v53 = vld [vmem:[%s8866_s1 + $0x58] sm:$0xff]  ;;  %v228_v43 = vld [vmem:[#allocation2 + $0x50] sm:$0xff] }
 0x19d   :  { %3426 = vmatprep.mubr.bf16.mxu1 %v4903_v24  ;;  %v4911_v57 = vcombine.high %v2154_v53, %v2158_v28  ;;  %v2166_v24 = vld [vmem:[%s8866_s1 + $0xb8] sm:$0xff] }
 0x19e   :  { %v2054_v15 = vadd.f32 %v1952_v22, %v226_v0  ;;  %v1955_v26 = vadd.f32 %v5471_v5, %v1794_v11  ;;  %v5360_v27 = vpop.f32.mrb[84].mxu0 }
 0x19f   :  { %v5361_v58 = vpop.f32.mrb[85].mxu0  ;;  %v5472_v20 = vpop.f32.mrb[84].mxu1 }
 0x1a0   :  { %2087 = vst.msk [vmem:[#allocation2 + $0x40] sm:$0xff] %vm25_vm0, %v2054_v15  ;;  %v2055_v1 = vadd.f32 %v1955_v26, %v227_v14  ;;  %v5362_v35 = vadd.f32 %v5361_v58, %v5360_v27  ;;  %v5363_v46 = vpop.f32.mrb[86].mxu0  ;;  %v5473_v54 = vpop.f32.mrb[85].mxu1  ;;  %v4910_v14 = vcombine.low %v2154_v53, %v2158_v28  ;;  %v231_v53 = vld [vmem:[#allocation2 + $0x68] sm:$0xff]  ;;  %v2169_v28 = vld [vmem:[%s8866_s1 + $0xd0] sm:$0xff] }
 0x1a1   :  { %v5364_v9 = vpop.f32.mrb[87].mxu0  ;;  %v5474_v31 = vadd.f32 %v5473_v54, %v5472_v20  ;;  %v5475_v42 = vpop.f32.mrb[86].mxu1 }
 0x1a2   :  { %2088 = vst.msk [vmem:[#allocation2 + $0x48] sm:$0xff] %vm25_vm0, %v2055_v1  ;;  %v1799_v44 = vadd.f32 %v5362_v35, %v7419_v21  ;;  %v5365_v51 = vadd.f32 %v5364_v9, %v5363_v46  ;;  %v5476_v39 = vpop.f32.mrb[87].mxu1  ;;  %v2165_v21 = vld [vmem:[%s8866_s1 + $0xb0] sm:$0xff]  ;;  %v230_v46 = vld [vmem:[#allocation2 + $0x60] sm:$0xff] }
 0x1a3   :  { %v5477_v8 = vadd.f32 %v5476_v39, %v5475_v42  ;;  %3266 = vmatmul.mubr.bf16.vlgmr.msra.gmra.mrb[192].mxu0 %v4900_v17  ;;  %v4917_v15 = vcombine.high %v2161_v63, %v2165_v21 }
 0x1a4   :  { %v1802_v59 = vadd.f32 %v5365_v51, %v7434_v25  ;;  %v1960_v49 = vadd.f32 %v5474_v31, %v1799_v44  ;;  %3427 = vmatmul.mubr.bf16.vlgmr.msra.gmra.mrb[192].mxu1 %v4902_v34  ;;  %3273 = vmatprep.mubr.bf16.mxu0 %v4909_v36  ;;  %v2162_v25 = vld [vmem:[%s8866_s1 + $0x98] sm:$0xff]  ;;  %v4916_v44 = vcombine.low %v2161_v63, %v2165_v21 }
 0x1a5   :  { %3434 = vmatprep.mubr.bf16.mxu1 %v4911_v57  ;;  %v4919_v20 = vcombine.high %v2162_v25, %v2166_v24  ;;  %v2174_v31 = vld [vmem:[%s8866_s1 + $0xf8] sm:$0xff] }
 0x1a6   :  { %v2056_v55 = vadd.f32 %v1960_v49, %v228_v43  ;;  %v1963_v3 = vadd.f32 %v5477_v8, %v1802_v59  ;;  %v5366_v56 = vpop.f32.mrb[88].mxu0  ;;  %v4918_v59 = vcombine.low %v2162_v25, %v2166_v24  ;;  %v233_v25 = vld [vmem:[#allocation2 + $0x78] sm:$0xff]  ;;  %v2177_v24 = vld [vmem:[%s8866_s1 + $0x110] sm:$0xff] }
 0x1a7   :  { %v5367_v33 = vpop.f32.mrb[89].mxu0  ;;  %v5478_v2 = vpop.f32.mrb[88].mxu1 }
 0x1a8   :  { %2089 = vst.msk [vmem:[#allocation2 + $0x50] sm:$0xff] %vm25_vm0, %v2056_v55  ;;  %v2057_v0 = vadd.f32 %v1963_v3, %v229_v62  ;;  %v5368_v5 = vadd.f32 %v5367_v33, %v5366_v56  ;;  %v5369_v11 = vpop.f32.mrb[90].mxu0  ;;  %v5479_v22 = vpop.f32.mrb[89].mxu1 }
 0x1a9   :  { %v5370_v26 = vpop.f32.mrb[91].mxu0  ;;  %v5480_v27 = vadd.f32 %v5479_v22, %v5478_v2  ;;  %v5481_v58 = vpop.f32.mrb[90].mxu1 }
 0x1aa   :  { %2090 = vst.msk [vmem:[#allocation2 + $0x58] sm:$0xff] %vm25_vm0, %v2057_v0  ;;  %v1807_v17 = vadd.f32 %v5368_v5, %v7471_v47  ;;  %v5371_v1 = vadd.f32 %v5370_v26, %v5369_v11  ;;  %v5482_v35 = vpop.f32.mrb[91].mxu1  ;;  %v2173_v47 = vld [vmem:[%s8866_s1 + $0xf0] sm:$0xff] }
 0x1ab   :  { %v5483_v40 = vadd.f32 %v5482_v35, %v5481_v58  ;;  %3274 = vmatmul.mubr.bf16.gmra.mrb[196].mxu0 %v4908_v10  ;;  %v4925_v49 = vcombine.high %v2169_v28, %v2173_v47  ;;  %v232_v0 = vld [vmem:[#allocation2 + $0x70] sm:$0xff]  ;;  %v4924_v58 = vcombine.low %v2169_v28, %v2173_v47 }
 0x1ac   :  { %v1810_v50 = vadd.f32 %v5371_v1, %v7486_v52  ;;  %v1968_v54 = vadd.f32 %v5480_v27, %v1807_v17  ;;  %3435 = vmatmul.mubr.bf16.gmra.mrb[196].mxu1 %v4910_v14  ;;  %3281 = vmatprep.mubr.bf16.mxu0 %v4917_v15  ;;  %v2170_v52 = vld [vmem:[%s8866_s1 + $0xd8] sm:$0xff] }
 0x1ad   :  { %3442 = vmatprep.mubr.bf16.mxu1 %v4919_v20  ;;  %v4927_v56 = vcombine.high %v2170_v52, %v2174_v31  ;;  %v2182_v15 = vld [vmem:[%s8866_s1 + $0x138] sm:$0xff] }
 0x1ae   :  { %v2058_v34 = vadd.f32 %v1968_v54, %v230_v46  ;;  %v1971_v36 = vadd.f32 %v5483_v40, %v1810_v50  ;;  %v5372_v9 = vpop.f32.mrb[92].mxu0  ;;  %v4926_v46 = vcombine.low %v2170_v52, %v2174_v31  ;;  %v235_v52 = vld [vmem:[#allocation2 + $0x88] sm:$0xff]  ;;  %v7866_v31 = vld [vmem:[%s8866_s1 + $0x150] sm:$0xff] }
 0x1af   :  { %v5373_v42 = vpop.f32.mrb[93].mxu0  ;;  %v5484_v57 = vpop.f32.mrb[92].mxu1 }
 0x1b0   :  { %2091 = vst.msk [vmem:[#allocation2 + $0x60] sm:$0xff] %vm25_vm0, %v2058_v34  ;;  %v2059_v51 = vadd.f32 %v1971_v36, %v231_v53  ;;  %v5374_v39 = vadd.f32 %v5373_v42, %v5372_v9  ;;  %v5375_v43 = vpop.f32.mrb[94].mxu0  ;;  %v5485_v8 = vpop.f32.mrb[93].mxu1 }
 0x1b1   :  { %v5376_v62 = vpop.f32.mrb[95].mxu0  ;;  %v5486_v55 = vadd.f32 %v5485_v8, %v5484_v57  ;;  %v5487_v3 = vpop.f32.mrb[94].mxu1  ;;  %v234_v57 = vld [vmem:[#allocation2 + $0x80] sm:$0xff]  ;;  %v7881_v8 = vld [vmem:[%s8866_s1 + $0x178] sm:$0xff] }
 0x1b2   :  { %2092 = vst.msk [vmem:[#allocation2 + $0x68] sm:$0xff] %vm25_vm0, %v2059_v51  ;;  %v1815_v33 = vadd.f32 %v5374_v39, %v7527_v30  ;;  %v5377_v2 = vadd.f32 %v5376_v62, %v5375_v43  ;;  %v5488_v10 = vpop.f32.mrb[95].mxu1  ;;  %v2181_v30 = vld [vmem:[%s8866_s1 + $0x130] sm:$0xff] }
 0x1b3   :  { %v5489_v63 = vadd.f32 %v5488_v10, %v5487_v3  ;;  %3282 = vmatmul.mubr.bf16.gmra.mrb[200].mxu0 %v4916_v44  ;;  %v4933_v40 = vcombine.high %v2177_v24, %v2181_v30  ;;  %v4932_v62 = vcombine.low %v2177_v24, %v2181_v30 }
 0x1b4   :  { %v1818_v21 = vadd.f32 %v5377_v2, %v7542_v60  ;;  %v1976_v5 = vadd.f32 %v5486_v55, %v1815_v33  ;;  %3443 = vmatmul.mubr.bf16.gmra.mrb[200].mxu1 %v4918_v59  ;;  %3289 = vmatprep.mubr.bf16.mxu0 %v4925_v49  ;;  %v2178_v60 = vld [vmem:[%s8866_s1 + $0x118] sm:$0xff] }
 0x1b5   :  { %3450 = vmatprep.mubr.bf16.mxu1 %v4927_v56  ;;  %v4935_v34 = vcombine.high %v2178_v60, %v2182_v15  ;;  %v4934_v2 = vcombine.low %v2178_v60, %v2182_v15  ;;  %v237_v15 = vld [vmem:[#allocation2 + $0x98] sm:$0xff] }
 0x1b6   :  { %v2060_v11 = vadd.f32 %v1976_v5, %v232_v0  ;;  %v1979_v22 = vadd.f32 %v5489_v63, %v1818_v21  ;;  %v5378_v14 = vpop.f32.mrb[96].mxu0 }
 0x1b7   :  { %v5379_v26 = vpop.f32.mrb[97].mxu0  ;;  %v5490_v27 = vpop.f32.mrb[96].mxu1 }
 0x1b8   :  { %2093 = vst.msk [vmem:[#allocation2 + $0x70] sm:$0xff] %vm25_vm0, %v2060_v11  ;;  %v2061_v20 = vadd.f32 %v1979_v22, %v233_v25  ;;  %v5380_v17 = vadd.f32 %v5379_v26, %v5378_v14  ;;  %v5381_v1 = vpop.f32.mrb[98].mxu0  ;;  %v5491_v35 = vpop.f32.mrb[97].mxu1  ;;  %v236_v11 = vld [vmem:[#allocation2 + $0x90] sm:$0xff] }
 0x1b9   :  { %v5382_v50 = vpop.f32.mrb[99].mxu0  ;;  %v5492_v54 = vadd.f32 %v5491_v35, %v5490_v27  ;;  %v5493_v53 = vpop.f32.mrb[98].mxu1  ;;  %v7894_v26 = vld [vmem:[%s8866_s1 + $0x190] sm:$0xff] }
 0x1ba   :  { %2094 = vst.msk [vmem:[#allocation2 + $0x78] sm:$0xff] %vm25_vm0, %v2061_v20  ;;  %v1823_v36 = vadd.f32 %v5380_v17, %v7580_v4  ;;  %v5383_v9 = vadd.f32 %v5382_v50, %v5381_v1  ;;  %v5494_v42 = vpop.f32.mrb[99].mxu1  ;;  %v7871_v4 = vld [vmem:[%s8866_s1 + $0x170] sm:$0xff]  ;;  %v3623_v17 = vld [vmem:[#allocation2 + $0x8] sm:$0xff]  ;;  %v7909_v1 = vld [vmem:[%s8866_s1 + $0x1b8] sm:$0xff] }
 0x1bb   :  { %v5495_v28 = vadd.f32 %v5494_v42, %v5493_v53  ;;  %3290 = vmatmul.mubr.bf16.gmra.mrb[204].mxu0 %v4924_v58  ;;  %v4941_v10 = vcombine.high %v7866_v31, %v7871_v4  ;;  %v7919_v42 = vld [vmem:[%s8867_s4] ss:$0 sm:$0xff] }
 0x1bc   :  { %v1826_v47 = vadd.f32 %v5383_v9, %v7585_v7  ;;  %v1984_v44 = vadd.f32 %v5492_v54, %v1823_v36  ;;  %3451 = vmatmul.mubr.bf16.gmra.mrb[204].mxu1 %v4926_v46  ;;  %3297 = vmatprep.mubr.bf16.mxu0 %v4933_v40  ;;  %v7876_v7 = vld [vmem:[%s8866_s1 + $0x158] sm:$0xff]  ;;  %v4940_v40 = vcombine.low %v7866_v31, %v7871_v4 }
 0x1bd   :  { %3458 = vmatprep.mubr.bf16.mxu1 %v4935_v34  ;;  %v4943_v5 = vcombine.high %v7876_v7, %v7881_v8  ;;  %v4942_v9 = vcombine.low %v7876_v7, %v7881_v8  ;;  %v3662_v4 = vadd.f32 %v7919_v42, %v3623_v17  ;;  %v3624_v17 = vld [vmem:[#allocation2 + $0x10] sm:$0xff] }
 0x1be   :  { %v2062_v51 = vadd.f32 %v1984_v44, %v234_v57  ;;  %v1987_v39 = vadd.f32 %v5495_v28, %v1826_v47  ;;  %v5384_v43 = vpop.f32.mrb[100].mxu0  ;;  %v3622_v57 = vld [vmem:[#allocation2] sm:$0xff] }
 0x1bf   :  { %v5385_v59 = vpop.f32.mrb[101].mxu0  ;;  %v5496_v49 = vpop.f32.mrb[100].mxu1 }
 0x1c0   :  { %2095 = vst.msk [vmem:[#allocation2 + $0x80] sm:$0xff] %vm25_vm0, %v2062_v51  ;;  %v2063_v55 = vadd.f32 %v1987_v39, %v235_v52  ;;  %v5386_v3 = vadd.f32 %v5385_v59, %v5384_v43  ;;  %v5387_v56 = vpop.f32.mrb[102].mxu0  ;;  %v5497_v33 = vpop.f32.mrb[101].mxu1 }
 0x1c1   :  { %v5388_v0 = vpop.f32.mrb[103].mxu0  ;;  %v5498_v63 = vadd.f32 %v5497_v33, %v5496_v49  ;;  %v5499_v21 = vpop.f32.mrb[102].mxu1  ;;  %v238_v49 = vld [vmem:[#allocation2 + $0xa0] sm:$0xff] }
 0x1c2   :  { %2096 = vst.msk [vmem:[#allocation2 + $0x88] sm:$0xff] %vm25_vm0, %v2063_v55  ;;  %v1831_v25 = vadd.f32 %v5386_v3, %v7621_v38  ;;  %v5389_v24 = vadd.f32 %v5388_v0, %v5387_v56  ;;  %v5500_v30 = vpop.f32.mrb[103].mxu1  ;;  %v7899_v38 = vld [vmem:[%s8866_s1 + $0x1b0] sm:$0xff]  ;;  %v3661_v55 = vadd.f32 %v7919_v42, %v3622_v57 }
 0x1c3   :  { %v5501_v22 = vadd.f32 %v5500_v30, %v5499_v21  ;;  %3298 = vmatmul.mubr.bf16.gmra.mrb[208].mxu0 %v4932_v62  ;;  %v4949_v28 = vcombine.high %v7894_v26, %v7899_v38  ;;  %v7940_v0 = vld [vmem:[%s8866_s1 + $0x1f0] sm:$0xff] }
 0x1c4   :  { %v1834_v14 = vadd.f32 %v5389_v24, %v7623_v32  ;;  %v1992_v60 = vadd.f32 %v5498_v63, %v1831_v25  ;;  %3459 = vmatmul.mubr.bf16.gmra.mrb[208].mxu1 %v4934_v2  ;;  %3305 = vmatprep.mubr.bf16.mxu0 %v4941_v10  ;;  %v7904_v32 = vld [vmem:[%s8866_s1 + $0x198] sm:$0xff]  ;;  %v239_v2 = vld [vmem:[#allocation2 + $0xa8] sm:$0xff]  ;;  %v6248_v10 = vpack.c.bf16 %v3662_v4, %v3661_v55 }
 0x1c5   :  { %3466 = vmatprep.mubr.bf16.mxu1 %v4943_v5  ;;  %v4951_v51 = vcombine.high %v7904_v32, %v7909_v1  ;;  %v3625_v5 = vld [vmem:[#allocation2 + $0x18] sm:$0xff] }
 0x1c6   :  { %v2064_v27 = vadd.f32 %v1992_v60, %v236_v11  ;;  %v1995_v58 = vadd.f32 %v5501_v22, %v1834_v14  ;;  %v5390_v20 = vpop.f32.mrb[104].mxu0  ;;  %v7945_v25 = vld [vmem:[%s8866_s1 + $0x1d8] sm:$0xff]  ;;  %v4948_v22 = vcombine.low %v7894_v26, %v7899_v38  ;;  %v3664_v26 = vadd.f32 %v7919_v42, %v3625_v5 }
 0x1c7   :  { %v5391_v35 = vpop.f32.mrb[105].mxu0  ;;  %v5502_v46 = vpop.f32.mrb[104].mxu1  ;;  %v3638_v50 = vld [vmem:[#allocation2 + $0x80] sm:$0xff]  ;;  %v7950_v24 = vld [vmem:[%s8866_s1 + $0x1f8] sm:$0xff] }
 0x1c8   :  { %2097 = vst.msk [vmem:[#allocation2 + $0x90] sm:$0xff] %vm25_vm0, %v2064_v27  ;;  %v2065_v54 = vadd.f32 %v1995_v58, %v237_v15  ;;  %v5392_v53 = vadd.f32 %v5391_v35, %v5390_v20  ;;  %v5393_v34 = vpop.f32.mrb[106].mxu0  ;;  %v5503_v36 = vpop.f32.mrb[105].mxu1  ;;  %v3677_v8 = vadd.f32 %v7919_v42, %v3638_v50  ;;  %v4950_v20 = vcombine.low %v7904_v32, %v7909_v1 }
 0x1c9   :  { %v5394_v47 = vpop.f32.mrb[107].mxu0  ;;  %v5504_v44 = vadd.f32 %v5503_v36, %v5502_v46  ;;  %v5505_v52 = vpop.f32.mrb[106].mxu1  ;;  %v3639_v31 = vld [vmem:[#allocation2 + $0x88] sm:$0xff]  ;;  %v4959_v38 = vcombine.high %v7945_v25, %v7950_v24 }
 0x1ca   :  { %2098 = vst.msk [vmem:[#allocation2 + $0x98] sm:$0xff] %vm25_vm0, %v2065_v54  ;;  %v1839_v39 = vadd.f32 %v5392_v53, %v7637_v16  ;;  %v5395_v43 = vadd.f32 %v5394_v47, %v5393_v34  ;;  %v5506_v7 = vpop.f32.mrb[107].mxu1  ;;  %v3678_v59 = vadd.f32 %v7919_v42, %v3639_v31  ;;  %v7935_v16 = vld [vmem:[%s8866_s1 + $0x1d0] sm:$0xff]  ;;  %v241_v31 = vld [vmem:[#allocation2 + $0xb8] sm:$0xff] }
 0x1cb   :  { %v5507_v62 = vadd.f32 %v5506_v7, %v5505_v52  ;;  %3306 = vmatmul.mubr.bf16.gmra.mrb[212].mxu0 %v4940_v40  ;;  %v4957_v35 = vcombine.high %v7935_v16, %v7940_v0  ;;  %v3627_v7 = vld [vmem:[#allocation2 + $0x28] sm:$0xff]  ;;  %v4956_v55 = vcombine.low %v7935_v16, %v7940_v0 }
 0x1cc   :  { %v1842_v3 = vadd.f32 %v5395_v43, %v7639_v19  ;;  %v2000_v56 = vadd.f32 %v5504_v44, %v1839_v39  ;;  %3467 = vmatmul.mubr.bf16.gmra.mrb[212].mxu1 %v4942_v9  ;;  %v6246_v33 = vpack.c.bf16 %v3678_v59, %v3677_v8  ;;  %3313 = vmatprep.mubr.bf16.mxu0 %v4949_v28  ;;  %v240_v9 = vld [vmem:[#allocation2 + $0xb0] sm:$0xff]  ;;  %v7981_v8 = vld [vmem:[%s8866_s1 + $0x218] sm:$0xff] }
 0x1cd   :  { %3474 = vmatprep.mubr.bf16.mxu1 %v4951_v51  ;;  %v3663_v28 = vadd.f32 %v7919_v42, %v3624_v17  ;;  %v7976_v51 = vld [vmem:[%s8866_s1 + $0x230] sm:$0xff]  ;;  %v7986_v59 = vld [vmem:[%s8866_s1 + $0x238] sm:$0xff]  ;;  %v3666_v16 = vadd.f32 %v7919_v42, %v3627_v7 }
 0x1ce   :  { %v2066_v63 = vadd.f32 %v2000_v56, %v238_v49  ;;  %v2003_v21 = vadd.f32 %v5507_v62, %v1842_v3  ;;  %v5396_v19 = vpop.f32.mrb[108].mxu0  ;;  %6247 = vmatprep.subr.bf16.mxu0 %v6246_v33  ;;  %v4967_v0 = vcombine.high %v7981_v8, %v7986_v59 }
 0x1cf   :  { %v5397_v30 = vpop.f32.mrb[109].mxu0  ;;  %6249 = vmatpush3.bf16.msra.mxu0 %v6248_v10  ;;  %v5508_v11 = vpop.f32.mrb[108].mxu1  ;;  %v3640_v14 = vld [vmem:[#allocation2 + $0x90] sm:$0xff]  ;;  %v6252_v4 = vpack.c.bf16 %v3664_v26, %v3663_v28 }
 0x1d0   :  { %2099 = vst.msk [vmem:[#allocation2 + $0xa0] sm:$0xff] %vm25_vm0, %v2066_v63  ;;  %v2067_v60 = vadd.f32 %v2003_v21, %v239_v2  ;;  %v5398_v15 = vadd.f32 %v5397_v30, %v5396_v19  ;;  %v5399_v27 = vpop.f32.mrb[110].mxu0  ;;  %v5509_v58 = vpop.f32.mrb[109].mxu1  ;;  %v3679_v32 = vadd.f32 %v7919_v42, %v3640_v14  ;;  %v4958_v63 = vcombine.low %v7945_v25, %v7950_v24  ;;  %v3626_v21 = vld [vmem:[#allocation2 + $0x20] sm:$0xff] }
 0x1d1   :  { %v5400_v46 = vpop.f32.mrb[111].mxu0  ;;  %v5510_v40 = vadd.f32 %v5509_v58, %v5508_v11  ;;  %v5511_v50 = vpop.f32.mrb[110].mxu1  ;;  %v3641_v54 = vld [vmem:[#allocation2 + $0x98] sm:$0xff] }
 0x1d2   :  { %2100 = vst.msk [vmem:[#allocation2 + $0xa8] sm:$0xff] %vm25_vm0, %v2067_v60  ;;  %v1847_v53 = vadd.f32 %v5398_v15, %v7653_v37  ;;  %v5401_v34 = vadd.f32 %v5400_v46, %v5399_v27  ;;  %v5512_v36 = vpop.f32.mrb[111].mxu1  ;;  %v3680_v1 = vadd.f32 %v7919_v42, %v3641_v54  ;;  %v7971_v37 = vld [vmem:[%s8866_s1 + $0x210] sm:$0xff]  ;;  %v242_v27 = vld [vmem:[#allocation2 + $0xc0] sm:$0xff] }
 0x1d3   :  { %v5513_v57 = vadd.f32 %v5512_v36, %v5511_v50  ;;  %3314 = vmatmul.mubr.bf16.gmra.mrb[216].mxu0 %v4948_v22  ;;  %v4965_v19 = vcombine.high %v7971_v37, %v7976_v51  ;;  %v8012_v54 = vld [vmem:[%s8866_s1 + $0x270] sm:$0xff]  ;;  %v8022_v36 = vld [vmem:[%s8866_s1 + $0x278] sm:$0xff] }
 0x1d4   :  { %v1850_v47 = vadd.f32 %v5401_v34, %v7655_v41  ;;  %v2008_v44 = vadd.f32 %v5510_v40, %v1847_v53  ;;  %3475 = vmatmul.mubr.bf16.gmra.mrb[216].mxu1 %v4950_v20  ;;  %v6250_v52 = vpack.c.bf16 %v3680_v1, %v3679_v32  ;;  %3321 = vmatprep.mubr.bf16.mxu0 %v4957_v35  ;;  %v243_v40 = vld [vmem:[#allocation2 + $0xc8] sm:$0xff]  ;;  %v3629_v53 = vld [vmem:[#allocation2 + $0x38] sm:$0xff] }
 0x1d5   :  { %3482 = vmatprep.mubr.bf16.mxu1 %v4959_v38  ;;  %v3665_v20 = vadd.f32 %v7919_v42, %v3626_v21  ;;  %v8017_v34 = vld [vmem:[%s8866_s1 + $0x258] sm:$0xff] }
 0x1d6   :  { %v2068_v39 = vadd.f32 %v2008_v44, %v240_v9  ;;  %v2011_v43 = vadd.f32 %v5513_v57, %v1850_v47  ;;  %v5402_v41 = vpop.f32.mrb[112].mxu0  ;;  %6251 = vmatprep.subr.bf16.mxu0 %v6250_v52  ;;  %v4964_v9 = vcombine.low %v7971_v37, %v7976_v51  ;;  %v3668_v37 = vadd.f32 %v7919_v42, %v3629_v53 }
 0x1d7   :  { %v5403_v49 = vpop.f32.mrb[113].mxu0  ;;  %6253 = vmatpush3.bf16.msra.mxu0 %v6252_v4  ;;  %v5514_v62 = vpop.f32.mrb[112].mxu1  ;;  %v3642_v3 = vld [vmem:[#allocation2 + $0xa0] sm:$0xff]  ;;  %v6256_v50 = vpack.c.bf16 %v3666_v16, %v3665_v20  ;;  %v3628_v4 = vld [vmem:[#allocation2 + $0x30] sm:$0xff]  ;;  %v4975_v51 = vcombine.high %v8017_v34, %v8022_v36  ;;  %v3631_v16 = vld [vmem:[#allocation2 + $0x48] sm:$0xff] }
 0x1d8   :  { %2101 = vst.msk [vmem:[#allocation2 + $0xb0] sm:$0xff] %vm25_vm0, %v2068_v39  ;;  %v2069_v56 = vadd.f32 %v2011_v43, %v241_v31  ;;  %v5404_v33 = vadd.f32 %v5403_v49, %v5402_v41  ;;  %v5405_v2 = vpop.f32.mrb[114].mxu0  ;;  %v5515_v10 = vpop.f32.mrb[113].mxu1  ;;  %v3681_v25 = vadd.f32 %v7919_v42, %v3642_v3  ;;  %v4966_v31 = vcombine.low %v7981_v8, %v7986_v59 }
 0x1d9   :  { %v5406_v5 = vpop.f32.mrb[115].mxu0  ;;  %v5516_v30 = vadd.f32 %v5515_v10, %v5514_v62  ;;  %v5517_v11 = vpop.f32.mrb[114].mxu1  ;;  %v3643_v22 = vld [vmem:[#allocation2 + $0xa8] sm:$0xff] }
 0x1da   :  { %2102 = vst.msk [vmem:[#allocation2 + $0xb8] sm:$0xff] %vm25_vm0, %v2069_v56  ;;  %v1855_v14 = vadd.f32 %v5404_v33, %v7669_v13  ;;  %v5407_v60 = vadd.f32 %v5406_v5, %v5405_v2  ;;  %v5518_v15 = vpop.f32.mrb[115].mxu1  ;;  %v3682_v24 = vadd.f32 %v7919_v42, %v3643_v22  ;;  %v8007_v13 = vld [vmem:[%s8866_s1 + $0x250] sm:$0xff]  ;;  %v3667_v2 = vadd.f32 %v7919_v42, %v3628_v4 }
 0x1db   :  { %v5519_v58 = vadd.f32 %v5518_v15, %v5517_v11  ;;  %3322 = vmatmul.mubr.bf16.gmra.mrb[220].mxu0 %v4956_v55  ;;  %v4973_v39 = vcombine.high %v8007_v13, %v8012_v54  ;;  %v244_v56 = vld [vmem:[#allocation2 + $0xd0] sm:$0xff] }
 0x1dc   :  { %v1858_v17 = vadd.f32 %v5407_v60, %v7671_v23  ;;  %v2016_v35 = vadd.f32 %v5516_v30, %v1855_v14  ;;  %3483 = vmatmul.mubr.bf16.gmra.mrb[220].mxu1 %v4958_v63  ;;  %v6254_v46 = vpack.c.bf16 %v3682_v24, %v3681_v25  ;;  %3329 = vmatprep.mubr.bf16.mxu0 %v4965_v19  ;;  %v245_v19 = vld [vmem:[#allocation2 + $0xd8] sm:$0xff]  ;;  %v8048_v30 = vld [vmem:[%s8866_s1 + $0x2b0] sm:$0xff] }
 0x1dd   :  { %3490 = vmatprep.mubr.bf16.mxu1 %v4967_v0  ;;  %v6260_v5 = vpack.c.bf16 %v3668_v37, %v3667_v2  ;;  %v8053_v0 = vld [vmem:[%s8866_s1 + $0x298] sm:$0xff]  ;;  %v4972_v25 = vcombine.low %v8007_v13, %v8012_v54  ;;  %v3670_v13 = vadd.f32 %v7919_v42, %v3631_v16 }
 0x1de   :  { %v2070_v26 = vadd.f32 %v2016_v35, %v242_v27  ;;  %v2019_v38 = vadd.f32 %v5519_v58, %v1858_v17  ;;  %v5408_v23 = vpop.f32.mrb[116].mxu0  ;;  %6255 = vmatprep.subr.bf16.mxu0 %v6254_v46  ;;  %v8058_v14 = vld [vmem:[%s8866_s1 + $0x2b8] sm:$0xff]  ;;  %v4974_v35 = vcombine.low %v8017_v34, %v8022_v36  ;;  %v3630_v46 = vld [vmem:[#allocation2 + $0x40] sm:$0xff] }
 0x1df   :  { %v5409_v32 = vpop.f32.mrb[117].mxu0  ;;  %6257 = vmatpush3.bf16.msra.mxu0 %v6256_v50  ;;  %v5520_v1 = vpop.f32.mrb[116].mxu1  ;;  %v3644_v57 = vld [vmem:[#allocation2 + $0xb0] sm:$0xff]  ;;  %v4983_v54 = vcombine.high %v8053_v0, %v8058_v14  ;;  %v8094_v37 = vld [vmem:[%s8866_s1 + $0x2f8] sm:$0xff]  ;;  %v4982_v2 = vcombine.low %v8053_v0, %v8058_v14 }
 0x1e0   :  { %2103 = vst.msk [vmem:[#allocation2 + $0xc0] sm:$0xff] %vm25_vm0, %v2070_v26  ;;  %v2071_v28 = vadd.f32 %v2019_v38, %v243_v40  ;;  %v5410_v47 = vadd.f32 %v5409_v32, %v5408_v23  ;;  %v5411_v44 = vpop.f32.mrb[118].mxu0  ;;  %v5521_v52 = vpop.f32.mrb[117].mxu1  ;;  %v3683_v8 = vadd.f32 %v7919_v42, %v3644_v57 }
 0x1e1   :  { %v5412_v43 = vpop.f32.mrb[119].mxu0  ;;  %v5522_v41 = vadd.f32 %v5521_v52, %v5520_v1  ;;  %v5523_v7 = vpop.f32.mrb[118].mxu1  ;;  %v3645_v49 = vld [vmem:[#allocation2 + $0xb8] sm:$0xff] }
 0x1e2   :  { %2104 = vst.msk [vmem:[#allocation2 + $0xc8] sm:$0xff] %vm25_vm0, %v2071_v28  ;;  %v1863_v62 = vadd.f32 %v5410_v47, %v7685_v45  ;;  %v5413_v55 = vadd.f32 %v5412_v43, %v5411_v44  ;;  %v5524_v3 = vpop.f32.mrb[119].mxu1  ;;  %v3684_v59 = vadd.f32 %v7919_v42, %v3645_v49  ;;  %v8043_v45 = vld [vmem:[%s8866_s1 + $0x290] sm:$0xff]  ;;  %v3669_v28 = vadd.f32 %v7919_v42, %v3630_v46  ;;  %v8089_v49 = vld [vmem:[%s8866_s1 + $0x2d8] sm:$0xff] }
 0x1e3   :  { %v5525_v33 = vadd.f32 %v5524_v3, %v5523_v7  ;;  %3330 = vmatmul.mubr.bf16.gmra.mrb[224].mxu0 %v4964_v9  ;;  %v4981_v40 = vcombine.high %v8043_v45, %v8048_v30  ;;  %v246_v9 = vld [vmem:[#allocation2 + $0xe0] sm:$0xff]  ;;  %v3633_v7 = vld [vmem:[#allocation2 + $0x58] sm:$0xff] }
 0x1e4   :  { %v1866_v10 = vadd.f32 %v5413_v55, %v7687_v48  ;;  %v2024_v63 = vadd.f32 %v5522_v41, %v1863_v62  ;;  %3491 = vmatmul.mubr.bf16.gmra.mrb[224].mxu1 %v4966_v31  ;;  %v6258_v21 = vpack.c.bf16 %v3684_v59, %v3683_v8  ;;  %3337 = vmatprep.mubr.bf16.mxu0 %v4973_v39  ;;  %v247_v31 = vld [vmem:[#allocation2 + $0xe8] sm:$0xff]  ;;  %v8084_v39 = vld [vmem:[%s8866_s1 + $0x2f0] sm:$0xff] }
 0x1e5   :  { %3498 = vmatprep.mubr.bf16.mxu1 %v4975_v51  ;;  %v6264_v4 = vpack.c.bf16 %v3670_v13, %v3669_v28  ;;  %v4980_v55 = vcombine.low %v8043_v45, %v8048_v30  ;;  %v3672_v45 = vadd.f32 %v7919_v42, %v3633_v7  ;;  %v4991_v30 = vcombine.high %v8089_v49, %v8094_v37 }
 0x1e6   :  { %v2072_v11 = vadd.f32 %v2024_v63, %v244_v56  ;;  %v2027_v22 = vadd.f32 %v5525_v33, %v1866_v10  ;;  %v5414_v48 = vpop.f32.mrb[120].mxu0  ;;  %6259 = vmatprep.subr.bf16.mxu0 %v6258_v21  ;;  %v3632_v10 = vld [vmem:[#allocation2 + $0x50] sm:$0xff] }
 0x1e7   :  { %v5415_v60 = vpop.f32.mrb[121].mxu0  ;;  %6261 = vmatpush3.bf16.msra.mxu0 %v6260_v5  ;;  %v5526_v15 = vpop.f32.mrb[120].mxu1  ;;  %v3646_v24 = vld [vmem:[#allocation2 + $0xc0] sm:$0xff] }
 0x1e8   :  { %2105 = vst.msk [vmem:[#allocation2 + $0xd0] sm:$0xff] %vm25_vm0, %v2072_v11  ;;  %v2073_v27 = vadd.f32 %v2027_v22, %v245_v19  ;;  %v5416_v58 = vadd.f32 %v5415_v60, %v5414_v48  ;;  %v5417_v20 = vpop.f32.mrb[122].mxu0  ;;  %v5527_v17 = vpop.f32.mrb[121].mxu1  ;;  %v3685_v34 = vadd.f32 %v7919_v42, %v3646_v24  ;;  %v248_v60 = vld [vmem:[#allocation2 + $0xf0] sm:$0xff] }
 0x1e9   :  { %v5418_v50 = vpop.f32.mrb[123].mxu0  ;;  %v5528_v26 = vadd.f32 %v5527_v17, %v5526_v15  ;;  %v5529_v38 = vpop.f32.mrb[122].mxu1  ;;  %v3647_v23 = vld [vmem:[#allocation2 + $0xc8] sm:$0xff] }
 0x1ea   :  { %2106 = vst.msk [vmem:[#allocation2 + $0xd8] sm:$0xff] %vm25_vm0, %v2073_v27  ;;  %v1871_v53 = vadd.f32 %v5416_v58, %v7701_v29  ;;  %v5419_v32 = vadd.f32 %v5418_v50, %v5417_v20  ;;  %v5530_v1 = vpop.f32.mrb[123].mxu1  ;;  %v3686_v36 = vadd.f32 %v7919_v42, %v3647_v23  ;;  %v8079_v29 = vld [vmem:[%s8866_s1 + $0x2d0] sm:$0xff]  ;;  %v249_v20 = vld [vmem:[#allocation2 + $0xf8] sm:$0xff]  ;;  %v3635_v50 = vld [vmem:[#allocation2 + $0x68] sm:$0xff] }
 0x1eb   :  { %v5531_v57 = vadd.f32 %v5530_v1, %v5529_v38  ;;  %3338 = vmatmul.mubr.bf16.gmra.mrb[228].mxu0 %v4972_v25  ;;  %v4989_v63 = vcombine.high %v8079_v29, %v8084_v39  ;;  %v3671_v25 = vadd.f32 %v7919_v42, %v3632_v10  ;;  %v8130_v38 = vld [vmem:[%s8866_s1 + $0x338] sm:$0xff] }
 0x1ec   :  { %v1874_v47 = vadd.f32 %v5419_v32, %v7703_v61  ;;  %v2032_v44 = vadd.f32 %v5528_v26, %v1871_v53  ;;  %3499 = vmatmul.mubr.bf16.gmra.mrb[228].mxu1 %v4974_v35  ;;  %v6262_v52 = vpack.c.bf16 %v3686_v36, %v3685_v34  ;;  %3345 = vmatprep.mubr.bf16.mxu0 %v4981_v40  ;;  %v8120_v35 = vld [vmem:[%s8866_s1 + $0x330] sm:$0xff]  ;;  %v8125_v26 = vld [vmem:[%s8866_s1 + $0x318] sm:$0xff] }
 0x1ed   :  { %3506 = vmatprep.mubr.bf16.mxu1 %v4983_v54  ;;  %v6268_v17 = vpack.c.bf16 %v3672_v45, %v3671_v25  ;;  %v4988_v54 = vcombine.low %v8079_v29, %v8084_v39  ;;  %v4999_v29 = vcombine.high %v8125_v26, %v8130_v38 }
 0x1ee   :  { %v2074_v43 = vadd.f32 %v2032_v44, %v246_v9  ;;  %v2035_v41 = vadd.f32 %v5531_v57, %v1874_v47  ;;  %v5420_v61 = vpop.f32.mrb[124].mxu0  ;;  %6263 = vmatprep.subr.bf16.mxu0 %v6262_v52  ;;  %v4990_v9 = vcombine.low %v8089_v49, %v8094_v37  ;;  %v3634_v57 = vld [vmem:[#allocation2 + $0x60] sm:$0xff] }
 0x1ef   :  { %v5421_v51 = vpop.f32.mrb[125].mxu0  ;;  %6265 = vmatpush3.bf16.msra.mxu0 %v6264_v4  ;;  %v5532_v62 = vpop.f32.mrb[124].mxu1  ;;  %v3648_v3 = vld [vmem:[#allocation2 + $0xd0] sm:$0xff]  ;;  %v3674_v4 = vadd.f32 %v7919_v42, %v3635_v50  ;;  %v3673_v37 = vadd.f32 %v7919_v42, %v3634_v57 }
 0x1f0   :  { %2107 = vst.msk [vmem:[#allocation2 + $0xe0] sm:$0xff] %vm25_vm0, %v2074_v43  ;;  %v2075_v8 = vadd.f32 %v2035_v41, %v247_v31  ;;  %v5422_v59 = vadd.f32 %v5421_v51, %v5420_v61  ;;  %v5423_v56 = vpop.f32.mrb[126].mxu0  ;;  %v5533_v33 = vpop.f32.mrb[125].mxu1  ;;  %v3687_v0 = vadd.f32 %v7919_v42, %v3648_v3  ;;  %v2249_v3 = vld [vmem:[%s8866_s1 + $0x350] sm:$0xff] }
 0x1f1   :  { %v5424_v21 = vpop.f32.mrb[127].mxu0  ;;  %v5534_v19 = vadd.f32 %v5533_v33, %v5532_v62  ;;  %v5535_v5 = vpop.f32.mrb[126].mxu1  ;;  %v3649_v11 = vld [vmem:[#allocation2 + $0xd8] sm:$0xff]  ;;  %v2257_v50 = vld [vmem:[%s8866_s1 + $0x390] sm:$0xff] }
 0x1f2   :  { %2108 = vst.msk [vmem:[#allocation2 + $0xe8] sm:$0xff] %vm25_vm0, %v2075_v8  ;;  %v1879_v22 = vadd.f32 %v5422_v59, %v7717_v6  ;;  %v5425_v48 = vadd.f32 %v5424_v21, %v5423_v56  ;;  %v5536_v16 = vpop.f32.mrb[127].mxu1  ;;  %v3688_v14 = vadd.f32 %v7919_v42, %v3649_v11  ;;  %v8115_v6 = vld [vmem:[%s8866_s1 + $0x310] sm:$0xff]  ;;  %v3637_v56 = vld [vmem:[#allocation2 + $0x78] sm:$0xff] }
 0x1f3   :  { %v5537_v15 = vadd.f32 %v5536_v16, %v5535_v5  ;;  %3346 = vmatmul.mubr.bf16.gmra.mrb[232].mxu0 %v4980_v55  ;;  %v4997_v28 = vcombine.high %v8115_v6, %v8120_v35  ;;  %v6272_v55 = vpack.c.bf16 %v3674_v4, %v3673_v37  ;;  %v2253_v8 = vld [vmem:[%s8866_s1 + $0x370] sm:$0xff]  ;;  %v2250_v33 = vld [vmem:[%s8866_s1 + $0x358] sm:$0xff]  ;;  %v4996_v21 = vcombine.low %v8115_v6, %v8120_v35 }
 0x1f4   :  { %v1882_v24 = vadd.f32 %v5425_v48, %v7719_v12  ;;  %v2040_v27 = vadd.f32 %v5534_v19, %v1879_v22  ;;  %3507 = vmatmul.mubr.bf16.gmra.mrb[232].mxu1 %v4982_v2  ;;  %v6266_v58 = vpack.c.bf16 %v3688_v14, %v3687_v0  ;;  %3353 = vmatprep.mubr.bf16.mxu0 %v4989_v63  ;;  %v2254_v2 = vld [vmem:[%s8866_s1 + $0x378] sm:$0xff]  ;;  %v3636_v22 = vld [vmem:[#allocation2 + $0x70] sm:$0xff] }
 0x1f5   :  { %3514 = vmatprep.mubr.bf16.mxu1 %v4991_v30  ;;  %v4998_v30 = vcombine.low %v8125_v26, %v8130_v38  ;;  %v5005_v48 = vcombine.high %v2249_v3, %v2253_v8  ;;  %v5007_v25 = vcombine.high %v2250_v33, %v2254_v2  ;;  %v3675_v35 = vadd.f32 %v7919_v42, %v3636_v22  ;;  %v2261_v26 = vld [vmem:[%s8866_s1 + $0x3b0] sm:$0xff]  ;;  %v2270_v37 = vld [vmem:[%s8866_s1 + $0x3f8] sm:$0xff] }
 0x1f6   :  { %v2076_v46 = vadd.f32 %v2040_v27, %v248_v60  ;;  %v2043_v40 = vadd.f32 %v5537_v15, %v1882_v24  ;;  %v5554_v12 = vpop.f32.mrb[128].mxu0  ;;  %6267 = vmatprep.subr.bf16.mxu0 %v6266_v58  ;;  %v3676_v15 = vadd.f32 %v7919_v42, %v3637_v56 }
 0x1f7   :  { %v5666_v23 = vpop.f32.mrb[128].mxu1  ;;  %v5555_v13 = vpop.f32.mrb[129].mxu0  ;;  %6269 = vmatpush3.bf16.msra.mxu0 %v6268_v17  ;;  %v3650_v53 = vld [vmem:[#allocation2 + $0xe0] sm:$0xff] }
 0x1f8   :  { %2109 = vst.msk [vmem:[#allocation2 + $0xf0] sm:$0xff] %vm25_vm0, %v2076_v46  ;;  %v2077_v32 = vadd.f32 %v2043_v40, %v249_v20  ;;  %v5556_v1 = vadd.f32 %v5555_v13, %v5554_v12  ;;  %v5667_v34 = vpop.f32.mrb[129].mxu1  ;;  %v5557_v36 = vpop.f32.mrb[130].mxu0  ;;  %v3689_v41 = vadd.f32 %v7919_v42, %v3650_v53  ;;  %v6276_v12 = vpack.c.bf16 %v3676_v15, %v3675_v35 }
 0x1f9   :  { %v5668_v47 = vadd.f32 %v5667_v34, %v5666_v23  ;;  %v5669_v44 = vpop.f32.mrb[130].mxu1  ;;  %v5558_v52 = vpop.f32.mrb[131].mxu0  ;;  %v3651_v31 = vld [vmem:[#allocation2 + $0xe8] sm:$0xff]  ;;  %v2262_v23 = vld [vmem:[%s8866_s1 + $0x3b8] sm:$0xff]  ;;  %v5004_v53 = vcombine.low %v2249_v3, %v2253_v8  ;;  %v5012_v3 = vcombine.low %v2257_v50, %v2261_v26 }
 0x1fa   :  { %2110 = vst.msk [vmem:[#allocation2 + $0xf8] sm:$0xff] %vm25_vm0, %v2077_v32  ;;  %v5559_v39 = vadd.f32 %v5558_v52, %v5557_v36  ;;  %v5670_v43 = vpop.f32.mrb[131].mxu1  ;;  %v3690_v61 = vadd.f32 %v7919_v42, %v3651_v31  ;;  %v5006_v36 = vcombine.low %v2250_v33, %v2254_v2 }
 0x1fb   :  { %v8145_v7 = vadd.f32 %v5668_v47, %v5556_v1  ;;  %v5671_v49 = vadd.f32 %v5670_v43, %v5669_v44  ;;  %3354 = vmatmul.mubr.bf16.gmra.mrb[236].mxu0 %v4988_v54  ;;  %v2265_v43 = vld [vmem:[%s8866_s1 + $0x3d0] sm:$0xff] }
 0x1fc   :  { %3515 = vmatmul.mubr.bf16.gmra.mrb[236].mxu1 %v4990_v9  ;;  %v6270_v51 = vpack.c.bf16 %v3690_v61, %v3689_v41  ;;  %3361 = vmatprep.mubr.bf16.mxu0 %v4997_v28  ;;  %v5013_v9 = vcombine.high %v2257_v50, %v2261_v26  ;;  %v2269_v41 = vld [vmem:[%s8866_s1 + $0x3f0] sm:$0xff] }
 0x1fd   :  { %v8148_v62 = vadd.f32 %v5671_v49, %v5559_v39  ;;  %3522 = vmatprep.mubr.bf16.mxu1 %v4999_v29  ;;  %v2266_v49 = vld [vmem:[%s8866_s1 + $0x3d8] sm:$0xff]  ;;  %v5021_v2 = vcombine.high %v2265_v43, %v2269_v41 }
 0x1fe   :  { %v5560_v59 = vpop.f32.mrb[132].mxu0  ;;  %6271 = vmatprep.subr.bf16.mxu0 %v6270_v51 }
 0x1ff   :  { %v5672_v10 = vpop.f32.mrb[132].mxu1  ;;  %v5561_v63 = vpop.f32.mrb[133].mxu0  ;;  %6273 = vmatpush3.bf16.msra.mxu0 %v6272_v55  ;;  %v3652_v19 = vld [vmem:[#allocation2 + $0xf0] sm:$0xff] }
 0x200   :  { %v5562_v5 = vadd.f32 %v5561_v63, %v5560_v59  ;;  %v5673_v11 = vpop.f32.mrb[133].mxu1  ;;  %v5563_v45 = vpop.f32.mrb[134].mxu0  ;;  %v3691_v58 = vadd.f32 %v7919_v42, %v3652_v19  ;;  %v5023_v19 = vcombine.high %v2266_v49, %v2270_v37 }
 0x201   :  { %v5674_v16 = vadd.f32 %v5673_v11, %v5672_v10  ;;  %v5675_v0 = vpop.f32.mrb[134].mxu1  ;;  %v5564_v14 = vpop.f32.mrb[135].mxu0  ;;  %v3653_v60 = vld [vmem:[#allocation2 + $0xf8] sm:$0xff] }
 0x202   :  { %v5565_v24 = vadd.f32 %v5564_v14, %v5563_v45  ;;  %v5676_v27 = vpop.f32.mrb[135].mxu1  ;;  %v3692_v20 = vadd.f32 %v7919_v42, %v3653_v60  ;;  %v2258_v42 = vld [vmem:[%s8866_s1 + $0x398] sm:$0xff]  ;;  %v5020_v14 = vcombine.low %v2265_v43, %v2269_v41 }
 0x203   :  { %v8169_v17 = vadd.f32 %v5674_v16, %v5562_v5  ;;  %v5677_v6 = vadd.f32 %v5676_v27, %v5675_v0  ;;  %3362 = vmatmul.mubr.bf16.gmra.mrb[240].mxu0 %v4996_v21  ;;  %v5015_v44 = vcombine.high %v2258_v42, %v2262_v23  ;;  %v5014_v33 = vcombine.low %v2258_v42, %v2262_v23 }
 0x204   :  { %3523 = vmatmul.mubr.bf16.gmra.mrb[240].mxu1 %v4998_v30  ;;  %v6274_v46 = vpack.c.bf16 %v3692_v20, %v3691_v58  ;;  %3369 = vmatprep.mubr.bf16.mxu0 %v5005_v48 }
 0x205   :  { %v8172_v40 = vadd.f32 %v5677_v6, %v5565_v24  ;;  %3530 = vmatprep.mubr.bf16.mxu1 %v5007_v25  ;;  %v5022_v24 = vcombine.low %v2266_v49, %v2270_v37  ;;  %v3758_v6 = vld [vmem:[%s8868_s2 + $0x8] sm:$0xff] }
 0x206   :  { %v5566_v38 = vpop.f32.mrb[136].mxu0  ;;  %6275 = vmatprep.subr.bf16.mxu0 %v6274_v46 }
 0x207   :  { %v5678_v13 = vpop.f32.mrb[136].mxu1  ;;  %v5567_v54 = vpop.f32.mrb[137].mxu0  ;;  %6277 = vmatpush3.bf16.msra.mxu0 %v6276_v12 }
 0x208   :  { %v5568_v32 = vadd.f32 %v5567_v54, %v5566_v38  ;;  %v5679_v1 = vpop.f32.mrb[137].mxu1  ;;  %v5569_v34 = vpop.f32.mrb[138].mxu0 }
 0x209   :  { %v5680_v57 = vadd.f32 %v5679_v1, %v5678_v13  ;;  %v5681_v28 = vpop.f32.mrb[138].mxu1  ;;  %v5570_v47 = vpop.f32.mrb[139].mxu0 }
 0x20a   :  { %v5571_v52 = vadd.f32 %v5570_v47, %v5569_v34  ;;  %v5682_v31 = vpop.f32.mrb[139].mxu1 }
 0x20b   :  { %v8186_v4 = vadd.f32 %v5680_v57, %v5568_v32  ;;  %v5683_v29 = vadd.f32 %v5682_v31, %v5681_v28  ;;  %3370 = vmatmul.mubr.bf16.gmra.mrb[244].mxu0 %v5004_v53  ;;  %v3757_v32 = vld [vmem:[%s8868_s2] sm:$0xff] }
 0x20c   :  { %3531 = vmatmul.mubr.bf16.gmra.mrb[244].mxu1 %v5006_v36  ;;  %3377 = vmatprep.mubr.bf16.mxu0 %v5013_v9  ;;  %v3760_v9 = vld [vmem:[%s8868_s2 + $0x18] sm:$0xff] }
 0x20d   :  { %v8188_v39 = vadd.f32 %v5683_v29, %v5571_v52  ;;  %3538 = vmatprep.mubr.bf16.mxu1 %v5015_v44  ;;  %v3759_v52 = vld [vmem:[%s8868_s2 + $0x10] sm:$0xff]  ;;  %v3762_v29 = vld [vmem:[%s8868_s2 + $0x28] sm:$0xff] }
 0x20e   :  { %v5572_v61 = vpop.f32.mrb[140].mxu0 }
 0x20f   :  { %v5684_v51 = vpop.f32.mrb[140].mxu1  ;;  %v5573_v55 = vpop.f32.mrb[141].mxu0 }
 0x210   :  { %v5574_v8 = vadd.f32 %v5573_v55, %v5572_v61  ;;  %v5685_v59 = vpop.f32.mrb[141].mxu1  ;;  %v5575_v56 = vpop.f32.mrb[142].mxu0  ;;  %v3761_v55 = vld [vmem:[%s8868_s2 + $0x20] sm:$0xff] }
 0x211   :  { %v5686_v10 = vadd.f32 %v5685_v59, %v5684_v51  ;;  %v5687_v63 = vpop.f32.mrb[142].mxu1  ;;  %v5576_v21 = vpop.f32.mrb[143].mxu0 }
 0x212   :  { %v5577_v5 = vadd.f32 %v5576_v21, %v5575_v56  ;;  %v5688_v11 = vpop.f32.mrb[143].mxu1  ;;  %v3764_v56 = vld [vmem:[%s8868_s2 + $0x38] sm:$0xff]  ;;  %v3763_v21 = vld [vmem:[%s8868_s2 + $0x30] sm:$0xff] }
 0x213   :  { %v8202_v45 = vadd.f32 %v5686_v10, %v5574_v8  ;;  %v5689_v30 = vadd.f32 %v5688_v11, %v5687_v63  ;;  %3378 = vmatmul.mubr.bf16.gmra.mrb[248].mxu0 %v5012_v3 }
 0x214   :  { %3539 = vmatmul.mubr.bf16.gmra.mrb[248].mxu1 %v5014_v33  ;;  %3385 = vmatprep.mubr.bf16.mxu0 %v5021_v2 }
 0x215   :  { %v8204_v22 = vadd.f32 %v5689_v30, %v5577_v5  ;;  %3546 = vmatprep.mubr.bf16.mxu1 %v5023_v19  ;;  %v3766_v5 = vld [vmem:[%s8868_s2 + $0x48] sm:$0xff] }
 0x216   :  { %v5578_v48 = vpop.f32.mrb[144].mxu0 }
 0x217   :  { %v5690_v16 = vpop.f32.mrb[144].mxu1  ;;  %v5579_v0 = vpop.f32.mrb[145].mxu0 }
 0x218   :  { %v5580_v60 = vadd.f32 %v5579_v0, %v5578_v48  ;;  %v5691_v15 = vpop.f32.mrb[145].mxu1  ;;  %v5581_v25 = vpop.f32.mrb[146].mxu0 }
 0x219   :  { %v5692_v27 = vadd.f32 %v5691_v15, %v5690_v16  ;;  %v5693_v58 = vpop.f32.mrb[146].mxu1  ;;  %v5582_v20 = vpop.f32.mrb[147].mxu0 }
 0x21a   :  { %v5583_v35 = vadd.f32 %v5582_v20, %v5581_v25  ;;  %v5694_v46 = vpop.f32.mrb[147].mxu1 }
 0x21b   :  { %v8209_v12 = vadd.f32 %v5692_v27, %v5580_v60  ;;  %v5695_v50 = vadd.f32 %v5694_v46, %v5693_v58  ;;  %3386 = vmatmul.mubr.bf16.gmra.mrb[252].mxu0 %v5020_v14  ;;  %v3765_v60 = vld [vmem:[%s8868_s2 + $0x40] sm:$0xff]  ;;  %v3768_v27 = vld [vmem:[%s8868_s2 + $0x58] sm:$0xff]  ;;  %v3767_v46 = vld [vmem:[%s8868_s2 + $0x50] sm:$0xff] }
 0x21c   :  { %3547 = vmatmul.mubr.bf16.gmra.mrb[252].mxu1 %v5022_v24  ;;  %3853 = vmatprep.mubr.f32.mxu0 %v3758_v6 }
 0x21d   :  { %v8211_v26 = vadd.f32 %v5695_v50, %v5583_v35 }
 0x21e   :  { %v5584_v38 = vpop.f32.mrb[148].mxu0 }
 0x21f   :  { %v5696_v42 = vpop.f32.mrb[148].mxu1  ;;  %v5585_v23 = vpop.f32.mrb[149].mxu0 }
 0x220   :  { %v5586_v13 = vadd.f32 %v5585_v23, %v5584_v38  ;;  %v5697_v54 = vpop.f32.mrb[149].mxu1  ;;  %v5587_v53 = vpop.f32.mrb[150].mxu0  ;;  %v3770_v38 = vld [vmem:[%s8868_s2 + $0x68] sm:$0xff] }
 0x221   :  { %v5698_v1 = vadd.f32 %v5697_v54, %v5696_v42  ;;  %v5699_v34 = vpop.f32.mrb[150].mxu1  ;;  %v5588_v36 = vpop.f32.mrb[151].mxu0 }
 0x222   :  { %v5589_v57 = vadd.f32 %v5588_v36, %v5587_v53  ;;  %v5700_v28 = vpop.f32.mrb[151].mxu1 }
 0x223   :  { %v8219_v47 = vadd.f32 %v5698_v1, %v5586_v13  ;;  %v5701_v44 = vadd.f32 %v5700_v28, %v5699_v34  ;;  %3854 = vmatmul.mubr.f32.vlgmr.msra.gmra.mrb[0].mxu0 %v3757_v32  ;;  %v3769_v1 = vld [vmem:[%s8868_s2 + $0x60] sm:$0xff] }
 0x224   :  { %3858 = vmatprep.mubr.f32.mxu0 %v3760_v9 }
 0x225   :  { %v8224_v31 = vadd.f32 %v5701_v44, %v5589_v57  ;;  %v3772_v57 = vld [vmem:[%s8868_s2 + $0x78] sm:$0xff] }
 0x226   :  { %v5590_v43 = vpop.f32.mrb[152].mxu0 }
 0x227   :  { %v5702_v41 = vpop.f32.mrb[152].mxu1  ;;  %v5591_v61 = vpop.f32.mrb[153].mxu0  ;;  %3859 = vmatmul.mubr.f32.gmra.mrb[2].mxu0 %v3759_v52 }
 0x228   :  { %v5592_v49 = vadd.f32 %v5591_v61, %v5590_v43  ;;  %v5703_v37 = vpop.f32.mrb[153].mxu1  ;;  %v5593_v51 = vpop.f32.mrb[154].mxu0  ;;  %3863 = vmatprep.mubr.f32.mxu0 %v3762_v29  ;;  %v3771_v43 = vld [vmem:[%s8868_s2 + $0x70] sm:$0xff]  ;;  %v3774_v61 = vld [vmem:[%s8868_s2 + $0x88] sm:$0xff] }
 0x229   :  { %v5704_v3 = vadd.f32 %v5703_v37, %v5702_v41  ;;  %v5705_v8 = vpop.f32.mrb[154].mxu1  ;;  %v5594_v59 = vpop.f32.mrb[155].mxu0 }
 0x22a   :  { %v5595_v33 = vadd.f32 %v5594_v59, %v5593_v51  ;;  %v5706_v2 = vpop.f32.mrb[155].mxu1  ;;  %v3773_v59 = vld [vmem:[%s8868_s2 + $0x80] sm:$0xff] }
 0x22b   :  { %v8235_v10 = vadd.f32 %v5704_v3, %v5592_v49  ;;  %v5707_v63 = vadd.f32 %v5706_v2, %v5705_v8  ;;  %3864 = vmatmul.mubr.f32.gmra.mrb[4].mxu0 %v3761_v55 }
 0x22c   :  { %3868 = vmatprep.mubr.f32.mxu0 %v3764_v56 }
 0x22d   :  { %v8240_v19 = vadd.f32 %v5707_v63, %v5595_v33  ;;  %v3776_v63 = vld [vmem:[%s8868_s2 + $0x98] sm:$0xff] }
 0x22e   :  { %v5596_v11 = vpop.f32.mrb[156].mxu0 }
 0x22f   :  { %v5708_v30 = vpop.f32.mrb[156].mxu1  ;;  %v5597_v48 = vpop.f32.mrb[157].mxu0  ;;  %3869 = vmatmul.mubr.f32.gmra.mrb[6].mxu0 %v3763_v21 }
 0x230   :  { %v5598_v16 = vadd.f32 %v5597_v48, %v5596_v11  ;;  %v5709_v0 = vpop.f32.mrb[157].mxu1  ;;  %v5599_v14 = vpop.f32.mrb[158].mxu0  ;;  %3873 = vmatprep.mubr.f32.mxu0 %v3766_v5  ;;  %v3775_v48 = vld [vmem:[%s8868_s2 + $0x90] sm:$0xff] }
 0x231   :  { %v5710_v15 = vadd.f32 %v5709_v0, %v5708_v30  ;;  %v5711_v25 = vpop.f32.mrb[158].mxu1  ;;  %v5600_v24 = vpop.f32.mrb[159].mxu0  ;;  %v3778_v0 = vld [vmem:[%s8868_s2 + $0xa8] sm:$0xff] }
 0x232   :  { %v5601_v58 = vadd.f32 %v5600_v24, %v5599_v14  ;;  %v5712_v20 = vpop.f32.mrb[159].mxu1 }
 0x233   :  { %v8251_v6 = vadd.f32 %v5710_v15, %v5598_v16  ;;  %v5713_v35 = vadd.f32 %v5712_v20, %v5711_v25  ;;  %3874 = vmatmul.mubr.f32.gmra.mrb[8].mxu0 %v3765_v60 }
 0x234   :  { %3878 = vmatprep.mubr.f32.mxu0 %v3768_v27 }
 0x235   :  { %v8256_v50 = vadd.f32 %v5713_v35, %v5601_v58  ;;  %v3777_v58 = vld [vmem:[%s8868_s2 + $0xa0] sm:$0xff] }
 0x236   :  { %v5602_v42 = vpop.f32.mrb[160].mxu0 }
 0x237   :  { %v5714_v23 = vpop.f32.mrb[160].mxu1  ;;  %v5603_v13 = vpop.f32.mrb[161].mxu0  ;;  %3879 = vmatmul.mubr.f32.gmra.mrb[10].mxu0 %v3767_v46 }
 0x238   :  { %v5604_v54 = vadd.f32 %v5603_v13, %v5602_v42  ;;  %v5715_v53 = vpop.f32.mrb[161].mxu1  ;;  %v5605_v32 = vpop.f32.mrb[162].mxu0  ;;  %3883 = vmatprep.mubr.f32.mxu0 %v3770_v38  ;;  %v3780_v38 = vld [vmem:[%s8868_s2 + $0xb8] sm:$0xff] }
 0x239   :  { %v5716_v34 = vadd.f32 %v5715_v53, %v5714_v23  ;;  %v5717_v36 = vpop.f32.mrb[162].mxu1  ;;  %v5606_v9 = vpop.f32.mrb[163].mxu0  ;;  %v3779_v53 = vld [vmem:[%s8868_s2 + $0xb0] sm:$0xff] }
 0x23a   :  { %v5607_v28 = vadd.f32 %v5606_v9, %v5605_v32  ;;  %v5718_v44 = vpop.f32.mrb[163].mxu1 }
 0x23b   :  { %v8267_v52 = vadd.f32 %v5716_v34, %v5604_v54  ;;  %v5719_v29 = vadd.f32 %v5718_v44, %v5717_v36  ;;  %3884 = vmatmul.mubr.f32.gmra.mrb[12].mxu0 %v3769_v1  ;;  %v3782_v1 = vld [vmem:[%s8868_s2 + $0xc8] sm:$0xff] }
 0x23c   :  { %3888 = vmatprep.mubr.f32.mxu0 %v3772_v57 }
 0x23d   :  { %v8272_v41 = vadd.f32 %v5719_v29, %v5607_v28  ;;  %v3781_v29 = vld [vmem:[%s8868_s2 + $0xc0] sm:$0xff] }
 0x23e   :  { %v5608_v49 = vpop.f32.mrb[164].mxu0 }
 0x23f   :  { %v5720_v37 = vpop.f32.mrb[164].mxu1  ;;  %v5609_v51 = vpop.f32.mrb[165].mxu0  ;;  %3889 = vmatmul.mubr.f32.gmra.mrb[14].mxu0 %v3771_v43 }
 0x240   :  { %v5610_v55 = vadd.f32 %v5609_v51, %v5608_v49  ;;  %v5721_v3 = vpop.f32.mrb[165].mxu1  ;;  %v5611_v8 = vpop.f32.mrb[166].mxu0  ;;  %3893 = vmatprep.mubr.f32.mxu0 %v3774_v61 }
 0x241   :  { %v5722_v56 = vadd.f32 %v5721_v3, %v5720_v37  ;;  %v5723_v33 = vpop.f32.mrb[166].mxu1  ;;  %v5612_v2 = vpop.f32.mrb[167].mxu0  ;;  %v3784_v37 = vld [vmem:[%s8868_s2 + $0xd8] sm:$0xff] }
 0x242   :  { %v5613_v21 = vadd.f32 %v5612_v2, %v5611_v8  ;;  %v5724_v5 = vpop.f32.mrb[167].mxu1 }
 0x243   :  { %v8283_v11 = vadd.f32 %v5722_v56, %v5610_v55  ;;  %v5725_v30 = vadd.f32 %v5724_v5, %v5723_v33  ;;  %3894 = vmatmul.mubr.f32.gmra.mrb[16].mxu0 %v3773_v59  ;;  %v3783_v59 = vld [vmem:[%s8868_s2 + $0xd0] sm:$0xff]  ;;  %v3786_v33 = vld [vmem:[%s8868_s2 + $0xe8] sm:$0xff] }
 0x244   :  { %3898 = vmatprep.mubr.f32.mxu0 %v3776_v63 }
 0x245   :  { %v8288_v16 = vadd.f32 %v5725_v30, %v5613_v21 }
 0x246   :  { %v5614_v14 = vpop.f32.mrb[168].mxu0 }
 0x247   :  { %v5726_v60 = vpop.f32.mrb[168].mxu1  ;;  %v5615_v15 = vpop.f32.mrb[169].mxu0  ;;  %3899 = vmatmul.mubr.f32.gmra.mrb[18].mxu0 %v3775_v48 }
 0x248   :  { %v5616_v25 = vadd.f32 %v5615_v15, %v5614_v14  ;;  %v5727_v24 = vpop.f32.mrb[169].mxu1  ;;  %v5617_v27 = vpop.f32.mrb[170].mxu0  ;;  %3903 = vmatprep.mubr.f32.mxu0 %v3778_v0  ;;  %v3785_v0 = vld [vmem:[%s8868_s2 + $0xe0] sm:$0xff] }
 0x249   :  { %v5728_v20 = vadd.f32 %v5727_v24, %v5726_v60  ;;  %v5729_v35 = vpop.f32.mrb[170].mxu1  ;;  %v5618_v46 = vpop.f32.mrb[171].mxu0 }
 0x24a   :  { %v5619_v42 = vadd.f32 %v5618_v46, %v5617_v27  ;;  %v5730_v23 = vpop.f32.mrb[171].mxu1 }
 0x24b   :  { %v8299_v13 = vadd.f32 %v5728_v20, %v5616_v25  ;;  %v5731_v54 = vadd.f32 %v5730_v23, %v5729_v35  ;;  %3904 = vmatmul.mubr.f32.gmra.mrb[20].mxu0 %v3777_v58  ;;  %v3788_v25 = vld [vmem:[%s8868_s2 + $0xf8] sm:$0xff]  ;;  %v3787_v35 = vld [vmem:[%s8868_s2 + $0xf0] sm:$0xff] }
 0x24c   :  { %3908 = vmatprep.mubr.f32.mxu0 %v3780_v38 }
 0x24d   :  { %v8304_v32 = vadd.f32 %v5731_v54, %v5619_v42 }
 0x24e   :  { %v5620_v34 = vpop.f32.mrb[172].mxu0 }
 0x24f   :  { %v5732_v36 = vpop.f32.mrb[172].mxu1  ;;  %v5621_v9 = vpop.f32.mrb[173].mxu0  ;;  %3909 = vmatmul.mubr.f32.gmra.mrb[22].mxu0 %v3779_v53 }
 0x250   :  { %v5622_v57 = vadd.f32 %v5621_v9, %v5620_v34  ;;  %v5733_v28 = vpop.f32.mrb[173].mxu1  ;;  %v5623_v44 = vpop.f32.mrb[174].mxu0  ;;  %3913 = vmatprep.mubr.f32.mxu0 %v3782_v1 }
 0x251   :  { %v5734_v43 = vadd.f32 %v5733_v28, %v5732_v36  ;;  %v5735_v61 = vpop.f32.mrb[174].mxu1  ;;  %v5624_v49 = vpop.f32.mrb[175].mxu0 }
 0x252   :  { %v5625_v51 = vadd.f32 %v5624_v49, %v5623_v44  ;;  %v5736_v55 = vpop.f32.mrb[175].mxu1 }
 0x253   :  { %v8315_v3 = vadd.f32 %v5734_v43, %v5622_v57  ;;  %v5737_v8 = vadd.f32 %v5736_v55, %v5735_v61  ;;  %3914 = vmatmul.mubr.f32.gmra.mrb[24].mxu0 %v3781_v29 }
 0x254   :  { %3918 = vmatprep.mubr.f32.mxu0 %v3784_v37 }
 0x255   :  { %v8320_v56 = vadd.f32 %v5737_v8, %v5625_v51 }
 0x256   :  { %v5626_v2 = vpop.f32.mrb[176].mxu0 }
 0x257   :  { %v5738_v63 = vpop.f32.mrb[176].mxu1  ;;  %v5627_v21 = vpop.f32.mrb[177].mxu0  ;;  %3919 = vmatmul.mubr.f32.gmra.mrb[26].mxu0 %v3783_v59 }
 0x258   :  { %v5628_v5 = vadd.f32 %v5627_v21, %v5626_v2  ;;  %v5739_v30 = vpop.f32.mrb[177].mxu1  ;;  %v5629_v48 = vpop.f32.mrb[178].mxu0  ;;  %3923 = vmatprep.mubr.f32.mxu0 %v3786_v33 }
 0x259   :  { %v5740_v14 = vadd.f32 %v5739_v30, %v5738_v63  ;;  %v5741_v60 = vpop.f32.mrb[178].mxu1  ;;  %v5630_v15 = vpop.f32.mrb[179].mxu0 }
 0x25a   :  { %v5631_v24 = vadd.f32 %v5630_v15, %v5629_v48  ;;  %v5742_v27 = vpop.f32.mrb[179].mxu1 }
 0x25b   :  { %v8331_v58 = vadd.f32 %v5740_v14, %v5628_v5  ;;  %v5743_v20 = vadd.f32 %v5742_v27, %v5741_v60  ;;  %3924 = vmatmul.mubr.f32.gmra.mrb[28].mxu0 %v3785_v0 }
 0x25c   :  { %3928 = vmatprep.mubr.f32.mxu0 %v3788_v25 }
 0x25d   :  { %v8336_v46 = vadd.f32 %v5743_v20, %v5631_v24 }
 0x25e   :  { %v5632_v38 = vpop.f32.mrb[180].mxu0 }
 0x25f   :  { %v5744_v42 = vpop.f32.mrb[180].mxu1  ;;  %v5633_v23 = vpop.f32.mrb[181].mxu0  ;;  %3929 = vmatmul.mubr.f32.gmra.mrb[30].mxu0 %v3787_v35 }
 0x260   :  { %v5634_v54 = vadd.f32 %v5633_v23, %v5632_v38  ;;  %v5745_v53 = vpop.f32.mrb[181].mxu1  ;;  %v5635_v1 = vpop.f32.mrb[182].mxu0  ;;  %6243 = vmatprep.mubr.msk.f32.mxu0 %vm6459_vm1, %v6457_v18 }
 0x261   :  { %v5746_v34 = vadd.f32 %v5745_v53, %v5744_v42  ;;  %v5747_v36 = vpop.f32.mrb[182].mxu1  ;;  %v5636_v9 = vpop.f32.mrb[183].mxu0 }
 0x262   :  { %v5637_v57 = vadd.f32 %v5636_v9, %v5635_v1  ;;  %v5748_v28 = vpop.f32.mrb[183].mxu1 }
 0x263   :  { %v8338_v44 = vadd.f32 %v5746_v34, %v5634_v54  ;;  %v5749_v29 = vadd.f32 %v5748_v28, %v5747_v36 }
 0x265   :  { %v8340_v43 = vadd.f32 %v5749_v29, %v5637_v57 }
 0x266   :  { %v5638_v61 = vpop.f32.mrb[184].mxu0 }
 0x267   :  { %v5750_v49 = vpop.f32.mrb[184].mxu1  ;;  %v5639_v37 = vpop.f32.mrb[185].mxu0 }
 0x268   :  { %v5640_v51 = vadd.f32 %v5639_v37, %v5638_v61  ;;  %v5751_v55 = vpop.f32.mrb[185].mxu1  ;;  %v5641_v8 = vpop.f32.mrb[186].mxu0 }
 0x269   :  { %v5752_v59 = vadd.f32 %v5751_v55, %v5750_v49  ;;  %v5753_v33 = vpop.f32.mrb[186].mxu1  ;;  %v5642_v2 = vpop.f32.mrb[187].mxu0 }
 0x26a   :  { %v5643_v63 = vadd.f32 %v5642_v2, %v5641_v8  ;;  %v5754_v21 = vpop.f32.mrb[187].mxu1  ;;  %v2111_v8 = vld [vmem:[#allocation3] sm:$0xff] }
 0x26b   :  { %v8342_v5 = vadd.f32 %v5752_v59, %v5640_v51  ;;  %v5755_v30 = vadd.f32 %v5754_v21, %v5753_v33 }
 0x26d   :  { %v8344_v48 = vadd.f32 %v5755_v30, %v5643_v63  ;;  %v2112_v63 = vld [vmem:[#allocation3 + $0x8] sm:$0xff] }
 0x26e   :  { %v5644_v0 = vpop.f32.mrb[188].mxu0 }
 0x26f   :  { %v5756_v14 = vpop.f32.mrb[188].mxu1  ;;  %v5645_v60 = vpop.f32.mrb[189].mxu0 }
 0x270   :  { %v5646_v15 = vadd.f32 %v5645_v60, %v5644_v0  ;;  %v5757_v25 = vpop.f32.mrb[189].mxu1  ;;  %v5647_v24 = vpop.f32.mrb[190].mxu0 }
 0x271   :  { %v5758_v27 = vadd.f32 %v5757_v25, %v5756_v14  ;;  %v5759_v20 = vpop.f32.mrb[190].mxu1  ;;  %v5648_v35 = vpop.f32.mrb[191].mxu0 }
 0x272   :  { %v5649_v38 = vadd.f32 %v5648_v35, %v5647_v24  ;;  %v5760_v42 = vpop.f32.mrb[191].mxu1 }
 0x273   :  { %v8346_v23 = vadd.f32 %v5758_v27, %v5646_v15  ;;  %v5761_v54 = vadd.f32 %v5760_v42, %v5759_v20 }
 0x275   :  { %v8348_v53 = vadd.f32 %v5761_v54, %v5649_v38  ;;  %v6458_v54 = vmov 0.0|0.0  }
 0x276   :  { %v5778_v1 = vpop.f32.mrb[192].mxu0  ;;  %6326 = vmatprep.subr.bf16.mxu0 %v6458_v54 }
 0x277   :  { %v5779_v34 = vpop.f32.mrb[193].mxu0  ;;  %v5890_v36 = vpop.f32.mrb[192].mxu1 }
 0x278   :  { %v5780_v9 = vadd.f32 %v5779_v34, %v5778_v1  ;;  %v5781_v57 = vpop.f32.mrb[194].mxu0  ;;  %v5891_v28 = vpop.f32.mrb[193].mxu1  ;;  %v2113_v1 = vld [vmem:[#allocation3 + $0x10] sm:$0xff] }
 0x279   :  { %v5782_v29 = vpop.f32.mrb[195].mxu0  ;;  %v5892_v61 = vadd.f32 %v5891_v28, %v5890_v36  ;;  %v5893_v49 = vpop.f32.mrb[194].mxu1 }
 0x27a   :  { %v3268_v37 = vadd.f32 %v5780_v9, %v8145_v7  ;;  %v5783_v51 = vadd.f32 %v5782_v29, %v5781_v57  ;;  %v5894_v55 = vpop.f32.mrb[195].mxu1  ;;  %v2114_v57 = vld [vmem:[#allocation3 + $0x18] sm:$0xff] }
 0x27b   :  { %v5895_v59 = vadd.f32 %v5894_v55, %v5893_v49 }
 0x27c   :  { %v3271_v33 = vadd.f32 %v5783_v51, %v8148_v62  ;;  %v3429_v2 = vadd.f32 %v5892_v61, %v3268_v37 }
 0x27e   :  { %v3555_v21 = vadd.f32 %v3429_v2, %v2111_v8  ;;  %v3432_v30 = vadd.f32 %v5895_v59, %v3271_v33  ;;  %v5784_v0 = vpop.f32.mrb[196].mxu0  ;;  %v8361_v33 = vld [vmem:[%s8867_s4] ss:$0 sm:$0xff] }
 0x27f   :  { %v5785_v14 = vpop.f32.mrb[197].mxu0  ;;  %v5896_v60 = vpop.f32.mrb[196].mxu1 }
 0x280   :  { %3587 = vst.msk [vmem:[#allocation3] sm:$0xff] %vm25_vm0, %v3555_v21  ;;  %v3556_v15 = vadd.f32 %v3432_v30, %v2112_v63  ;;  %v5786_v25 = vadd.f32 %v5785_v14, %v5784_v0  ;;  %v5787_v24 = vpop.f32.mrb[198].mxu0  ;;  %v5897_v27 = vpop.f32.mrb[197].mxu1 }
 0x281   :  { %v5788_v7 = vpop.f32.mrb[199].mxu0  ;;  %v5898_v20 = vadd.f32 %v5897_v27, %v5896_v60  ;;  %v5899_v35 = vpop.f32.mrb[198].mxu1 }
 0x282   :  { %3588 = vst.msk [vmem:[#allocation3 + $0x8] sm:$0xff] %vm25_vm0, %v3556_v15  ;;  %v3276_v62 = vadd.f32 %v5786_v25, %v8169_v17  ;;  %v5789_v38 = vadd.f32 %v5788_v7, %v5787_v24  ;;  %v5900_v42 = vpop.f32.mrb[199].mxu1  ;;  %v2115_v24 = vld [vmem:[#allocation3 + $0x20] sm:$0xff] }
 0x283   :  { %v5901_v34 = vadd.f32 %v5900_v42, %v5899_v35 }
 0x284   :  { %v3279_v36 = vadd.f32 %v5789_v38, %v8172_v40  ;;  %v3437_v9 = vadd.f32 %v5898_v20, %v3276_v62  ;;  %v2116_v38 = vld [vmem:[#allocation3 + $0x28] sm:$0xff] }
 0x286   :  { %v3557_v28 = vadd.f32 %v3437_v9, %v2113_v1  ;;  %v3440_v29 = vadd.f32 %v5901_v34, %v3279_v36  ;;  %v5790_v61 = vpop.f32.mrb[200].mxu0 }
 0x287   :  { %v5791_v49 = vpop.f32.mrb[201].mxu0  ;;  %v5902_v37 = vpop.f32.mrb[200].mxu1  ;;  %v3693_v51 = vld [vmem:[#allocation3] sm:$0xff] }
 0x288   :  { %3589 = vst.msk [vmem:[#allocation3 + $0x10] sm:$0xff] %vm25_vm0, %v3557_v28  ;;  %v3558_v17 = vadd.f32 %v3440_v29, %v2114_v57  ;;  %v5792_v55 = vadd.f32 %v5791_v49, %v5790_v61  ;;  %v5793_v8 = vpop.f32.mrb[202].mxu0  ;;  %v5903_v59 = vpop.f32.mrb[201].mxu1  ;;  %v3725_v40 = vadd.f32 %v8361_v33, %v3693_v51 }
 0x289   :  { %v5794_v2 = vpop.f32.mrb[203].mxu0  ;;  %v5904_v63 = vadd.f32 %v5903_v59, %v5902_v37  ;;  %v5905_v21 = vpop.f32.mrb[202].mxu1  ;;  %v3694_v30 = vld [vmem:[#allocation3 + $0x8] sm:$0xff] }
 0x28a   :  { %3590 = vst.msk [vmem:[#allocation3 + $0x18] sm:$0xff] %vm25_vm0, %v3558_v17  ;;  %v3284_v0 = vadd.f32 %v5792_v55, %v8186_v4  ;;  %v5795_v14 = vadd.f32 %v5794_v2, %v5793_v8  ;;  %6163 = vmatprep.mubr.msk.f32.mxu1 %vm25_vm0, %v3725_v40  ;;  %v5906_v60 = vpop.f32.mrb[203].mxu1  ;;  %v4303_v15 = vmul.f32 %v3725_v40, %v3725_v40 }
 0x28b   :  { %v8368_v25 = vadd.f32 %v8361_v33, %v3694_v30  ;;  %v5907_v27 = vadd.f32 %v5906_v60, %v5905_v21  ;;  %v2117_v21 = vld [vmem:[#allocation3 + $0x30] sm:$0xff] }
 0x28c   :  { %v3287_v7 = vadd.f32 %v5795_v14, %v8188_v39  ;;  %v3445_v20 = vadd.f32 %v5904_v63, %v3284_v0  ;;  %v4335_v35 = vsel %vm25_vm0, %v4303_v15, 0.0 }
 0x28d   :  { %v4304_v62 = vmul.f32 %v8368_v25, %v8368_v25  ;;  %4336 = vadd.xlane.f32.xlu0 %v4335_v35 }
 0x28e   :  { %v3559_v4 = vadd.f32 %v3445_v20, %v2115_v24  ;;  %v3448_v42 = vadd.f32 %v5907_v27, %v3287_v7  ;;  %v5796_v1 = vpop.f32.mrb[204].mxu0  ;;  %v2118_v24 = vld [vmem:[#allocation3 + $0x38] sm:$0xff] }
 0x28f   :  { %v5797_v34 = vpop.f32.mrb[205].mxu0  ;;  %v5908_v36 = vpop.f32.mrb[204].mxu1  ;;  %v3695_v9 = vld [vmem:[#allocation3 + $0x10] sm:$0xff]  ;;  %v4338_v61 = vsel %vm25_vm0, %v4304_v62, 0.0 }
 0x290   :  { %3591 = vst.msk [vmem:[#allocation3 + $0x20] sm:$0xff] %vm25_vm0, %v3559_v4  ;;  %v3560_v57 = vadd.f32 %v3448_v42, %v2116_v38  ;;  %v5798_v28 = vadd.f32 %v5797_v34, %v5796_v1  ;;  %v5799_v29 = vpop.f32.mrb[206].mxu0  ;;  %v5909_v39 = vpop.f32.mrb[205].mxu1  ;;  %v8377_v49 = vadd.f32 %v8361_v33, %v3695_v9 }
 0x291   :  { %v5800_v37 = vpop.f32.mrb[207].mxu0  ;;  %v5910_v51 = vadd.f32 %v5909_v39, %v5908_v36  ;;  %4339 = vadd.xlane.f32.xlu0 %v4338_v61  ;;  %v5911_v17 = vpop.f32.mrb[206].mxu1  ;;  %v3696_v55 = vld [vmem:[#allocation3 + $0x18] sm:$0xff] }
 0x292   :  { %3592 = vst.msk [vmem:[#allocation3 + $0x28] sm:$0xff] %vm25_vm0, %v3560_v57  ;;  %v3292_v8 = vadd.f32 %v5798_v28, %v8202_v45  ;;  %v5801_v59 = vadd.f32 %v5800_v37, %v5799_v29  ;;  %v5912_v40 = vpop.f32.mrb[207].mxu1  ;;  %v4305_v2 = vmul.f32 %v8377_v49, %v8377_v49  ;;  %v8384_v63 = vadd.f32 %v8361_v33, %v3696_v55 }
 0x293   :  { %v5913_v30 = vadd.f32 %v5912_v40, %v5911_v17  ;;  %v2119_v17 = vld [vmem:[#allocation3 + $0x40] sm:$0xff] }
 0x294   :  { %v3295_v0 = vadd.f32 %v5801_v59, %v8204_v22  ;;  %v3453_v14 = vadd.f32 %v5910_v51, %v3292_v8  ;;  %v4341_v60 = vsel %vm25_vm0, %v4305_v2, 0.0  ;;  %v4306_v15 = vmul.f32 %v8384_v63, %v8384_v63 }
 0x295   :  { %4342 = vadd.xlane.f32.xlu1 %v4341_v60 }
 0x296   :  { %v3561_v45 = vadd.f32 %v3453_v14, %v2117_v21  ;;  %v3456_v27 = vadd.f32 %v5913_v30, %v3295_v0  ;;  %v5802_v7 = vpop.f32.mrb[208].mxu0  ;;  %v4344_v1 = vsel %vm25_vm0, %v4306_v15, 0.0  ;;  %v2120_v21 = vld [vmem:[#allocation3 + $0x48] sm:$0xff] }
 0x297   :  { %v5803_v20 = vpop.f32.mrb[209].mxu0  ;;  %v5914_v35 = vpop.f32.mrb[208].mxu1  ;;  %v3697_v62 = vld [vmem:[#allocation3 + $0x20] sm:$0xff] }
 0x298   :  { %3593 = vst.msk [vmem:[#allocation3 + $0x30] sm:$0xff] %vm25_vm0, %v3561_v45  ;;  %v3562_v38 = vadd.f32 %v3456_v27, %v2118_v24  ;;  %v5804_v4 = vadd.f32 %v5803_v20, %v5802_v7  ;;  %v5805_v42 = vpop.f32.mrb[210].mxu0  ;;  %v5915_v22 = vpop.f32.mrb[209].mxu1  ;;  %v8393_v34 = vadd.f32 %v8361_v33, %v3697_v62 }
 0x299   :  { %v5806_v36 = vpop.f32.mrb[211].mxu0  ;;  %v5916_v9 = vadd.f32 %v5915_v22, %v5914_v35  ;;  %4345 = vadd.xlane.f32.xlu1 %v4344_v1  ;;  %v5917_v57 = vpop.f32.mrb[210].mxu1  ;;  %v3698_v28 = vld [vmem:[#allocation3 + $0x28] sm:$0xff] }
 0x29a   :  { %3594 = vst.msk [vmem:[#allocation3 + $0x38] sm:$0xff] %vm25_vm0, %v3562_v38  ;;  %v3300_v29 = vadd.f32 %v5804_v4, %v8209_v12  ;;  %v5807_v39 = vadd.f32 %v5806_v36, %v5805_v42  ;;  %v5918_v61 = vpop.f32.mrb[211].mxu1  ;;  %v4307_v37 = vmul.f32 %v8393_v34, %v8393_v34  ;;  %v8400_v51 = vadd.f32 %v8361_v33, %v3698_v28 }
 0x29b   :  { %v5919_v55 = vadd.f32 %v5918_v61, %v5917_v57  ;;  %v2121_v57 = vld [vmem:[#allocation3 + $0x50] sm:$0xff] }
 0x29c   :  { %v3303_v8 = vadd.f32 %v5807_v39, %v8211_v26  ;;  %v3461_v59 = vadd.f32 %v5916_v9, %v3300_v29  ;;  %v4347_v40 = vsel %vm25_vm0, %v4307_v37, 0.0  ;;  %v4308_v2 = vmul.f32 %v8400_v51, %v8400_v51 }
 0x29d   :  { %4348 = vadd.xlane.f32.xlu0 %v4347_v40 }
 0x29e   :  { %v3563_v12 = vadd.f32 %v3461_v59, %v2119_v17  ;;  %v3464_v30 = vadd.f32 %v5919_v55, %v3303_v8  ;;  %v5808_v0 = vpop.f32.mrb[212].mxu0  ;;  %v4350_v14 = vsel %vm25_vm0, %v4308_v2, 0.0  ;;  %v2122_v17 = vld [vmem:[#allocation3 + $0x58] sm:$0xff] }
 0x29f   :  { %v5809_v60 = vpop.f32.mrb[213].mxu0  ;;  %4351 = vadd.xlane.f32.xlu1 %v4350_v14  ;;  %v5920_v15 = vpop.f32.mrb[212].mxu1  ;;  %v3699_v24 = vld [vmem:[#allocation3 + $0x30] sm:$0xff] }
 0x2a0   :  { %3595 = vst.msk [vmem:[#allocation3 + $0x40] sm:$0xff] %vm25_vm0, %v3563_v12  ;;  %v3564_v26 = vadd.f32 %v3464_v30, %v2120_v21  ;;  %v5810_v45 = vadd.f32 %v5809_v60, %v5808_v0  ;;  %v5811_v27 = vpop.f32.mrb[214].mxu0  ;;  %v5921_v7 = vpop.f32.mrb[213].mxu1  ;;  %v8409_v20 = vadd.f32 %v8361_v33, %v3699_v24 }
 0x2a1   :  { %v5812_v35 = vpop.f32.mrb[215].mxu0  ;;  %v5922_v62 = vadd.f32 %v5921_v7, %v5920_v15  ;;  %v5923_v38 = vpop.f32.mrb[214].mxu1  ;;  %v3700_v4 = vld [vmem:[#allocation3 + $0x38] sm:$0xff] }
 0x2a2   :  { %3596 = vst.msk [vmem:[#allocation3 + $0x48] sm:$0xff] %vm25_vm0, %v3564_v26  ;;  %v3308_v42 = vadd.f32 %v5810_v45, %v8219_v47  ;;  %v5813_v22 = vadd.f32 %v5812_v35, %v5811_v27  ;;  %v5924_v1 = vpop.f32.mrb[215].mxu1  ;;  %v4309_v36 = vmul.f32 %v8409_v20, %v8409_v20  ;;  %v8416_v9 = vadd.f32 %v8361_v33, %v3700_v4 }
 0x2a3   :  { %v5925_v28 = vadd.f32 %v5924_v1, %v5923_v38  ;;  %v2123_v38 = vld [vmem:[#allocation3 + $0x60] sm:$0xff] }
 0x2a4   :  { %v3311_v29 = vadd.f32 %v5813_v22, %v8224_v31  ;;  %v3469_v39 = vadd.f32 %v5922_v62, %v3308_v42  ;;  %v4353_v61 = vsel %vm25_vm0, %v4309_v36, 0.0  ;;  %v4310_v37 = vmul.f32 %v8416_v9, %v8416_v9 }
 0x2a5   :  { %4354 = vadd.xlane.f32.xlu0 %v4353_v61 }
 0x2a6   :  { %v3565_v47 = vadd.f32 %v3469_v39, %v2121_v57  ;;  %v3472_v55 = vadd.f32 %v5925_v28, %v3311_v29  ;;  %v5814_v8 = vpop.f32.mrb[216].mxu0  ;;  %v4356_v59 = vsel %vm25_vm0, %v4310_v37, 0.0  ;;  %v2124_v57 = vld [vmem:[#allocation3 + $0x68] sm:$0xff] }
 0x2a7   :  { %v5815_v40 = vpop.f32.mrb[217].mxu0  ;;  %4357 = vadd.xlane.f32.xlu1 %v4356_v59  ;;  %v5926_v2 = vpop.f32.mrb[216].mxu1  ;;  %v3701_v21 = vld [vmem:[#allocation3 + $0x40] sm:$0xff] }
 0x2a8   :  { %3597 = vst.msk [vmem:[#allocation3 + $0x50] sm:$0xff] %vm25_vm0, %v3565_v47  ;;  %v3566_v31 = vadd.f32 %v3472_v55, %v2122_v17  ;;  %v5816_v12 = vadd.f32 %v5815_v40, %v5814_v8  ;;  %v5817_v30 = vpop.f32.mrb[218].mxu0  ;;  %v5927_v0 = vpop.f32.mrb[217].mxu1  ;;  %v8425_v14 = vadd.f32 %v8361_v33, %v3701_v21 }
 0x2a9   :  { %v5818_v60 = vpop.f32.mrb[219].mxu0  ;;  %v5928_v15 = vadd.f32 %v5927_v0, %v5926_v2  ;;  %v5929_v24 = vpop.f32.mrb[218].mxu1  ;;  %v3702_v26 = vld [vmem:[#allocation3 + $0x48] sm:$0xff] }
 0x2aa   :  { %3598 = vst.msk [vmem:[#allocation3 + $0x58] sm:$0xff] %vm25_vm0, %v3566_v31  ;;  %v3316_v45 = vadd.f32 %v5816_v12, %v8235_v10  ;;  %v5819_v27 = vadd.f32 %v5818_v60, %v5817_v30  ;;  %v5930_v7 = vpop.f32.mrb[219].mxu1  ;;  %v4311_v35 = vmul.f32 %v8425_v14, %v8425_v14  ;;  %v8432_v62 = vadd.f32 %v8361_v33, %v3702_v26 }
 0x2ab   :  { %v5931_v4 = vadd.f32 %v5930_v7, %v5929_v24  ;;  %v2125_v24 = vld [vmem:[#allocation3 + $0x70] sm:$0xff] }
 0x2ac   :  { %v3319_v42 = vadd.f32 %v5819_v27, %v8240_v19  ;;  %v3477_v22 = vadd.f32 %v5928_v15, %v3316_v45  ;;  %v4359_v1 = vsel %vm25_vm0, %v4311_v35, 0.0  ;;  %v4312_v36 = vmul.f32 %v8432_v62, %v8432_v62 }
 0x2ad   :  { %4360 = vadd.xlane.f32.xlu0 %v4359_v1 }
 0x2ae   :  { %v3567_v10 = vadd.f32 %v3477_v22, %v2123_v38  ;;  %v3480_v28 = vadd.f32 %v5931_v4, %v3319_v42  ;;  %v5820_v29 = vpop.f32.mrb[220].mxu0  ;;  %v4362_v39 = vsel %vm25_vm0, %v4312_v36, 0.0  ;;  %v2126_v38 = vld [vmem:[#allocation3 + $0x78] sm:$0xff] }
 0x2af   :  { %v5821_v61 = vpop.f32.mrb[221].mxu0  ;;  %4363 = vadd.xlane.f32.xlu1 %v4362_v39  ;;  %v5932_v37 = vpop.f32.mrb[220].mxu1  ;;  %v3703_v17 = vld [vmem:[#allocation3 + $0x50] sm:$0xff] }
 0x2b0   :  { %3599 = vst.msk [vmem:[#allocation3 + $0x60] sm:$0xff] %vm25_vm0, %v3567_v10  ;;  %v3568_v19 = vadd.f32 %v3480_v28, %v2124_v57  ;;  %v5822_v47 = vadd.f32 %v5821_v61, %v5820_v29  ;;  %v5823_v55 = vpop.f32.mrb[222].mxu0  ;;  %v5933_v8 = vpop.f32.mrb[221].mxu1  ;;  %v8441_v59 = vadd.f32 %v8361_v33, %v3703_v17 }
 0x2b1   :  { %v5824_v40 = vpop.f32.mrb[223].mxu0  ;;  %v5934_v2 = vadd.f32 %v5933_v8, %v5932_v37  ;;  %v5935_v21 = vpop.f32.mrb[222].mxu1  ;;  %v3704_v31 = vld [vmem:[#allocation3 + $0x58] sm:$0xff] }
 0x2b2   :  { %3600 = vst.msk [vmem:[#allocation3 + $0x68] sm:$0xff] %vm25_vm0, %v3568_v19  ;;  %v3324_v12 = vadd.f32 %v5822_v47, %v8251_v6  ;;  %v5825_v30 = vadd.f32 %v5824_v40, %v5823_v55  ;;  %v5936_v0 = vpop.f32.mrb[223].mxu1  ;;  %v4313_v60 = vmul.f32 %v8441_v59, %v8441_v59  ;;  %v8448_v15 = vadd.f32 %v8361_v33, %v3704_v31 }
 0x2b3   :  { %v5937_v26 = vadd.f32 %v5936_v0, %v5935_v21  ;;  %v2127_v21 = vld [vmem:[#allocation3 + $0x80] sm:$0xff] }
 0x2b4   :  { %v3327_v45 = vadd.f32 %v5825_v30, %v8256_v50  ;;  %v3485_v27 = vadd.f32 %v5934_v2, %v3324_v12  ;;  %v4365_v7 = vsel %vm25_vm0, %v4313_v60, 0.0  ;;  %v4314_v35 = vmul.f32 %v8448_v15, %v8448_v15 }
 0x2b5   :  { %4366 = vadd.xlane.f32.xlu0 %v4365_v7 }
 0x2b6   :  { %v3569_v6 = vadd.f32 %v3485_v27, %v2125_v24  ;;  %v3488_v4 = vadd.f32 %v5937_v26, %v3327_v45  ;;  %v5826_v42 = vpop.f32.mrb[224].mxu0  ;;  %v4368_v22 = vsel %vm25_vm0, %v4314_v35, 0.0  ;;  %v2128_v24 = vld [vmem:[#allocation3 + $0x88] sm:$0xff] }
 0x2b7   :  { %v5827_v1 = vpop.f32.mrb[225].mxu0  ;;  %4369 = vadd.xlane.f32.xlu1 %v4368_v22  ;;  %v5938_v36 = vpop.f32.mrb[224].mxu1  ;;  %v3705_v57 = vld [vmem:[#allocation3 + $0x60] sm:$0xff] }
 0x2b8   :  { %3601 = vst.msk [vmem:[#allocation3 + $0x70] sm:$0xff] %vm25_vm0, %v3569_v6  ;;  %v3570_v50 = vadd.f32 %v3488_v4, %v2126_v38  ;;  %v5828_v10 = vadd.f32 %v5827_v1, %v5826_v42  ;;  %v5829_v28 = vpop.f32.mrb[226].mxu0  ;;  %v5939_v29 = vpop.f32.mrb[225].mxu1  ;;  %v8457_v39 = vadd.f32 %v8361_v33, %v3705_v57 }
 0x2b9   :  { %v5830_v61 = vpop.f32.mrb[227].mxu0  ;;  %v5940_v37 = vadd.f32 %v5939_v29, %v5938_v36  ;;  %v5941_v17 = vpop.f32.mrb[226].mxu1  ;;  %v3706_v19 = vld [vmem:[#allocation3 + $0x68] sm:$0xff] }
 0x2ba   :  { %3602 = vst.msk [vmem:[#allocation3 + $0x78] sm:$0xff] %vm25_vm0, %v3570_v50  ;;  %v3332_v47 = vadd.f32 %v5828_v10, %v8267_v52  ;;  %v5831_v55 = vadd.f32 %v5830_v61, %v5829_v28  ;;  %v5942_v8 = vpop.f32.mrb[227].mxu1  ;;  %v4315_v40 = vmul.f32 %v8457_v39, %v8457_v39  ;;  %v8464_v2 = vadd.f32 %v8361_v33, %v3706_v19 }
 0x2bb   :  { %v5943_v31 = vadd.f32 %v5942_v8, %v5941_v17  ;;  %v2129_v17 = vld [vmem:[#allocation3 + $0x90] sm:$0xff] }
 0x2bc   :  { %v3335_v12 = vadd.f32 %v5831_v55, %v8272_v41  ;;  %v3493_v30 = vadd.f32 %v5940_v37, %v3332_v47  ;;  %v4371_v0 = vsel %vm25_vm0, %v4315_v40, 0.0  ;;  %v4316_v60 = vmul.f32 %v8464_v2, %v8464_v2  ;;  %v2130_v40 = vld [vmem:[#allocation3 + $0x98] sm:$0xff] }
 0x2bd   :  { %4372 = vadd.xlane.f32.xlu0 %v4371_v0 }
 0x2be   :  { %v3571_v52 = vadd.f32 %v3493_v30, %v2127_v21  ;;  %v3496_v26 = vadd.f32 %v5943_v31, %v3335_v12  ;;  %v5832_v45 = vpop.f32.mrb[228].mxu0  ;;  %v4374_v27 = vsel %vm25_vm0, %v4316_v60, 0.0 }
 0x2bf   :  { %v5833_v7 = vpop.f32.mrb[229].mxu0  ;;  %4375 = vadd.xlane.f32.xlu1 %v4374_v27  ;;  %v5944_v35 = vpop.f32.mrb[228].mxu1  ;;  %v3707_v38 = vld [vmem:[#allocation3 + $0x70] sm:$0xff] }
 0x2c0   :  { %3603 = vst.msk [vmem:[#allocation3 + $0x80] sm:$0xff] %vm25_vm0, %v3571_v52  ;;  %v3572_v41 = vadd.f32 %v3496_v26, %v2128_v24  ;;  %v5834_v6 = vadd.f32 %v5833_v7, %v5832_v45  ;;  %v5835_v4 = vpop.f32.mrb[230].mxu0  ;;  %v5945_v42 = vpop.f32.mrb[229].mxu1  ;;  %v8473_v22 = vadd.f32 %v8361_v33, %v3707_v38 }
 0x2c1   :  { %v5836_v1 = vpop.f32.mrb[231].mxu0  ;;  %v5946_v36 = vadd.f32 %v5945_v42, %v5944_v35  ;;  %v5947_v57 = vpop.f32.mrb[230].mxu1  ;;  %v3708_v50 = vld [vmem:[#allocation3 + $0x78] sm:$0xff] }
 0x2c2   :  { %3604 = vst.msk [vmem:[#allocation3 + $0x88] sm:$0xff] %vm25_vm0, %v3572_v41  ;;  %v3340_v10 = vadd.f32 %v5834_v6, %v8283_v11  ;;  %v5837_v28 = vadd.f32 %v5836_v1, %v5835_v4  ;;  %v5948_v29 = vpop.f32.mrb[231].mxu1  ;;  %v4317_v61 = vmul.f32 %v8473_v22, %v8473_v22  ;;  %v8480_v37 = vadd.f32 %v8361_v33, %v3708_v50 }
 0x2c3   :  { %v5949_v19 = vadd.f32 %v5948_v29, %v5947_v57 }
 0x2c4   :  { %v3343_v47 = vadd.f32 %v5837_v28, %v8288_v16  ;;  %v3501_v55 = vadd.f32 %v5946_v36, %v3340_v10  ;;  %v4377_v8 = vsel %vm25_vm0, %v4317_v61, 0.0  ;;  %v4318_v11 = vmul.f32 %v8480_v37, %v8480_v37  ;;  %v2131_v36 = vld [vmem:[#allocation3 + $0xa0] sm:$0xff]  ;;  %v2132_v61 = vld [vmem:[#allocation3 + $0xa8] sm:$0xff] }
 0x2c5   :  { %4378 = vadd.xlane.f32.xlu0 %v4377_v8 }
 0x2c6   :  { %v3573_v21 = vadd.f32 %v3501_v55, %v2129_v17  ;;  %v3504_v31 = vadd.f32 %v5949_v19, %v3343_v47  ;;  %v5838_v12 = vpop.f32.mrb[232].mxu0  ;;  %v4380_v30 = vsel %vm25_vm0, %v4318_v11, 0.0 }
 0x2c7   :  { %v5839_v0 = vpop.f32.mrb[233].mxu0  ;;  %4381 = vadd.xlane.f32.xlu1 %v4380_v30  ;;  %v5950_v18 = vpop.f32.mrb[232].mxu1  ;;  %v3709_v60 = vld [vmem:[#allocation3 + $0x80] sm:$0xff] }
 0x2c8   :  { %3605 = vst.msk [vmem:[#allocation3 + $0x90] sm:$0xff] %vm25_vm0, %v3573_v21  ;;  %v3574_v16 = vadd.f32 %v3504_v31, %v2130_v40  ;;  %v5840_v24 = vadd.f32 %v5839_v0, %v5838_v12  ;;  %v5841_v52 = vpop.f32.mrb[234].mxu0  ;;  %v5951_v26 = vpop.f32.mrb[233].mxu1  ;;  %v8490_v45 = vadd.f32 %v8361_v33, %v3709_v60 }
 0x2c9   :  { %v5842_v27 = vpop.f32.mrb[235].mxu0  ;;  %v5952_v7 = vadd.f32 %v5951_v26, %v5950_v18  ;;  %v5953_v35 = vpop.f32.mrb[234].mxu1  ;;  %v3710_v38 = vld [vmem:[#allocation3 + $0x88] sm:$0xff] }
 0x2ca   :  { %3606 = vst.msk [vmem:[#allocation3 + $0x98] sm:$0xff] %vm25_vm0, %v3574_v16  ;;  %v3348_v41 = vadd.f32 %v5840_v24, %v8299_v13  ;;  %v5843_v6 = vadd.f32 %v5842_v27, %v5841_v52  ;;  %v5954_v4 = vpop.f32.mrb[235].mxu1  ;;  %v4319_v42 = vmul.f32 %v8490_v45, %v8490_v45  ;;  %v8497_v1 = vadd.f32 %v8361_v33, %v3710_v38 }
 0x2cb   :  { %v5955_v57 = vadd.f32 %v5954_v4, %v5953_v35 }
 0x2cc   :  { %v3351_v50 = vadd.f32 %v5843_v6, %v8304_v32  ;;  %v3509_v10 = vadd.f32 %v5952_v7, %v3348_v41  ;;  %v4383_v28 = vsel %vm25_vm0, %v4319_v42, 0.0  ;;  %v4320_v29 = vmul.f32 %v8497_v1, %v8497_v1  ;;  %v2133_v7 = vld [vmem:[#allocation3 + $0xb0] sm:$0xff]  ;;  %v2134_v42 = vld [vmem:[#allocation3 + $0xb8] sm:$0xff] }
 0x2cd   :  { %4384 = vadd.xlane.f32.xlu0 %v4383_v28 }
 0x2ce   :  { %v3575_v13 = vadd.f32 %v3509_v10, %v2131_v36  ;;  %v3512_v17 = vadd.f32 %v5955_v57, %v3351_v50  ;;  %v5844_v19 = vpop.f32.mrb[236].mxu0  ;;  %v4386_v47 = vsel %vm25_vm0, %v4320_v29, 0.0 }
 0x2cf   :  { %v5845_v55 = vpop.f32.mrb[237].mxu0  ;;  %4387 = vadd.xlane.f32.xlu1 %v4386_v47  ;;  %v5956_v8 = vpop.f32.mrb[236].mxu1  ;;  %v3711_v11 = vld [vmem:[#allocation3 + $0x90] sm:$0xff] }
 0x2d0   :  { %3607 = vst.msk [vmem:[#allocation3 + $0xa0] sm:$0xff] %vm25_vm0, %v3575_v13  ;;  %v3576_v32 = vadd.f32 %v3512_v17, %v2132_v61  ;;  %v5846_v40 = vadd.f32 %v5845_v55, %v5844_v19  ;;  %v5847_v21 = vpop.f32.mrb[238].mxu0  ;;  %v5957_v31 = vpop.f32.mrb[237].mxu1  ;;  %v8506_v12 = vadd.f32 %v8361_v33, %v3711_v11 }
 0x2d1   :  { %v5848_v30 = vpop.f32.mrb[239].mxu0  ;;  %v5958_v0 = vadd.f32 %v5957_v31, %v5956_v8  ;;  %v5959_v18 = vpop.f32.mrb[238].mxu1  ;;  %v3712_v60 = vld [vmem:[#allocation3 + $0x98] sm:$0xff] }
 0x2d2   :  { %3608 = vst.msk [vmem:[#allocation3 + $0xa8] sm:$0xff] %vm25_vm0, %v3576_v32  ;;  %v3356_v16 = vadd.f32 %v5846_v40, %v8315_v3  ;;  %v5849_v24 = vadd.f32 %v5848_v30, %v5847_v21  ;;  %v5960_v52 = vpop.f32.mrb[239].mxu1  ;;  %v4321_v26 = vmul.f32 %v8506_v12, %v8506_v12  ;;  %v8513_v27 = vadd.f32 %v8361_v33, %v3712_v60 }
 0x2d3   :  { %v5961_v35 = vadd.f32 %v5960_v52, %v5959_v18 }
 0x2d4   :  { %v3359_v38 = vadd.f32 %v5849_v24, %v8320_v56  ;;  %v3517_v41 = vadd.f32 %v5958_v0, %v3356_v16  ;;  %v4389_v6 = vsel %vm25_vm0, %v4321_v26, 0.0  ;;  %v4322_v4 = vmul.f32 %v8513_v27, %v8513_v27  ;;  %v2135_v0 = vld [vmem:[#allocation3 + $0xc0] sm:$0xff]  ;;  %v2136_v26 = vld [vmem:[#allocation3 + $0xc8] sm:$0xff] }
 0x2d5   :  { %4390 = vadd.xlane.f32.xlu0 %v4389_v6 }
 0x2d6   :  { %v3577_v3 = vadd.f32 %v3517_v41, %v2133_v7  ;;  %v3520_v36 = vadd.f32 %v5961_v35, %v3359_v38  ;;  %v5850_v57 = vpop.f32.mrb[240].mxu0  ;;  %v4392_v50 = vsel %vm25_vm0, %v4322_v4, 0.0 }
 0x2d7   :  { %v5851_v10 = vpop.f32.mrb[241].mxu0  ;;  %4393 = vadd.xlane.f32.xlu1 %v4392_v50  ;;  %v5962_v28 = vpop.f32.mrb[240].mxu1  ;;  %v3713_v29 = vld [vmem:[#allocation3 + $0xa0] sm:$0xff] }
 0x2d8   :  { %3609 = vst.msk [vmem:[#allocation3 + $0xb0] sm:$0xff] %vm25_vm0, %v3577_v3  ;;  %v3578_v56 = vadd.f32 %v3520_v36, %v2134_v42  ;;  %v5852_v61 = vadd.f32 %v5851_v10, %v5850_v57  ;;  %v5853_v13 = vpop.f32.mrb[242].mxu0  ;;  %v5963_v17 = vpop.f32.mrb[241].mxu1  ;;  %v8522_v19 = vadd.f32 %v8361_v33, %v3713_v29 }
 0x2d9   :  { %v5854_v47 = vpop.f32.mrb[243].mxu0  ;;  %v5964_v55 = vadd.f32 %v5963_v17, %v5962_v28  ;;  %v5965_v8 = vpop.f32.mrb[242].mxu1  ;;  %v3714_v11 = vld [vmem:[#allocation3 + $0xa8] sm:$0xff] }
 0x2da   :  { %3610 = vst.msk [vmem:[#allocation3 + $0xb8] sm:$0xff] %vm25_vm0, %v3578_v56  ;;  %v3364_v32 = vadd.f32 %v5852_v61, %v8331_v58  ;;  %v5855_v40 = vadd.f32 %v5854_v47, %v5853_v13  ;;  %v5966_v21 = vpop.f32.mrb[243].mxu1  ;;  %v4323_v31 = vmul.f32 %v8522_v19, %v8522_v19  ;;  %v8529_v30 = vadd.f32 %v8361_v33, %v3714_v11 }
 0x2db   :  { %v5967_v18 = vadd.f32 %v5966_v21, %v5965_v8 }
 0x2dc   :  { %v3367_v60 = vadd.f32 %v5855_v40, %v8336_v46  ;;  %v3525_v16 = vadd.f32 %v5964_v55, %v3364_v32  ;;  %v4395_v24 = vsel %vm25_vm0, %v4323_v31, 0.0  ;;  %v4324_v52 = vmul.f32 %v8529_v30, %v8529_v30  ;;  %v2137_v55 = vld [vmem:[#allocation3 + $0xd0] sm:$0xff]  ;;  %v2138_v31 = vld [vmem:[#allocation3 + $0xd8] sm:$0xff] }
 0x2dd   :  { %4396 = vadd.xlane.f32.xlu0 %v4395_v24 }
 0x2de   :  { %v3579_v58 = vadd.f32 %v3525_v16, %v2135_v0  ;;  %v3528_v7 = vadd.f32 %v5967_v18, %v3367_v60  ;;  %v5856_v35 = vpop.f32.mrb[244].mxu0  ;;  %v4398_v38 = vsel %vm25_vm0, %v4324_v52, 0.0 }
 0x2df   :  { %v5857_v41 = vpop.f32.mrb[245].mxu0  ;;  %4399 = vadd.xlane.f32.xlu1 %v4398_v38  ;;  %v5968_v6 = vpop.f32.mrb[244].mxu1  ;;  %v3715_v4 = vld [vmem:[#allocation3 + $0xb0] sm:$0xff] }
 0x2e0   :  { %3611 = vst.msk [vmem:[#allocation3 + $0xc0] sm:$0xff] %vm25_vm0, %v3579_v58  ;;  %v3580_v46 = vadd.f32 %v3528_v7, %v2136_v26  ;;  %v5858_v42 = vadd.f32 %v5857_v41, %v5856_v35  ;;  %v5859_v3 = vpop.f32.mrb[246].mxu0  ;;  %v5969_v36 = vpop.f32.mrb[245].mxu1  ;;  %v8538_v57 = vadd.f32 %v8361_v33, %v3715_v4 }
 0x2e1   :  { %v5860_v50 = vpop.f32.mrb[247].mxu0  ;;  %v5970_v10 = vadd.f32 %v5969_v36, %v5968_v6  ;;  %v5971_v28 = vpop.f32.mrb[246].mxu1  ;;  %v3716_v29 = vld [vmem:[#allocation3 + $0xb8] sm:$0xff] }
 0x2e2   :  { %3612 = vst.msk [vmem:[#allocation3 + $0xc8] sm:$0xff] %vm25_vm0, %v3580_v46  ;;  %v3372_v56 = vadd.f32 %v5858_v42, %v8338_v44  ;;  %v5861_v61 = vadd.f32 %v5860_v50, %v5859_v3  ;;  %v5972_v13 = vpop.f32.mrb[247].mxu1  ;;  %v4325_v17 = vmul.f32 %v8538_v57, %v8538_v57  ;;  %v8545_v47 = vadd.f32 %v8361_v33, %v3716_v29 }
 0x2e3   :  { %v5973_v8 = vadd.f32 %v5972_v13, %v5971_v28 }
 0x2e4   :  { %v3375_v11 = vadd.f32 %v5861_v61, %v8340_v43  ;;  %v3533_v32 = vadd.f32 %v5970_v10, %v3372_v56  ;;  %v4401_v40 = vsel %vm25_vm0, %v4325_v17, 0.0  ;;  %v4326_v21 = vmul.f32 %v8545_v47, %v8545_v47  ;;  %v2139_v10 = vld [vmem:[#allocation3 + $0xe0] sm:$0xff]  ;;  %v2140_v17 = vld [vmem:[#allocation3 + $0xe8] sm:$0xff] }
 0x2e5   :  { %4402 = vadd.xlane.f32.xlu0 %v4401_v40 }
 0x2e6   :  { %v3581_v44 = vadd.f32 %v3533_v32, %v2137_v55  ;;  %v3536_v0 = vadd.f32 %v5973_v8, %v3375_v11  ;;  %v5862_v18 = vpop.f32.mrb[248].mxu0  ;;  %v4404_v60 = vsel %vm25_vm0, %v4326_v21, 0.0 }
 0x2e7   :  { %v5863_v16 = vpop.f32.mrb[249].mxu0  ;;  %4405 = vadd.xlane.f32.xlu1 %v4404_v60  ;;  %v5974_v24 = vpop.f32.mrb[248].mxu1  ;;  %v3717_v52 = vld [vmem:[#allocation3 + $0xc0] sm:$0xff] }
 0x2e8   :  { %3613 = vst.msk [vmem:[#allocation3 + $0xd0] sm:$0xff] %vm25_vm0, %v3581_v44  ;;  %v3582_v43 = vadd.f32 %v3536_v0, %v2138_v31  ;;  %v5864_v26 = vadd.f32 %v5863_v16, %v5862_v18  ;;  %v5865_v58 = vpop.f32.mrb[250].mxu0  ;;  %v5975_v7 = vpop.f32.mrb[249].mxu1  ;;  %v8554_v35 = vadd.f32 %v8361_v33, %v3717_v52 }
 0x2e9   :  { %v5866_v38 = vpop.f32.mrb[251].mxu0  ;;  %v5976_v41 = vadd.f32 %v5975_v7, %v5974_v24  ;;  %v5977_v6 = vpop.f32.mrb[250].mxu1  ;;  %v3718_v4 = vld [vmem:[#allocation3 + $0xc8] sm:$0xff] }
 0x2ea   :  { %3614 = vst.msk [vmem:[#allocation3 + $0xd8] sm:$0xff] %vm25_vm0, %v3582_v43  ;;  %v3380_v46 = vadd.f32 %v5864_v26, %v8342_v5  ;;  %v5867_v42 = vadd.f32 %v5866_v38, %v5865_v58  ;;  %v5978_v3 = vpop.f32.mrb[251].mxu1  ;;  %v4327_v36 = vmul.f32 %v8554_v35, %v8554_v35  ;;  %v8561_v50 = vadd.f32 %v8361_v33, %v3718_v4 }
 0x2eb   :  { %v5979_v28 = vadd.f32 %v5978_v3, %v5977_v6 }
 0x2ec   :  { %v3383_v29 = vadd.f32 %v5867_v42, %v8344_v48  ;;  %v3541_v56 = vadd.f32 %v5976_v41, %v3380_v46  ;;  %v4407_v61 = vsel %vm25_vm0, %v4327_v36, 0.0  ;;  %v4328_v13 = vmul.f32 %v8561_v50, %v8561_v50  ;;  %v2141_v41 = vld [vmem:[#allocation3 + $0xf0] sm:$0xff]  ;;  %v2142_v36 = vld [vmem:[#allocation3 + $0xf8] sm:$0xff] }
 0x2ed   :  { %4408 = vadd.xlane.f32.xlu0 %v4407_v61 }
 0x2ee   :  { %v3583_v5 = vadd.f32 %v3541_v56, %v2139_v10  ;;  %v3544_v55 = vadd.f32 %v5979_v28, %v3383_v29  ;;  %v5868_v8 = vpop.f32.mrb[252].mxu0  ;;  %v4410_v11 = vsel %vm25_vm0, %v4328_v13, 0.0 }
 0x2ef   :  { %v5869_v32 = vpop.f32.mrb[253].mxu0  ;;  %4411 = vadd.xlane.f32.xlu1 %v4410_v11  ;;  %v5980_v40 = vpop.f32.mrb[252].mxu1  ;;  %v3719_v21 = vld [vmem:[#allocation3 + $0xd0] sm:$0xff] }
 0x2f0   :  { %3615 = vst.msk [vmem:[#allocation3 + $0xe0] sm:$0xff] %vm25_vm0, %v3583_v5  ;;  %v3584_v48 = vadd.f32 %v3544_v55, %v2140_v17  ;;  %v5870_v31 = vadd.f32 %v5869_v32, %v5868_v8  ;;  %v5871_v44 = vpop.f32.mrb[254].mxu0  ;;  %v5981_v0 = vpop.f32.mrb[253].mxu1  ;;  %v8570_v18 = vadd.f32 %v8361_v33, %v3719_v21 }
 0x2f1   :  { %v5872_v60 = vpop.f32.mrb[255].mxu0  ;;  %v5982_v16 = vadd.f32 %v5981_v0, %v5980_v40  ;;  %v5983_v24 = vpop.f32.mrb[254].mxu1  ;;  %v3720_v52 = vld [vmem:[#allocation3 + $0xd8] sm:$0xff] }
 0x2f2   :  { %3616 = vst.msk [vmem:[#allocation3 + $0xe8] sm:$0xff] %vm25_vm0, %v3584_v48  ;;  %v3388_v43 = vadd.f32 %v5870_v31, %v8346_v23  ;;  %v5873_v26 = vadd.f32 %v5872_v60, %v5871_v44  ;;  %v5984_v58 = vpop.f32.mrb[255].mxu1  ;;  %v4329_v7 = vmul.f32 %v8570_v18, %v8570_v18  ;;  %v8577_v38 = vadd.f32 %v8361_v33, %v3720_v52 }
 0x2f3   :  { %v5985_v6 = vadd.f32 %v5984_v58, %v5983_v24 }
 0x2f4   :  { %v3391_v4 = vadd.f32 %v5873_v26, %v8348_v53  ;;  %v3549_v46 = vadd.f32 %v5982_v16, %v3388_v43  ;;  %v4413_v42 = vsel %vm25_vm0, %v4329_v7, 0.0  ;;  %v4330_v3 = vmul.f32 %v8577_v38, %v8577_v38 }
 0x2f5   :  { %4414 = vadd.xlane.f32.xlu0 %v4413_v42 }
 0x2f6   :  { %v3585_v23 = vadd.f32 %v3549_v46, %v2141_v41  ;;  %v3552_v10 = vadd.f32 %v5985_v6, %v3391_v4  ;;  %v6018_v28 = vpop.f32.mrb[0].mxu0  ;;  %v4416_v29 = vsel %vm25_vm0, %v4330_v3, 0.0 }
 0x2f7   :  { %4417 = vadd.xlane.f32.xlu1 %v4416_v29  ;;  %v6019_v56 = vpop.f32.mrb[1].mxu0  ;;  %v3721_v61 = vld [vmem:[#allocation3 + $0xe0] sm:$0xff] }
 0x2f8   :  { %3617 = vst.msk [vmem:[#allocation3 + $0xf0] sm:$0xff] %vm25_vm0, %v3585_v23  ;;  %v3586_v13 = vadd.f32 %v3552_v10, %v2142_v36  ;;  %v6020_v53 = vadd.f32 %v6019_v56, %v6018_v28  ;;  %v8586_v17 = vadd.f32 %v8361_v33, %v3721_v61 }
 0x2f9   :  { %v3722_v5 = vld [vmem:[#allocation3 + $0xe8] sm:$0xff] }
 0x2fa   :  { %3618 = vst.msk [vmem:[#allocation3 + $0xf8] sm:$0xff] %vm25_vm0, %v3586_v13  ;;  %v6021_v55 = vpop.f32.mrb[2].mxu0  ;;  %v4331_v8 = vmul.f32 %v8586_v17, %v8586_v17  ;;  %v8592_v11 = vadd.f32 %v8361_v33, %v3722_v5  ;;  %v4431_v44 = vmul.f32 %v6020_v53, %v6020_v53 }
 0x2fb   :  { %v6022_v32 = vpop.f32.mrb[3].mxu0 }
 0x2fc   :  { %v6023_v40 = vadd.f32 %v6022_v32, %v6021_v55  ;;  %v4419_v21 = vsel %vm25_vm0, %v4331_v8, 0.0  ;;  %v4332_v48 = vmul.f32 %v8592_v11, %v8592_v11 }
 0x2fd   :  { %4420 = vadd.xlane.f32.xlu0 %v4419_v21 }
 0x2fe   :  { %v6278_v0 = vpack.c.bf16 %v6023_v40, %v6020_v53  ;;  %v4432_v60 = vmul.f32 %v6023_v40, %v6023_v40  ;;  %v4422_v16 = vsel %vm25_vm0, %v4332_v48, 0.0  ;;  %v6024_v24 = vpop.f32.mrb[4].mxu0 }
 0x2ff   :  { %4423 = vadd.xlane.f32.xlu1 %v4422_v16  ;;  %v6025_v52 = vpop.f32.mrb[5].mxu0  ;;  %v3723_v43 = vld [vmem:[#allocation3 + $0xf0] sm:$0xff] }
 0x300   :  { %v6327_v26 = vpack.c.bf16 %v4432_v60, %v4431_v44  ;;  %6280 = vmatprep.subr.msk.bf16.mxu1 %vm8599_vm2, %v6278_v0  ;;  %v6026_v58 = vadd.f32 %v6025_v52, %v6024_v24  ;;  %v8607_v7 = vadd.f32 %v8361_v33, %v3723_v43 }
 0x301   :  { %6283 = vmatpush3.bf16.xpose.msk.msra.mxu1 %vm8599_vm2, %v6278_v0  ;;  %v3724_v41 = vld [vmem:[#allocation3 + $0xf8] sm:$0xff] }
 0x302   :  { %v6027_v6 = vpop.f32.mrb[6].mxu0  ;;  %6329 = vmatpush3.bf16.xpose.msk.msra.mxu0 %vm8599_vm2, %v6327_v26  ;;  %v4333_v4 = vmul.f32 %v8607_v7, %v8607_v7  ;;  %v8616_v46 = vadd.f32 %v8361_v33, %v3724_v41  ;;  %v4433_v10 = vmul.f32 %v6026_v58, %v6026_v58 }
 0x303   :  { %v6028_v42 = vpop.f32.mrb[7].mxu0  ;;  %6330 = vmatprep.subr.bf16.mxu0 %v6458_v54 }
 0x304   :  { %v6029_v3 = vadd.f32 %v6028_v42, %v6027_v6  ;;  %v4425_v36 = vsel %vm25_vm0, %v4333_v4, 0.0  ;;  %v4334_v23 = vmul.f32 %v8616_v46, %v8616_v46 }
 0x305   :  { %4426 = vadd.xlane.f32.xlu0 %v4425_v36 }
 0x306   :  { %v6284_v28 = vpack.c.bf16 %v6029_v3, %v6026_v58  ;;  %v4434_v29 = vmul.f32 %v6029_v3, %v6029_v3  ;;  %v4428_v56 = vsel %vm25_vm0, %v4334_v23, 0.0  ;;  %v6030_v61 = vpop.f32.mrb[8].mxu0 }
 0x307   :  { %4429 = vadd.xlane.f32.xlu1 %v4428_v56  ;;  %v6031_v13 = vpop.f32.mrb[9].mxu0 }
 0x308   :  { %v6331_v33 = vpack.c.bf16 %v4434_v29, %v4433_v10  ;;  %6286 = vmatprep.subr.msk.bf16.mxu1 %vm8599_vm2, %v6284_v28  ;;  %v6032_v53 = vadd.f32 %v6031_v13, %v6030_v61 }
 0x309   :  { %6289 = vmatpush3.bf16.xpose.msk.msra.mxu1 %vm8599_vm2, %v6284_v28 }
 0x30a   :  { %v6033_v5 = vpop.f32.mrb[10].mxu0  ;;  %6333 = vmatpush3.bf16.xpose.msk.msra.mxu0 %vm8599_vm2, %v6331_v33  ;;  %v4435_v32 = vmul.f32 %v6032_v53, %v6032_v53 }
 0x30b   :  { %v6034_v55 = vpop.f32.mrb[11].mxu0  ;;  %6334 = vmatprep.subr.bf16.mxu0 %v6458_v54 }
 0x30c   :  { %v6035_v8 = vadd.f32 %v6034_v55, %v6033_v5 }
 0x30e   :  { %v6290_v40 = vpack.c.bf16 %v6035_v8, %v6032_v53  ;;  %v4436_v21 = vmul.f32 %v6035_v8, %v6035_v8  ;;  %v6036_v48 = vpop.f32.mrb[12].mxu0 }
 0x30f   :  { %v6037_v44 = vpop.f32.mrb[13].mxu0 }
 0x310   :  { %v6335_v0 = vpack.c.bf16 %v4436_v21, %v4435_v32  ;;  %6292 = vmatprep.subr.msk.bf16.mxu1 %vm8599_vm2, %v6290_v40  ;;  %v6038_v60 = vadd.f32 %v6037_v44, %v6036_v48 }
 0x311   :  { %6295 = vmatpush3.bf16.xpose.msk.msra.mxu1 %vm8599_vm2, %v6290_v40 }
 0x312   :  { %v6039_v16 = vpop.f32.mrb[14].mxu0  ;;  %6337 = vmatpush3.bf16.xpose.msk.msra.mxu0 %vm8599_vm2, %v6335_v0  ;;  %v4437_v43 = vmul.f32 %v6038_v60, %v6038_v60 }
 0x313   :  { %v6040_v24 = vpop.f32.mrb[15].mxu0  ;;  %6338 = vmatprep.subr.bf16.mxu0 %v6458_v54 }
 0x314   :  { %v6041_v52 = vadd.f32 %v6040_v24, %v6039_v16 }
 0x316   :  { %v6296_v26 = vpack.c.bf16 %v6041_v52, %v6038_v60  ;;  %v4438_v58 = vmul.f32 %v6041_v52, %v6041_v52  ;;  %v6042_v41 = vpop.f32.mrb[16].mxu0 }
 0x317   :  { %v6043_v6 = vpop.f32.mrb[17].mxu0 }
 0x318   :  { %v6339_v4 = vpack.c.bf16 %v4438_v58, %v4437_v43  ;;  %6298 = vmatprep.subr.msk.bf16.mxu1 %vm8599_vm2, %v6296_v26  ;;  %v6044_v42 = vadd.f32 %v6043_v6, %v6042_v41 }
 0x319   :  { %6301 = vmatpush3.bf16.xpose.msk.msra.mxu1 %vm8599_vm2, %v6296_v26 }
 0x31a   :  { %v6045_v3 = vpop.f32.mrb[18].mxu0  ;;  %6341 = vmatpush3.bf16.xpose.msk.msra.mxu0 %vm8599_vm2, %v6339_v4  ;;  %v4439_v10 = vmul.f32 %v6044_v42, %v6044_v42 }
 0x31b   :  { %v6046_v36 = vpop.f32.mrb[19].mxu0  ;;  %6342 = vmatprep.subr.bf16.mxu0 %v6458_v54 }
 0x31c   :  { %v6047_v23 = vadd.f32 %v6046_v36, %v6045_v3 }
 0x31e   :  { %v6302_v28 = vpack.c.bf16 %v6047_v23, %v6044_v42  ;;  %v4440_v29 = vmul.f32 %v6047_v23, %v6047_v23  ;;  %v6048_v56 = vpop.f32.mrb[20].mxu0 }
 0x31f   :  { %v6049_v61 = vpop.f32.mrb[21].mxu0 }
 0x320   :  { %v6343_v13 = vpack.c.bf16 %v4440_v29, %v4439_v10  ;;  %6304 = vmatprep.subr.msk.bf16.mxu1 %vm8599_vm2, %v6302_v28  ;;  %v6050_v33 = vadd.f32 %v6049_v61, %v6048_v56 }
 0x321   :  { %6307 = vmatpush3.bf16.xpose.msk.msra.mxu1 %vm8599_vm2, %v6302_v28 }
 0x322   :  { %v6051_v53 = vpop.f32.mrb[22].mxu0  ;;  %6345 = vmatpush3.bf16.xpose.msk.msra.mxu0 %vm8599_vm2, %v6343_v13  ;;  %v4441_v8 = vmul.f32 %v6050_v33, %v6050_v33 }
 0x323   :  { %v6052_v5 = vpop.f32.mrb[23].mxu0  ;;  %6346 = vmatprep.subr.bf16.mxu0 %v6458_v54 }
 0x324   :  { %v6053_v55 = vadd.f32 %v6052_v5, %v6051_v53 }
 0x326   :  { %v6308_v32 = vpack.c.bf16 %v6053_v55, %v6050_v33  ;;  %v4442_v40 = vmul.f32 %v6053_v55, %v6053_v55  ;;  %v6054_v21 = vpop.f32.mrb[24].mxu0 }
 0x327   :  { %v6055_v48 = vpop.f32.mrb[25].mxu0 }
 0x328   :  { %v6347_v44 = vpack.c.bf16 %v4442_v40, %v4441_v8  ;;  %6310 = vmatprep.subr.msk.bf16.mxu1 %vm8599_vm2, %v6308_v32  ;;  %v6056_v0 = vadd.f32 %v6055_v48, %v6054_v21 }
 0x329   :  { %6313 = vmatpush3.bf16.xpose.msk.msra.mxu1 %vm8599_vm2, %v6308_v32 }
 0x32a   :  { %v6057_v60 = vpop.f32.mrb[26].mxu0  ;;  %6349 = vmatpush3.bf16.xpose.msk.msra.mxu0 %vm8599_vm2, %v6347_v44  ;;  %v4443_v52 = vmul.f32 %v6056_v0, %v6056_v0 }
 0x32b   :  { %v6058_v16 = vpop.f32.mrb[27].mxu0  ;;  %6350 = vmatprep.subr.bf16.mxu0 %v6458_v54 }
 0x32c   :  { %v6059_v24 = vadd.f32 %v6058_v16, %v6057_v60 }
 0x32e   :  { %v6314_v43 = vpack.c.bf16 %v6059_v24, %v6056_v0  ;;  %v4444_v26 = vmul.f32 %v6059_v24, %v6059_v24  ;;  %v6060_v58 = vpop.f32.mrb[28].mxu0 }
 0x32f   :  { %v6061_v41 = vpop.f32.mrb[29].mxu0 }
 0x330   :  { %v6351_v6 = vpack.c.bf16 %v4444_v26, %v4443_v52  ;;  %6316 = vmatprep.subr.msk.bf16.mxu1 %vm8599_vm2, %v6314_v43  ;;  %v6062_v4 = vadd.f32 %v6061_v41, %v6060_v58 }
 0x331   :  { %6319 = vmatpush3.bf16.xpose.msk.msra.mxu1 %vm8599_vm2, %v6314_v43 }
 0x332   :  { %v6063_v42 = vpop.f32.mrb[30].mxu0  ;;  %6353 = vmatpush3.bf16.xpose.msk.msra.mxu0 %vm8599_vm2, %v6351_v6  ;;  %v4445_v23 = vmul.f32 %v6062_v4, %v6062_v4 }
 0x333   :  { %v6064_v3 = vpop.f32.mrb[31].mxu0  ;;  %6354 = vmatprep.subr.bf16.mxu0 %v6458_v54  ;;  %v6460_v54 = vmov 1.0  }
 0x334   :  { %v6065_v36 = vadd.f32 %v6064_v3, %v6063_v42 }
 0x336   :  { %v6320_v10 = vpack.c.bf16 %v6065_v36, %v6062_v4  ;;  %v4446_v28 = vmul.f32 %v6065_v36, %v6065_v36 }
 0x338   :  { %v6355_v29 = vpack.c.bf16 %v4446_v28, %v4445_v23  ;;  %6322 = vmatprep.subr.msk.bf16.mxu1 %vm8599_vm2, %v6320_v10 }
 0x339   :  { %6325 = vmatpush3.bf16.xpose.msk.msra.mxu1 %vm8599_vm2, %v6320_v10 }
 0x33a   :  { %6357 = vmatpush3.bf16.xpose.msk.msra.mxu0 %vm8599_vm2, %v6355_v29 }
 0x340   :  { %6164 = vmatmul.mubr.msk.f32.vlgmr.msra.gmra.mrb[0].mxu1 %vm25_vm0, %v8368_v25  ;;  %v4632_v25 = vlaneseq }
 0x341   :  { %6166 = vmatprep.mubr.msk.f32.mxu1 %vm25_vm0, %v8377_v49  ;;  %6244 = vmatmul.mubr.msk.f32.vlgmr.msra.gmra.mrb[32].mxu0 %vm25_vm0, %v6460_v54 }
 0x342   :  { %v4633_v49 = vshrl.u32 %v4632_v25, 7 }
 0x344   :  { %6167 = vmatmul.mubr.msk.f32.gmra.mrb[2].mxu1 %vm25_vm0, %v8384_v63  ;;  %v4337_v63 = vpop.xlane.xlu0 %4336 }
 0x345   :  { %6169 = vmatprep.mubr.msk.f32.mxu1 %vm25_vm0, %v8393_v34  ;;  %v4634_v34 = vsub.s32 0, %v4633_v49 }
 0x348   :  { %6170 = vmatmul.mubr.msk.f32.gmra.mrb[4].mxu1 %vm25_vm0, %v8400_v51  ;;  %v4343_v51 = vpop.xlane.xlu1 %4342 }
 0x349   :  { %6172 = vmatprep.mubr.msk.f32.mxu1 %vm25_vm0, %v8409_v20 }
 0x34c   :  { %6173 = vmatmul.mubr.msk.f32.gmra.mrb[6].mxu1 %vm25_vm0, %v8416_v9 }
 0x34d   :  { %6175 = vmatprep.mubr.msk.f32.mxu1 %vm25_vm0, %v8425_v14 }
 0x350   :  { %6176 = vmatmul.mubr.msk.f32.gmra.mrb[8].mxu1 %vm25_vm0, %v8432_v62 }
 0x351   :  { %6178 = vmatprep.mubr.msk.f32.mxu1 %vm25_vm0, %v8441_v59  ;;  %v4340_v59 = vpop.xlane.xlu0 %4339 }
 0x354   :  { %6179 = vmatmul.mubr.msk.f32.gmra.mrb[10].mxu1 %vm25_vm0, %v8448_v15 }
 0x355   :  { %6181 = vmatprep.mubr.msk.f32.mxu1 %vm25_vm0, %v8457_v39 }
 0x358   :  { %6182 = vmatmul.mubr.msk.f32.gmra.mrb[12].mxu1 %vm25_vm0, %v8464_v2 }
 0x359   :  { %6184 = vmatprep.mubr.msk.f32.mxu1 %vm25_vm0, %v8473_v22 }
 0x35c   :  { %6185 = vmatmul.mubr.msk.f32.gmra.mrb[14].mxu1 %vm25_vm0, %v8480_v37 }
 0x35d   :  { %6187 = vmatprep.mubr.msk.f32.mxu1 %vm25_vm0, %v8490_v45 }
 0x360   :  { %6188 = vmatmul.mubr.msk.f32.gmra.mrb[16].mxu1 %vm25_vm0, %v8497_v1 }
 0x361   :  { %6190 = vmatprep.mubr.msk.f32.mxu1 %vm25_vm0, %v8506_v12 }
 0x364   :  { %6191 = vmatmul.mubr.msk.f32.gmra.mrb[18].mxu1 %vm25_vm0, %v8513_v27 }
 0x365   :  { %6193 = vmatprep.mubr.msk.f32.mxu1 %vm25_vm0, %v8522_v19  ;;  %v4346_v19 = vpop.xlane.xlu1 %4345 }
 0x368   :  { %6194 = vmatmul.mubr.msk.f32.gmra.mrb[20].mxu1 %vm25_vm0, %v8529_v30 }
 0x369   :  { %6196 = vmatprep.mubr.msk.f32.mxu1 %vm25_vm0, %v8538_v57 }
 0x36c   :  { %6197 = vmatmul.mubr.msk.f32.gmra.mrb[22].mxu1 %vm25_vm0, %v8545_v47 }
 0x36d   :  { %6199 = vmatprep.mubr.msk.f32.mxu1 %vm25_vm0, %v8554_v35 }
 0x370   :  { %6200 = vmatmul.mubr.msk.f32.gmra.mrb[24].mxu1 %vm25_vm0, %v8561_v50 }
 0x371   :  { %6202 = vmatprep.mubr.msk.f32.mxu1 %vm25_vm0, %v8570_v18 }
 0x374   :  { %6203 = vmatmul.mubr.msk.f32.gmra.mrb[26].mxu1 %vm25_vm0, %v8577_v38 }
 0x375   :  { %6205 = vmatprep.mubr.msk.f32.mxu1 %vm25_vm0, %v8586_v17 }
 0x378   :  { %6206 = vmatmul.mubr.msk.f32.gmra.mrb[28].mxu1 %vm25_vm0, %v8592_v11  ;;  %v4352_v11 = vpop.xlane.xlu1 %4351 }
 0x379   :  { %6208 = vmatprep.mubr.msk.f32.mxu1 %vm25_vm0, %v8607_v7 }
 0x37c   :  { %6209 = vmatmul.mubr.msk.f32.gmra.mrb[30].mxu1 %vm25_vm0, %v8616_v46  ;;  %v4349_v46 = vpop.xlane.xlu0 %4348  ;;  %v4358_v55 = vpop.xlane.xlu1 %4357 }
 0x380   :  { %v4355_v40 = vpop.xlane.xlu0 %4354  ;;  %v4364_v24 = vpop.xlane.xlu1 %4363 }
 0x384   :  { %v4361_v26 = vpop.xlane.xlu0 %4360  ;;  %v4370_v36 = vpop.xlane.xlu1 %4369 }
 0x388   :  { %v4367_v28 = vpop.xlane.xlu0 %4366 }
 0x413   :  { %v6165_v20 = vpop.f32.mrb[0].mxu1 }
 0x414   :  { %v4569_v9 = vmul.f32 2.0, %v6165_v20  ;;  %v4144_v14 = vpop.f32.mrb[1].mxu1  ;;  %v4564_v62 = vpop.f32.mrb[32].mxu0 }
 0x415   :  { %v4568_v15 = vmul.f32 2.0, %v4144_v14  ;;  %v8734_v39 = vrot.slane %v4564_v62, %v4634_v34  ;;  %v6245_v2 = vpop.f32.mrb[33].mxu0  ;;  %v4373_v14 = vpop.xlane.xlu0 %4372 }
 0x416   :  { %v4601_v22 = vsub.f32 %v4569_v9, %v4340_v59 }
 0x417   :  { %v4600_v37 = vsub.f32 %v4568_v15, %v4337_v63  ;;  %v6168_v45 = vpop.f32.mrb[2].mxu1 }
 0x418   :  { %v4637_v1 = vsub.f32 %v4601_v22, %v8734_v39  ;;  %v4571_v12 = vmul.f32 2.0, %v6168_v45  ;;  %v4154_v27 = vpop.f32.mrb[3].mxu1 }
 0x419   :  { %v4636_v30 = vsub.f32 %v4600_v37, %v8734_v39  ;;  %v4570_v57 = vmul.f32 2.0, %v4154_v27  ;;  %v4379_v27 = vpop.xlane.xlu0 %4378 }
 0x41a   :  { %v4603_v47 = vsub.f32 %v4571_v12, %v4346_v19  ;;  %4669 = vst [vmem:[%s8869_s5 + $0x8] sm:$0xff] %v4637_v1 }
 0x41b   :  { %4668 = vst [vmem:[%s8869_s5] sm:$0xff] %v4636_v30  ;;  %v4602_v35 = vsub.f32 %v4570_v57, %v4343_v51  ;;  %v6171_v50 = vpop.f32.mrb[4].mxu1  ;;  %v4376_v51 = vpop.xlane.xlu1 %4375 }
 0x41c   :  { %v4639_v18 = vsub.f32 %v4603_v47, %v8734_v39  ;;  %v4573_v38 = vmul.f32 2.0, %v6171_v50  ;;  %v4164_v17 = vpop.f32.mrb[5].mxu1 }
 0x41d   :  { %v4638_v31 = vsub.f32 %v4602_v35, %v8734_v39  ;;  %v4572_v7 = vmul.f32 2.0, %v4164_v17 }
 0x41e   :  { %4671 = vst [vmem:[%s8869_s5 + $0x18] sm:$0xff] %v4639_v18  ;;  %v4605_v56 = vsub.f32 %v4573_v38, %v4352_v11  ;;  %v4385_v11 = vpop.xlane.xlu0 %4384 }
 0x41f   :  { %4670 = vst [vmem:[%s8869_s5 + $0x10] sm:$0xff] %v4638_v31  ;;  %v4604_v61 = vsub.f32 %v4572_v7, %v4349_v46  ;;  %v6174_v13 = vpop.f32.mrb[6].mxu1  ;;  %v4382_v45 = vpop.xlane.xlu1 %4381 }
 0x420   :  { %v4641_v33 = vsub.f32 %v4605_v56, %v8734_v39  ;;  %v4575_v53 = vmul.f32 2.0, %v6174_v13  ;;  %v4174_v5 = vpop.f32.mrb[7].mxu1 }
 0x421   :  { %v4640_v8 = vsub.f32 %v4604_v61, %v8734_v39  ;;  %v4574_v32 = vmul.f32 2.0, %v4174_v5 }
 0x422   :  { %4673 = vst [vmem:[%s8869_s5 + $0x28] sm:$0xff] %v4641_v33  ;;  %v4607_v21 = vsub.f32 %v4575_v53, %v4358_v55  ;;  %v4391_v55 = vpop.xlane.xlu0 %4390 }
 0x423   :  { %4672 = vst [vmem:[%s8869_s5 + $0x20] sm:$0xff] %v4640_v8  ;;  %v4606_v48 = vsub.f32 %v4574_v32, %v4355_v40  ;;  %v6177_v44 = vpop.f32.mrb[8].mxu1  ;;  %v4388_v18 = vpop.xlane.xlu1 %4387 }
 0x424   :  { %v4643_v0 = vsub.f32 %v4607_v21, %v8734_v39  ;;  %v4577_v60 = vmul.f32 2.0, %v6177_v44  ;;  %v4184_v16 = vpop.f32.mrb[9].mxu1 }
 0x425   :  { %v4642_v52 = vsub.f32 %v4606_v48, %v8734_v39  ;;  %v4576_v43 = vmul.f32 2.0, %v4184_v16 }
 0x426   :  { %4675 = vst [vmem:[%s8869_s5 + $0x38] sm:$0xff] %v4643_v0  ;;  %v4609_v58 = vsub.f32 %v4577_v60, %v4364_v24  ;;  %v4397_v24 = vpop.xlane.xlu0 %4396 }
 0x427   :  { %4674 = vst [vmem:[%s8869_s5 + $0x30] sm:$0xff] %v4642_v52  ;;  %v4608_v41 = vsub.f32 %v4576_v43, %v4361_v26  ;;  %v6180_v6 = vpop.f32.mrb[10].mxu1  ;;  %v4394_v33 = vpop.xlane.xlu1 %4393 }
 0x428   :  { %v4645_v4 = vsub.f32 %v4609_v58, %v8734_v39  ;;  %v4579_v42 = vmul.f32 2.0, %v6180_v6  ;;  %v4194_v3 = vpop.f32.mrb[11].mxu1 }
 0x429   :  { %v4644_v23 = vsub.f32 %v4608_v41, %v8734_v39  ;;  %v4578_v10 = vmul.f32 2.0, %v4194_v3 }
 0x42a   :  { %4677 = vst [vmem:[%s8869_s5 + $0x48] sm:$0xff] %v4645_v4  ;;  %v4611_v29 = vsub.f32 %v4579_v42, %v4370_v36  ;;  %v4403_v36 = vpop.xlane.xlu0 %4402 }
 0x42b   :  { %4676 = vst [vmem:[%s8869_s5 + $0x40] sm:$0xff] %v4644_v23  ;;  %v4610_v54 = vsub.f32 %v4578_v10, %v4367_v28  ;;  %v6183_v25 = vpop.f32.mrb[12].mxu1  ;;  %v4400_v0 = vpop.xlane.xlu1 %4399 }
 0x42c   :  { %v4647_v49 = vsub.f32 %v4611_v29, %v8734_v39  ;;  %v4581_v63 = vmul.f32 2.0, %v6183_v25  ;;  %v4204_v34 = vpop.f32.mrb[13].mxu1 }
 0x42d   :  { %v4646_v20 = vsub.f32 %v4610_v54, %v8734_v39  ;;  %v4580_v9 = vmul.f32 2.0, %v4204_v34 }
 0x42e   :  { %4679 = vst [vmem:[%s8869_s5 + $0x58] sm:$0xff] %v4647_v49  ;;  %v4613_v62 = vsub.f32 %v4581_v63, %v4376_v51  ;;  %v4409_v51 = vpop.xlane.xlu0 %4408 }
 0x42f   :  { %4678 = vst [vmem:[%s8869_s5 + $0x50] sm:$0xff] %v4646_v20  ;;  %v4612_v59 = vsub.f32 %v4580_v9, %v4373_v14  ;;  %v6186_v15 = vpop.f32.mrb[14].mxu1  ;;  %v4406_v4 = vpop.xlane.xlu1 %4405 }
 0x430   :  { %v4649_v2 = vsub.f32 %v4613_v62, %v8734_v39  ;;  %v4583_v22 = vmul.f32 2.0, %v6186_v15  ;;  %v4214_v37 = vpop.f32.mrb[15].mxu1 }
 0x431   :  { %v4648_v1 = vsub.f32 %v4612_v59, %v8734_v39  ;;  %v4582_v12 = vmul.f32 2.0, %v4214_v37 }
 0x432   :  { %4681 = vst [vmem:[%s8869_s5 + $0x68] sm:$0xff] %v4649_v2  ;;  %v4615_v19 = vsub.f32 %v4583_v22, %v4382_v45  ;;  %v4415_v45 = vpop.xlane.xlu0 %4414 }
 0x433   :  { %4680 = vst [vmem:[%s8869_s5 + $0x60] sm:$0xff] %v4648_v1  ;;  %v4614_v30 = vsub.f32 %v4582_v12, %v4379_v27  ;;  %v6189_v57 = vpop.f32.mrb[16].mxu1  ;;  %v4412_v49 = vpop.xlane.xlu1 %4411 }
 0x434   :  { %v4651_v47 = vsub.f32 %v4615_v19, %v8734_v39  ;;  %v4585_v35 = vmul.f32 2.0, %v6189_v57  ;;  %v4224_v50 = vpop.f32.mrb[17].mxu1 }
 0x435   :  { %v4650_v38 = vsub.f32 %v4614_v30, %v8734_v39  ;;  %v4584_v17 = vmul.f32 2.0, %v4224_v50 }
 0x436   :  { %4683 = vst [vmem:[%s8869_s5 + $0x78] sm:$0xff] %v4651_v47  ;;  %v4617_v31 = vsub.f32 %v4585_v35, %v4388_v18  ;;  %v4421_v18 = vpop.xlane.xlu0 %4420 }
 0x437   :  { %4682 = vst [vmem:[%s8869_s5 + $0x70] sm:$0xff] %v4650_v38  ;;  %v4616_v7 = vsub.f32 %v4584_v17, %v4385_v11  ;;  %v6192_v46 = vpop.f32.mrb[18].mxu1  ;;  %v4418_v2 = vpop.xlane.xlu1 %4417 }
 0x438   :  { %v4653_v56 = vsub.f32 %v4617_v31, %v8734_v39  ;;  %v4587_v61 = vmul.f32 2.0, %v6192_v46  ;;  %v4234_v13 = vpop.f32.mrb[19].mxu1 }
 0x439   :  { %v4652_v53 = vsub.f32 %v4616_v7, %v8734_v39  ;;  %v4586_v5 = vmul.f32 2.0, %v4234_v13 }
 0x43a   :  { %4685 = vst [vmem:[%s8869_s5 + $0x88] sm:$0xff] %v4653_v56  ;;  %v4619_v8 = vsub.f32 %v4587_v61, %v4394_v33  ;;  %v4427_v33 = vpop.xlane.xlu0 %4426 }
 0x43b   :  { %4684 = vst [vmem:[%s8869_s5 + $0x80] sm:$0xff] %v4652_v53  ;;  %v4618_v32 = vsub.f32 %v4586_v5, %v4391_v55  ;;  %v6195_v40 = vpop.f32.mrb[20].mxu1  ;;  %v4424_v47 = vpop.xlane.xlu1 %4423 }
 0x43c   :  { %v4655_v21 = vsub.f32 %v4619_v8, %v8734_v39  ;;  %v4589_v48 = vmul.f32 2.0, %v6195_v40  ;;  %v4244_v44 = vpop.f32.mrb[21].mxu1 }
 0x43d   :  { %v4654_v60 = vsub.f32 %v4618_v32, %v8734_v39  ;;  %v4588_v16 = vmul.f32 2.0, %v4244_v44 }
 0x43e   :  { %4687 = vst [vmem:[%s8869_s5 + $0x98] sm:$0xff] %v4655_v21  ;;  %v4621_v52 = vsub.f32 %v4589_v48, %v4400_v0 }
 0x43f   :  { %4686 = vst [vmem:[%s8869_s5 + $0x90] sm:$0xff] %v4654_v60  ;;  %v4620_v43 = vsub.f32 %v4588_v16, %v4397_v24  ;;  %v6198_v26 = vpop.f32.mrb[22].mxu1  ;;  %v4430_v56 = vpop.xlane.xlu1 %4429 }
 0x440   :  { %v4657_v58 = vsub.f32 %v4621_v52, %v8734_v39  ;;  %v4591_v41 = vmul.f32 2.0, %v6198_v26  ;;  %v4254_v6 = vpop.f32.mrb[23].mxu1 }
 0x441   :  { %v4656_v42 = vsub.f32 %v4620_v43, %v8734_v39  ;;  %v4590_v3 = vmul.f32 2.0, %v4254_v6 }
 0x442   :  { %4689 = vst [vmem:[%s8869_s5 + $0xa8] sm:$0xff] %v4657_v58  ;;  %v4623_v23 = vsub.f32 %v4591_v41, %v4406_v4 }
 0x443   :  { %4688 = vst [vmem:[%s8869_s5 + $0xa0] sm:$0xff] %v4656_v42  ;;  %v4622_v10 = vsub.f32 %v4590_v3, %v4403_v36  ;;  %v6201_v28 = vpop.f32.mrb[24].mxu1 }
 0x444   :  { %v4659_v29 = vsub.f32 %v4623_v23, %v8734_v39  ;;  %v4593_v54 = vmul.f32 2.0, %v6201_v28  ;;  %v4264_v25 = vpop.f32.mrb[25].mxu1 }
 0x445   :  { %v4658_v63 = vsub.f32 %v4622_v10, %v8734_v39  ;;  %v4592_v34 = vmul.f32 2.0, %v4264_v25 }
 0x446   :  { %4691 = vst [vmem:[%s8869_s5 + $0xb8] sm:$0xff] %v4659_v29  ;;  %v4625_v20 = vsub.f32 %v4593_v54, %v4412_v49 }
 0x447   :  { %4690 = vst [vmem:[%s8869_s5 + $0xb0] sm:$0xff] %v4658_v63  ;;  %v4624_v9 = vsub.f32 %v4592_v34, %v4409_v51  ;;  %v6204_v14 = vpop.f32.mrb[26].mxu1 }
 0x448   :  { %v4661_v62 = vsub.f32 %v4625_v20, %v8734_v39  ;;  %v4595_v59 = vmul.f32 2.0, %v6204_v14  ;;  %v4274_v15 = vpop.f32.mrb[27].mxu1 }
 0x449   :  { %v4660_v22 = vsub.f32 %v4624_v9, %v8734_v39  ;;  %v4594_v37 = vmul.f32 2.0, %v4274_v15 }
 0x44a   :  { %4693 = vst [vmem:[%s8869_s5 + $0xc8] sm:$0xff] %v4661_v62  ;;  %v4627_v1 = vsub.f32 %v4595_v59, %v4418_v2 }
 0x44b   :  { %4692 = vst [vmem:[%s8869_s5 + $0xc0] sm:$0xff] %v4660_v22  ;;  %v4626_v12 = vsub.f32 %v4594_v37, %v4415_v45  ;;  %v6207_v27 = vpop.f32.mrb[28].mxu1 }
 0x44c   :  { %v4663_v19 = vsub.f32 %v4627_v1, %v8734_v39  ;;  %v4597_v30 = vmul.f32 2.0, %v6207_v27  ;;  %v4284_v57 = vpop.f32.mrb[29].mxu1 }
 0x44d   :  { %v4662_v35 = vsub.f32 %v4626_v12, %v8734_v39  ;;  %v4596_v50 = vmul.f32 2.0, %v4284_v57 }
 0x44e   :  { %4695 = vst [vmem:[%s8869_s5 + $0xd8] sm:$0xff] %v4663_v19  ;;  %v4629_v38 = vsub.f32 %v4597_v30, %v4424_v47 }
 0x44f   :  { %4694 = vst [vmem:[%s8869_s5 + $0xd0] sm:$0xff] %v4662_v35  ;;  %v4628_v17 = vsub.f32 %v4596_v50, %v4421_v18  ;;  %v6210_v11 = vpop.f32.mrb[30].mxu1 }
 0x450   :  { %v4665_v31 = vsub.f32 %v4629_v38, %v8734_v39  ;;  %v4599_v7 = vmul.f32 2.0, %v6210_v11  ;;  %v4294_v46 = vpop.f32.mrb[31].mxu1 }
 0x451   :  { %v4664_v61 = vsub.f32 %v4628_v17, %v8734_v39  ;;  %v4598_v13 = vmul.f32 2.0, %v4294_v46 }
 0x452   :  { %4697 = vst [vmem:[%s8869_s5 + $0xe8] sm:$0xff] %v4665_v31  ;;  %v4631_v53 = vsub.f32 %v4599_v7, %v4430_v56 }
 0x453   :  { %4696 = vst [vmem:[%s8869_s5 + $0xe0] sm:$0xff] %v4664_v61  ;;  %v4630_v5 = vsub.f32 %v4598_v13, %v4427_v33 }
 0x454   :  { %v4667_v55 = vsub.f32 %v4631_v53, %v8734_v39 }
 0x455   :  { %v4666_v8 = vsub.f32 %v4630_v5, %v8734_v39 }
 0x456   :  { %4699 = vst [vmem:[%s8869_s5 + $0xf8] sm:$0xff] %v4667_v55 }
 0x457   :  { %4698 = vst [vmem:[%s8869_s5 + $0xf0] sm:$0xff] %v4666_v8 }

</bundles_post_ra>
